<compile_context>
chip_gen: v5e
topology: v5e:2x2
jax: 0.10.0
libtpu: 0.0.40
codegen_flags: <defaults>
</compile_context>

<pallas_src>
import numpy as np

import jax
import jax.numpy as jnp
from jax.experimental import pallas as pl
from jax.experimental.pallas import tpu as pltpu


# ----------------------------------------------------------------------------
# Fused forward kernel: 8 matmuls + bias + ReLU, all VMEM resident.
# ----------------------------------------------------------------------------
def _fused_forward_kernel(obs_ref, acts_ref,
                          w_enc1, b_enc1, w_enc2, b_enc2,
                          w_fc1h, w_fc1a, b_fc1,
                          w_fc2, b_fc2, w_fc3, b_fc3,
                          w_dec1, b_dec1, w_dec23, b_dec23,
                          out_ref):
    def dense(x, w_ref, b_ref, relu):
        y = jnp.dot(x.astype(w_ref.dtype), w_ref[...],
                    preferred_element_type=jnp.float32)
        y = y + b_ref[...]
        return jnp.maximum(y, 0.0) if relu else y

    x = obs_ref[...]                                   # (B, C*H*W) f32
    # --- encoder: Conv2d(4,8,4,2)+ReLU ; Conv2d(8,16,3,1)+ReLU -------------
    h = dense(x, w_enc1, b_enc1, True)                 # (B, 392)
    h = dense(h, w_enc2, b_enc2, True)                 # (B, 400)
    # --- fc: Linear(404,64)+ReLU (concat folded) ; Linear(64,64)+ReLU ;
    #         Linear(64,400)+ReLU -----------------------------------------
    z = (jnp.dot(h.astype(w_fc1h.dtype), w_fc1h[...],
                 preferred_element_type=jnp.float32)
         + jnp.dot(acts_ref[...].astype(w_fc1a.dtype), w_fc1a[...],
                   preferred_element_type=jnp.float32)
         + b_fc1[...])
    z = jnp.maximum(z, 0.0)
    z = dense(z, w_fc2, b_fc2, True)
    z = dense(z, w_fc3, b_fc3, True)                   # (B, 400)
    # --- decoder: ConvT(16,8,3,1)+ReLU ; [ConvT(8,4,4,2) o Conv(4,4,3,1,1)]
    #     (last two layers have no ReLU between them -> pre-composed) -------
    d = dense(z, w_dec1, b_dec1, True)                 # (B, 392)
    d = dense(d, w_dec23, b_dec23, False)              # (B, 1024)  (no ReLU)
    out_ref[...] = d.astype(out_ref.dtype)


_WEIGHT_KEYS = ("w_enc1", "w_enc2", "w_fc1h", "w_fc1a", "w_fc2", "w_fc3",
                "w_dec1", "w_dec23")
_FLAT_ORDER = ("w_enc1", "b_enc1", "w_enc2", "b_enc2",
               "w_fc1h", "w_fc1a", "b_fc1",
               "w_fc2", "b_fc2", "w_fc3", "b_fc3",
               "w_dec1", "b_dec1", "w_dec23", "b_dec23")


def state_prediction_forward(params, obs, acts):
    """obs: (B, C, H, W) f32, acts: (B, n_acts) f32 -> (B, C, H, W) f32."""
    B, C, H, W = obs.shape
    obs_flat = obs.reshape(B, C * H * W).astype(jnp.float32)
    acts = acts.astype(jnp.float32)
    operands = (obs_flat, acts) + tuple(params[k] for k in _FLAT_ORDER)

    flops = 2 * B * sum(int(params[k].shape[0]) * int(params[k].shape[1])
                        for k in _WEIGHT_KEYS)
    bytes_accessed = (sum(int(x.size) * x.dtype.itemsize for x in operands)
                      + B * C * H * W * 4)

    vmem_spec = pl.BlockSpec(memory_space=pltpu.MemorySpace.VMEM)
    out_flat = pl.pallas_call(
        _fused_forward_kernel,
        out_shape=jax.ShapeDtypeStruct((B, C * H * W), jnp.float32),
        in_specs=[vmem_spec] * len(operands),
        out_specs=vmem_spec,
        cost_estimate=pl.CostEstimate(flops=int(flops), transcendentals=0,
                                      bytes_accessed=int(bytes_accessed)),
    )(*operands)
    return out_flat.reshape(B, C, H, W)


# ----------------------------------------------------------------------------
# Parameter construction: PyTorch-layout weights -> dense matmul operators.
# All layout work (im2col structure, ConvTranspose handling, transposes, the
# dec2 o dec3 composition) is baked in HERE, once, outside the jitted forward.
# ----------------------------------------------------------------------------
def _conv2d_nchw(x, w, stride, padding):
    """Plain-JAX conv (no bias). x: (B,Cin,H,W); w: (Cout,Cin,KH,KW)."""
    B = x.shape[0]
    cout, cin, kh, kw = w.shape
    if padding:
        x = jnp.pad(x, ((0, 0), (0, 0), (padding, padding), (padding, padding)))
    _, _, H, W = x.shape
    oh = (H - kh) // stride + 1
    ow = (W - kw) // stride + 1
    cols = []
    for i in range(kh):
        for j in range(kw):
            cols.append(x[:, :, i:i + (oh - 1) * stride + 1:stride,
                                j:j + (ow - 1) * stride + 1:stride])
    col = jnp.stack(cols, axis=2)                       # (B, Cin, KH*KW, OH, OW)
    col = col.transpose(0, 3, 4, 1, 2).reshape(B * oh * ow, cin * kh * kw)
    wmat = w.reshape(cout, cin * kh * kw).T
    out = col @ wmat                                    # (B*OH*OW, Cout)
    return out.reshape(B, oh, ow, cout).transpose(0, 3, 1, 2)


def _dilate(x, s):
    if s == 1:
        return x
    B, C, H, W = x.shape
    out = jnp.zeros((B, C, (H - 1) * s + 1, (W - 1) * s + 1), x.dtype)
    return out.at[:, :, ::s, ::s].set(x)


def _conv_transpose2d_nchw(x, w, stride, padding):
    """Plain-JAX ConvTranspose2d (no bias). w: (Cin,Cout,KH,KW) PyTorch layout."""
    cin, cout, kh, kw = w.shape
    xd = _dilate(x, stride)
    w_conv = jnp.transpose(w, (1, 0, 2, 3))[:, :, ::-1, ::-1]
    return _conv2d_nchw(xd, w_conv, 1, kh - 1 - padding)


def _densify(fn, in_shape):
    """Dense (Din, Dout) matrix of the linear map `fn` on NCHW-flat vectors."""
    din = int(np.prod(in_shape))
    basis = jnp.eye(din, dtype=jnp.float32).reshape((din,) + tuple(in_shape))
    out = fn(basis)                                     # (din, Cout, OH, OW)
    return out.reshape(din, -1), tuple(int(s) for s in out.shape[1:])


def _expand_bias(b, out_shape):
    """Per-channel bias -> bias over the NCHW-flattened output, shape (1, Dout)."""
    return jnp.broadcast_to(b[:, None, None], out_shape).reshape(1, -1)


def make_params(key, obs_dim=(4, 16, 16), n_acts=4, hidden=64, scale=0.2,
                compute_dtype=jnp.bfloat16):
    C, H, W = obs_dim
    ks = jax.random.split(key, 16)
    init = lambda k, s: scale * jax.random.normal(k, s, dtype=jnp.float32)

    # Raw weights in PyTorch layouts (synthetic; not a checkpoint load).
    enc1_w = init(ks[0], (8, C, 4, 4));   enc1_b = init(ks[1], (8,))
    enc2_w = init(ks[2], (16, 8, 3, 3));  enc2_b = init(ks[3], (16,))
    dec1_w = init(ks[10], (16, 8, 3, 3)); dec1_b = init(ks[11], (8,))
    dec2_w = init(ks[12], (8, C, 4, 4));  dec2_b = init(ks[13], (C,))
    dec3_w = init(ks[14], (C, C, 3, 3));  dec3_b = init(ks[15], (C,))

    # Dense operators (exact by linearity), built once.
    W_enc1, s1 = _densify(lambda x: _conv2d_nchw(x, enc1_w, 2, 0), obs_dim)  # (8,7,7)
    W_enc2, s2 = _densify(lambda x: _conv2d_nchw(x, enc2_w, 1, 0), s1)       # (16,5,5)
    out_dim = int(np.prod(s2))
    assert out_dim == 16 * 5 * 5, out_dim

    fc1_w = init(ks[4], (hidden, out_dim + n_acts)); fc1_b = init(ks[5], (hidden,))
    fc2_w = init(ks[6], (hidden, hidden));           fc2_b = init(ks[7], (hidden,))
    fc3_w = init(ks[8], (out_dim, hidden));          fc3_b = init(ks[9], (out_dim,))

    W_dec1, s3 = _densify(lambda x: _conv_transpose2d_nchw(x, dec1_w, 1, 0), s2)  # (8,7,7)
    W_dec2, s4 = _densify(lambda x: _conv_transpose2d_nchw(x, dec2_w, 2, 0), s3)  # (C,16,16)
    W_dec3, s5 = _densify(lambda x: _conv2d_nchw(x, dec3_w, 1, 1), s4)            # (C,16,16)
    assert s5 == (C, H, W), s5

    # Compose the two unactivated decoder tail layers (ConvT stride 2 followed
    # directly by Conv 3x3 pad 1) into one affine map, in float32.
    W_dec23 = W_dec2 @ W_dec3                                       # (392, 1024)
    b_dec23 = _expand_bias(dec2_b, s4) @ W_dec3 + _expand_bias(dec3_b, s5)

    cd = compute_dtype
    fc1_wt = fc1_w.T                                   # (out_dim + n_acts, hidden)
    return dict(
        w_enc1=W_enc1.astype(cd), b_enc1=_expand_bias(enc1_b, s1),
        w_enc2=W_enc2.astype(cd), b_enc2=_expand_bias(enc2_b, s2),
        w_fc1h=fc1_wt[:out_dim].astype(cd),
        w_fc1a=fc1_wt[out_dim:].astype(cd),
        b_fc1=fc1_b.reshape(1, -1),
        w_fc2=fc2_w.T.astype(cd), b_fc2=fc2_b.reshape(1, -1),
        w_fc3=fc3_w.T.astype(cd), b_fc3=fc3_b.reshape(1, -1),
        w_dec1=W_dec1.astype(cd), b_dec1=_expand_bias(dec1_b, s3),
        w_dec23=W_dec23.astype(cd), b_dec23=b_dec23,
    )


# ----------------------------------------------------------------------------
# Plain-JAX mirror of the kernel's computation (same bf16 weights, f32 accum)
# used as a correctness reference for the Pallas kernel.
# ----------------------------------------------------------------------------
def reference_forward(params, obs, acts):
    B, C, H, W = obs.shape
    x = obs.reshape(B, -1).astype(jnp.float32)

    def dense(x, w, b, relu):
        y = jnp.dot(x.astype(w.dtype), w, preferred_element_type=jnp.float32) + b
        return jnp.maximum(y, 0.0) if relu else y

    h = dense(x, params["w_enc1"], params["b_enc1"], True)
    h = dense(h, params["w_enc2"], params["b_enc2"], True)
    z = (jnp.dot(h.astype(params["w_fc1h"].dtype), params["w_fc1h"],
                 preferred_element_type=jnp.float32)
         + jnp.dot(acts.astype(params["w_fc1a"].dtype), params["w_fc1a"],
                   preferred_element_type=jnp.float32)
         + params["b_fc1"])
    z = jnp.maximum(z, 0.0)
    z = dense(z, params["w_fc2"], params["b_fc2"], True)
    z = dense(z, params["w_fc3"], params["b_fc3"], True)
    d = dense(z, params["w_dec1"], params["b_dec1"], True)
    d = dense(d, params["w_dec23"], params["b_dec23"], False)
    return d.reshape(B, C, H, W)


if __name__ == "__main__":
    obs_dim = (4, 16, 16)
    n_acts = 4
    batch = 2

    key = jax.random.PRNGKey(0)
    k_params, k_obs, k_acts = jax.random.split(key, 3)

    params = make_params(k_params, obs_dim=obs_dim, n_acts=n_acts, hidden=64)
    obs = jax.random.normal(k_obs, (batch,) + obs_dim, dtype=jnp.float32)
    act_ids = jax.random.randint(k_acts, (batch,), 0, n_acts)
    acts = jax.nn.one_hot(act_ids, n_acts, dtype=jnp.float32)

    fwd = jax.jit(state_prediction_forward)
    out = jax.block_until_ready(fwd(params, obs, acts))

    assert out.shape == (batch,) + obs_dim, out.shape
    assert out.dtype == jnp.float32
    assert bool(jnp.all(jnp.isfinite(out)))

    ref = jax.block_until_ready(jax.jit(reference_forward)(params, obs, acts))
    err = float(jnp.max(jnp.abs(out - ref)))
    assert err < 5e-2, f"max|pallas - reference| = {err}"

    print("KERNEL_OK")
</pallas_src>

<mosaic_0001>
module attributes {stable_mosaic.version = 11 : i64} {
  func.func @_fused_forward_kernel(%arg0: memref<2x1024xf32, #tpu.memory_space<vmem>>, %arg1: memref<2x4xf32, #tpu.memory_space<vmem>>, %arg2: memref<1024x392xbf16, #tpu.memory_space<vmem>>, %arg3: memref<1x392xf32, #tpu.memory_space<vmem>>, %arg4: memref<392x400xbf16, #tpu.memory_space<vmem>>, %arg5: memref<1x400xf32, #tpu.memory_space<vmem>>, %arg6: memref<400x64xbf16, #tpu.memory_space<vmem>>, %arg7: memref<4x64xbf16, #tpu.memory_space<vmem>>, %arg8: memref<1x64xf32, #tpu.memory_space<vmem>>, %arg9: memref<64x64xbf16, #tpu.memory_space<vmem>>, %arg10: memref<1x64xf32, #tpu.memory_space<vmem>>, %arg11: memref<64x400xbf16, #tpu.memory_space<vmem>>, %arg12: memref<1x400xf32, #tpu.memory_space<vmem>>, %arg13: memref<400x392xbf16, #tpu.memory_space<vmem>>, %arg14: memref<1x392xf32, #tpu.memory_space<vmem>>, %arg15: memref<392x1024xbf16, #tpu.memory_space<vmem>>, %arg16: memref<1x1024xf32, #tpu.memory_space<vmem>>, %arg17: memref<2x1024xf32, #tpu.memory_space<vmem>>) attributes {dimension_semantics = [], scalar_prefetch = 0 : i64, scratch_operands = 0 : i64, tpu.core_type = #tpu.core_type<tc>} {
    %c0 = arith.constant 0 : index
    %c0_0 = arith.constant 0 : index
    %0 = vector.load %arg0[%c0, %c0_0] : memref<2x1024xf32, #tpu.memory_space<vmem>>, vector<2x1024xf32>
    %1 = arith.truncf %0 : vector<2x1024xf32> to vector<2x1024xbf16>
    %c0_1 = arith.constant 0 : index
    %c0_2 = arith.constant 0 : index
    %2 = vector.load %arg2[%c0_1, %c0_2] : memref<1024x392xbf16, #tpu.memory_space<vmem>>, vector<1024x392xbf16>
    %cst = arith.constant dense<0.000000e+00> : vector<2x392xf32>
    %3 = tpu.matmul %1, %2, %cst {dimension_numbers = #tpu.dot_dimension_numbers<[1], [0], [0], [1], [0, 0, 1, 1], [], []>} : vector<2x1024xbf16>, vector<1024x392xbf16>, vector<2x392xf32> -> vector<2x392xf32>
    %c0_3 = arith.constant 0 : index
    %c0_4 = arith.constant 0 : index
    %4 = vector.load %arg3[%c0_3, %c0_4] : memref<1x392xf32, #tpu.memory_space<vmem>>, vector<1x392xf32>
    %5 = vector.broadcast %4 : vector<1x392xf32> to vector<2x392xf32>
    %6 = arith.addf %3, %5 : vector<2x392xf32>
    %cst_5 = arith.constant 0.000000e+00 : f32
    %7 = vector.broadcast %cst_5 : f32 to vector<2x392xf32>
    %8 = arith.maximumf %6, %7 : vector<2x392xf32>
    %9 = arith.truncf %8 : vector<2x392xf32> to vector<2x392xbf16>
    %c0_6 = arith.constant 0 : index
    %c0_7 = arith.constant 0 : index
    %10 = vector.load %arg4[%c0_6, %c0_7] : memref<392x400xbf16, #tpu.memory_space<vmem>>, vector<392x400xbf16>
    %cst_8 = arith.constant dense<0.000000e+00> : vector<2x400xf32>
    %11 = tpu.matmul %9, %10, %cst_8 {dimension_numbers = #tpu.dot_dimension_numbers<[1], [0], [0], [1], [0, 0, 1, 1], [], []>} : vector<2x392xbf16>, vector<392x400xbf16>, vector<2x400xf32> -> vector<2x400xf32>
    %c0_9 = arith.constant 0 : index
    %c0_10 = arith.constant 0 : index
    %12 = vector.load %arg5[%c0_9, %c0_10] : memref<1x400xf32, #tpu.memory_space<vmem>>, vector<1x400xf32>
    %13 = vector.broadcast %12 : vector<1x400xf32> to vector<2x400xf32>
    %14 = arith.addf %11, %13 : vector<2x400xf32>
    %cst_11 = arith.constant 0.000000e+00 : f32
    %15 = vector.broadcast %cst_11 : f32 to vector<2x400xf32>
    %16 = arith.maximumf %14, %15 : vector<2x400xf32>
    %17 = arith.truncf %16 : vector<2x400xf32> to vector<2x400xbf16>
    %c0_12 = arith.constant 0 : index
    %c0_13 = arith.constant 0 : index
    %18 = vector.load %arg6[%c0_12, %c0_13] : memref<400x64xbf16, #tpu.memory_space<vmem>>, vector<400x64xbf16>
    %cst_14 = arith.constant dense<0.000000e+00> : vector<2x64xf32>
    %19 = tpu.matmul %17, %18, %cst_14 {dimension_numbers = #tpu.dot_dimension_numbers<[1], [0], [0], [1], [0, 0, 1, 1], [], []>} : vector<2x400xbf16>, vector<400x64xbf16>, vector<2x64xf32> -> vector<2x64xf32>
    %c0_15 = arith.constant 0 : index
    %c0_16 = arith.constant 0 : index
    %20 = vector.load %arg1[%c0_15, %c0_16] : memref<2x4xf32, #tpu.memory_space<vmem>>, vector<2x4xf32>
    %21 = arith.truncf %20 : vector<2x4xf32> to vector<2x4xbf16>
    %c0_17 = arith.constant 0 : index
    %c0_18 = arith.constant 0 : index
    %22 = vector.load %arg7[%c0_17, %c0_18] : memref<4x64xbf16, #tpu.memory_space<vmem>>, vector<4x64xbf16>
    %cst_19 = arith.constant dense<0.000000e+00> : vector<2x64xf32>
    %23 = tpu.matmul %21, %22, %cst_19 {dimension_numbers = #tpu.dot_dimension_numbers<[1], [0], [0], [1], [0, 0, 1, 1], [], []>} : vector<2x4xbf16>, vector<4x64xbf16>, vector<2x64xf32> -> vector<2x64xf32>
    %24 = arith.addf %19, %23 : vector<2x64xf32>
    %c0_20 = arith.constant 0 : index
    %c0_21 = arith.constant 0 : index
    %25 = vector.load %arg8[%c0_20, %c0_21] : memref<1x64xf32, #tpu.memory_space<vmem>>, vector<1x64xf32>
    %26 = vector.broadcast %25 : vector<1x64xf32> to vector<2x64xf32>
    %27 = arith.addf %24, %26 : vector<2x64xf32>
    %cst_22 = arith.constant 0.000000e+00 : f32
    %28 = vector.broadcast %cst_22 : f32 to vector<2x64xf32>
    %29 = arith.maximumf %27, %28 : vector<2x64xf32>
    %30 = arith.truncf %29 : vector<2x64xf32> to vector<2x64xbf16>
    %c0_23 = arith.constant 0 : index
    %c0_24 = arith.constant 0 : index
    %31 = vector.load %arg9[%c0_23, %c0_24] : memref<64x64xbf16, #tpu.memory_space<vmem>>, vector<64x64xbf16>
    %cst_25 = arith.constant dense<0.000000e+00> : vector<2x64xf32>
    %32 = tpu.matmul %30, %31, %cst_25 {dimension_numbers = #tpu.dot_dimension_numbers<[1], [0], [0], [1], [0, 0, 1, 1], [], []>} : vector<2x64xbf16>, vector<64x64xbf16>, vector<2x64xf32> -> vector<2x64xf32>
    %c0_26 = arith.constant 0 : index
    %c0_27 = arith.constant 0 : index
    %33 = vector.load %arg10[%c0_26, %c0_27] : memref<1x64xf32, #tpu.memory_space<vmem>>, vector<1x64xf32>
    %34 = vector.broadcast %33 : vector<1x64xf32> to vector<2x64xf32>
    %35 = arith.addf %32, %34 : vector<2x64xf32>
    %cst_28 = arith.constant 0.000000e+00 : f32
    %36 = vector.broadcast %cst_28 : f32 to vector<2x64xf32>
    %37 = arith.maximumf %35, %36 : vector<2x64xf32>
    %38 = arith.truncf %37 : vector<2x64xf32> to vector<2x64xbf16>
    %c0_29 = arith.constant 0 : index
    %c0_30 = arith.constant 0 : index
    %39 = vector.load %arg11[%c0_29, %c0_30] : memref<64x400xbf16, #tpu.memory_space<vmem>>, vector<64x400xbf16>
    %cst_31 = arith.constant dense<0.000000e+00> : vector<2x400xf32>
    %40 = tpu.matmul %38, %39, %cst_31 {dimension_numbers = #tpu.dot_dimension_numbers<[1], [0], [0], [1], [0, 0, 1, 1], [], []>} : vector<2x64xbf16>, vector<64x400xbf16>, vector<2x400xf32> -> vector<2x400xf32>
    %c0_32 = arith.constant 0 : index
    %c0_33 = arith.constant 0 : index
    %41 = vector.load %arg12[%c0_32, %c0_33] : memref<1x400xf32, #tpu.memory_space<vmem>>, vector<1x400xf32>
    %42 = vector.broadcast %41 : vector<1x400xf32> to vector<2x400xf32>
    %43 = arith.addf %40, %42 : vector<2x400xf32>
    %cst_34 = arith.constant 0.000000e+00 : f32
    %44 = vector.broadcast %cst_34 : f32 to vector<2x400xf32>
    %45 = arith.maximumf %43, %44 : vector<2x400xf32>
    %46 = arith.truncf %45 : vector<2x400xf32> to vector<2x400xbf16>
    %c0_35 = arith.constant 0 : index
    %c0_36 = arith.constant 0 : index
    %47 = vector.load %arg13[%c0_35, %c0_36] : memref<400x392xbf16, #tpu.memory_space<vmem>>, vector<400x392xbf16>
    %cst_37 = arith.constant dense<0.000000e+00> : vector<2x392xf32>
    %48 = tpu.matmul %46, %47, %cst_37 {dimension_numbers = #tpu.dot_dimension_numbers<[1], [0], [0], [1], [0, 0, 1, 1], [], []>} : vector<2x400xbf16>, vector<400x392xbf16>, vector<2x392xf32> -> vector<2x392xf32>
    %c0_38 = arith.constant 0 : index
    %c0_39 = arith.constant 0 : index
    %49 = vector.load %arg14[%c0_38, %c0_39] : memref<1x392xf32, #tpu.memory_space<vmem>>, vector<1x392xf32>
    %50 = vector.broadcast %49 : vector<1x392xf32> to vector<2x392xf32>
    %51 = arith.addf %48, %50 : vector<2x392xf32>
    %cst_40 = arith.constant 0.000000e+00 : f32
    %52 = vector.broadcast %cst_40 : f32 to vector<2x392xf32>
    %53 = arith.maximumf %51, %52 : vector<2x392xf32>
    %54 = arith.truncf %53 : vector<2x392xf32> to vector<2x392xbf16>
    %c0_41 = arith.constant 0 : index
    %c0_42 = arith.constant 0 : index
    %55 = vector.load %arg15[%c0_41, %c0_42] : memref<392x1024xbf16, #tpu.memory_space<vmem>>, vector<392x1024xbf16>
    %cst_43 = arith.constant dense<0.000000e+00> : vector<2x1024xf32>
    %56 = tpu.matmul %54, %55, %cst_43 {dimension_numbers = #tpu.dot_dimension_numbers<[1], [0], [0], [1], [0, 0, 1, 1], [], []>} : vector<2x392xbf16>, vector<392x1024xbf16>, vector<2x1024xf32> -> vector<2x1024xf32>
    %c0_44 = arith.constant 0 : index
    %c0_45 = arith.constant 0 : index
    %57 = vector.load %arg16[%c0_44, %c0_45] : memref<1x1024xf32, #tpu.memory_space<vmem>>, vector<1x1024xf32>
    %58 = vector.broadcast %57 : vector<1x1024xf32> to vector<2x1024xf32>
    %59 = arith.addf %56, %58 : vector<2x1024xf32>
    %c0_46 = arith.constant 0 : index
    %c0_47 = arith.constant 0 : index
    %60 = vector.load %arg17[%c0_46, %c0_47] : memref<2x1024xf32, #tpu.memory_space<vmem>>, vector<2x1024xf32>
    tpu.vector_store %arg17[%c0_46, %c0_47], %59 {strides = array<i32>} : memref<2x1024xf32, #tpu.memory_space<vmem>>, vector<2x1024xf32>,
    return
  }
}

</mosaic_0001>

<bundles_post_ra>
// kernel: state_prediction_forward.1
= control target key start
LH: loop header
LB: loop body
LE: loop exit
PB: predicated region body
PF: predicated region fallthrough
CT: control target
= control target key end

     0   :  { %vm2660_vm0 = vcmask 1043456   ;;  %vm2656_vm1 = vcmask 64512   ;;  %vm2946_vm2 = vcmask 1041408   ;;  %vm2942_vm3 = vcmask 31744   ;;  %s13820_s2 = inlined_call_operand.vmem [shape: bf16[1024,392], index: 2, kind: input, shape index: {}]   ;;  %s13821_s0 = inlined_call_operand.vmem [shape: f32[2,1024], index: 0, kind: input, shape index: {}]   ;;  %s13822_s3 = inlined_call_operand.vmem [shape: f32[1,392], index: 3, kind: input, shape index: {}]   ;;  %s13823_s4 = inlined_call_operand.vmem [shape: bf16[392,400], index: 4, kind: input, shape index: {}]   ;;  %s13824_s5 = inlined_call_operand.vmem [shape: f32[1,400], index: 5, kind: input, shape index: {}]   ;;  %s13825_s6 = inlined_call_operand.vmem [shape: bf16[400,64], index: 6, kind: input, shape index: {}]   ;;  %s13826_s7 = inlined_call_operand.vmem [shape: bf16[4,64], index: 7, kind: input, shape index: {}]   ;;  %s13827_s1 = inlined_call_operand.vmem [shape: f32[2,4], index: 1, kind: input, shape index: {}]   ;;  %s13828_s8 = inlined_call_operand.vmem [shape: f32[1,64], index: 8, kind: input, shape index: {}]   ;;  %s13829_s10 = inlined_call_operand.vmem [shape: f32[1,64], index: 10, kind: input, shape index: {}]   ;;  %s13830_s9 = inlined_call_operand.vmem [shape: bf16[64,64], index: 9, kind: input, shape index: {}]   ;;  %s13831_s11 = inlined_call_operand.vmem [shape: bf16[64,400], index: 11, kind: input, shape index: {}]   ;;  %s13832_s13 = inlined_call_operand.vmem [shape: bf16[400,392], index: 13, kind: input, shape index: {}]   ;;  %s13833_s12 = inlined_call_operand.vmem [shape: f32[1,400], index: 12, kind: input, shape index: {}]   ;;  %s13834_s15 = inlined_call_operand.vmem [shape: bf16[392,1024], index: 15, kind: input, shape index: {}]   ;;  %s13835_s14 = inlined_call_operand.vmem [shape: f32[1,392], index: 14, kind: input, shape index: {}]   ;;  %s13836_s16 = inlined_call_operand.vmem [shape: f32[1,1024], index: 16, kind: input, shape index: {}]   ;;  %s13837_s17 = inlined_call_operand.vmem [shape: f32[2,1024], index: 17, kind: output, shape index: {}]  }
   0x1   :  { %13840 = sst [smem:[#allocation2_spill]] %s13820_s2  ;;  %vm3113_vm4 = vcmask 130048   ;;  %vm3212_vm5 = vcmask 523264   ;;  %vm5881_vm6 = vcmask 1045508  }
   0x2   :  { %13841 = sst [smem:[#allocation3_spill]] %s13821_s0 }
   0x3   :  { %s13842_s26 = sld [smem:[#allocation2_spill]] }
   0x4   :  { %s13843_s22 = sld [smem:[#allocation3_spill]] }
   0x9   :  { %v6009_v0 = vld [vmem:[%s13842_s26 + $0xe0] sm:$0xf]  ;;  %v8704_v1 = vld [vmem:[%s13842_s26 + $0xec] sm:$0xf0] }
   0xa   :  { %v6137_v2 = vld [vmem:[%s13842_s26 + $0x1e0] sm:$0xf]  ;;  %v6010_v3 = vor.u32 %v8704_v1, %v6009_v0  ;;  %v8736_v4 = vld [vmem:[%s13842_s26 + $0x1ec] sm:$0xf0] }
   0xb   :  { %v6265_v5 = vld [vmem:[%s13842_s26 + $0x2e0] sm:$0xf]  ;;  %v8768_v6 = vld [vmem:[%s13842_s26 + $0x2ec] sm:$0xf0]  ;;  %v6138_v7 = vor.u32 %v8736_v4, %v6137_v2 }
   0xc   :  { %v6266_v8 = vor.u32 %v8768_v6, %v6265_v5  ;;  %v6393_v9 = vld [vmem:[%s13842_s26 + $0x3e0] sm:$0xf]  ;;  %v8800_v10 = vld [vmem:[%s13842_s26 + $0x3ec] sm:$0xf0]  ;;  %1634 = vmatpush.bf16.msra.mxu0 %v6010_v3 }
   0xd   :  { %v5993_v11 = vld [vmem:[%s13842_s26 + $0xc0] sm:$0xf]  ;;  %v6394_v12 = vor.u32 %v8800_v10, %v6393_v9  ;;  %v8700_v13 = vld [vmem:[%s13842_s26 + $0xcc] sm:$0xf0]  ;;  %1647 = vmatpush.bf16.msra.mxu1 %v6138_v7 }
   0xe   :  { %v6121_v14 = vld [vmem:[%s13842_s26 + $0x1c0] sm:$0xf]  ;;  %v8732_v15 = vld [vmem:[%s13842_s26 + $0x1cc] sm:$0xf0]  ;;  %1660 = vmatpush.bf16.msra.mxu2 %v6266_v8  ;;  %v5994_v16 = vor.u32 %v8700_v13, %v5993_v11 }
   0xf   :  { %v6122_v17 = vor.u32 %v8732_v15, %v6121_v14  ;;  %v6249_v18 = vld [vmem:[%s13842_s26 + $0x2c0] sm:$0xf]  ;;  %v8764_v19 = vld [vmem:[%s13842_s26 + $0x2cc] sm:$0xf0]  ;;  %1673 = vmatpush.bf16.msra.mxu3 %v6394_v12 }
  0x10   :  { %v6377_v20 = vld [vmem:[%s13842_s26 + $0x3c0] sm:$0xf]  ;;  %v6250_v21 = vor.u32 %v8764_v19, %v6249_v18  ;;  %v8796_v22 = vld [vmem:[%s13842_s26 + $0x3cc] sm:$0xf0]  ;;  %1635 = vmatpush.bf16.msra.mxu0 %v5994_v16 }
  0x11   :  { %v5977_v23 = vld [vmem:[%s13842_s26 + $0xa0] sm:$0xf]  ;;  %v8696_v24 = vld [vmem:[%s13842_s26 + $0xac] sm:$0xf0]  ;;  %v6378_v25 = vor.u32 %v8796_v22, %v6377_v20  ;;  %1648 = vmatpush.bf16.msra.mxu1 %v6122_v17 }
  0x12   :  { %v6105_v26 = vld [vmem:[%s13842_s26 + $0x1a0] sm:$0xf]  ;;  %v8728_v27 = vld [vmem:[%s13842_s26 + $0x1ac] sm:$0xf0]  ;;  %v5978_v29 = vor.u32 %v8696_v24, %v5977_v23  ;;  %1661 = vmatpush.bf16.msra.mxu2 %v6250_v21 }
  0x13   :  { %v6233_v28 = vld [vmem:[%s13842_s26 + $0x2a0] sm:$0xf]  ;;  %v8760_v30 = vld [vmem:[%s13842_s26 + $0x2ac] sm:$0xf0]  ;;  %v6106_v33 = vor.u32 %v8728_v27, %v6105_v26  ;;  %1674 = vmatpush.bf16.msra.mxu3 %v6378_v25 }
  0x14   :  { %v6361_v31 = vld [vmem:[%s13842_s26 + $0x3a0] sm:$0xf]  ;;  %v8792_v32 = vld [vmem:[%s13842_s26 + $0x3ac] sm:$0xf0]  ;;  %v6234_v34 = vor.u32 %v8760_v30, %v6233_v28  ;;  %1636 = vmatpush.bf16.msra.mxu0 %v5978_v29 }
  0x15   :  { %v5961_v35 = vld [vmem:[%s13842_s26 + $0x80] sm:$0xf]  ;;  %v8692_v36 = vld [vmem:[%s13842_s26 + $0x8c] sm:$0xf0]  ;;  %v6362_v38 = vor.u32 %v8792_v32, %v6361_v31  ;;  %1649 = vmatpush.bf16.msra.mxu1 %v6106_v33 }
  0x16   :  { %v6089_v37 = vld [vmem:[%s13842_s26 + $0x180] sm:$0xf]  ;;  %v8724_v39 = vld [vmem:[%s13842_s26 + $0x18c] sm:$0xf0]  ;;  %v5962_v44 = vor.u32 %v8692_v36, %v5961_v35  ;;  %1662 = vmatpush.bf16.msra.mxu2 %v6234_v34 }
  0x17   :  { %v6217_v40 = vld [vmem:[%s13842_s26 + $0x280] sm:$0xf]  ;;  %v8756_v41 = vld [vmem:[%s13842_s26 + $0x28c] sm:$0xf0]  ;;  %v6090_v45 = vor.u32 %v8724_v39, %v6089_v37  ;;  %1675 = vmatpush.bf16.msra.mxu3 %v6362_v38 }
  0x18   :  { %v6345_v42 = vld [vmem:[%s13842_s26 + $0x380] sm:$0xf]  ;;  %v8788_v43 = vld [vmem:[%s13842_s26 + $0x38c] sm:$0xf0]  ;;  %v6218_v46 = vor.u32 %v8756_v41, %v6217_v40  ;;  %1637 = vmatpush.bf16.msra.mxu0 %v5962_v44 }
  0x19   :  { %v5945_v47 = vld [vmem:[%s13842_s26 + $0x60] sm:$0xf]  ;;  %v8688_v48 = vld [vmem:[%s13842_s26 + $0x6c] sm:$0xf0]  ;;  %v6346_v50 = vor.u32 %v8788_v43, %v6345_v42  ;;  %1650 = vmatpush.bf16.msra.mxu1 %v6090_v45 }
  0x1a   :  { %v6073_v49 = vld [vmem:[%s13842_s26 + $0x160] sm:$0xf]  ;;  %v8720_v51 = vld [vmem:[%s13842_s26 + $0x16c] sm:$0xf0]  ;;  %v5946_v56 = vor.u32 %v8688_v48, %v5945_v47  ;;  %1663 = vmatpush.bf16.msra.mxu2 %v6218_v46 }
  0x1b   :  { %v6201_v52 = vld [vmem:[%s13842_s26 + $0x260] sm:$0xf]  ;;  %v8752_v53 = vld [vmem:[%s13842_s26 + $0x26c] sm:$0xf0]  ;;  %v6074_v57 = vor.u32 %v8720_v51, %v6073_v49  ;;  %1676 = vmatpush.bf16.msra.mxu3 %v6346_v50 }
  0x1c   :  { %v6329_v54 = vld [vmem:[%s13842_s26 + $0x360] sm:$0xf]  ;;  %v8784_v55 = vld [vmem:[%s13842_s26 + $0x36c] sm:$0xf0]  ;;  %v6202_v58 = vor.u32 %v8752_v53, %v6201_v52  ;;  %1638 = vmatpush.bf16.msra.mxu0 %v5946_v56 }
  0x1d   :  { %v5929_v59 = vld [vmem:[%s13842_s26 + $0x40] sm:$0xf]  ;;  %v8684_v60 = vld [vmem:[%s13842_s26 + $0x4c] sm:$0xf0]  ;;  %v6330_v62 = vor.u32 %v8784_v55, %v6329_v54  ;;  %1651 = vmatpush.bf16.msra.mxu1 %v6074_v57 }
  0x1e   :  { %v6057_v61 = vld [vmem:[%s13842_s26 + $0x140] sm:$0xf]  ;;  %v8716_v63 = vld [vmem:[%s13842_s26 + $0x14c] sm:$0xf0]  ;;  %v5930_v4 = vor.u32 %v8684_v60, %v5929_v59  ;;  %1664 = vmatpush.bf16.msra.mxu2 %v6202_v58 }
  0x1f   :  { %v6185_v0 = vld [vmem:[%s13842_s26 + $0x240] sm:$0xf]  ;;  %v8748_v1 = vld [vmem:[%s13842_s26 + $0x24c] sm:$0xf0]  ;;  %v6058_v5 = vor.u32 %v8716_v63, %v6057_v61  ;;  %1677 = vmatpush.bf16.msra.mxu3 %v6330_v62 }
  0x20   :  { %v6313_v2 = vld [vmem:[%s13842_s26 + $0x340] sm:$0xf]  ;;  %v8780_v3 = vld [vmem:[%s13842_s26 + $0x34c] sm:$0xf0]  ;;  %v6186_v6 = vor.u32 %v8748_v1, %v6185_v0  ;;  %1639 = vmatpush.bf16.msra.mxu0 %v5930_v4 }
  0x21   :  { %v5913_v7 = vld [vmem:[%s13842_s26 + $0x20] sm:$0xf]  ;;  %v8680_v8 = vld [vmem:[%s13842_s26 + $0x2c] sm:$0xf0]  ;;  %v6314_v10 = vor.u32 %v8780_v3, %v6313_v2  ;;  %1652 = vmatpush.bf16.msra.mxu1 %v6058_v5 }
  0x22   :  { %v6041_v9 = vld [vmem:[%s13842_s26 + $0x120] sm:$0xf]  ;;  %v8712_v11 = vld [vmem:[%s13842_s26 + $0x12c] sm:$0xf0]  ;;  %v5914_v16 = vor.u32 %v8680_v8, %v5913_v7  ;;  %1665 = vmatpush.bf16.msra.mxu2 %v6186_v6 }
  0x23   :  { %v6169_v12 = vld [vmem:[%s13842_s26 + $0x220] sm:$0xf]  ;;  %v8744_v13 = vld [vmem:[%s13842_s26 + $0x22c] sm:$0xf0]  ;;  %v6042_v19 = vor.u32 %v8712_v11, %v6041_v9  ;;  %1678 = vmatpush.bf16.msra.mxu3 %v6314_v10 }
  0x24   :  { %v6297_v14 = vld [vmem:[%s13842_s26 + $0x320] sm:$0xf]  ;;  %v8776_v15 = vld [vmem:[%s13842_s26 + $0x32c] sm:$0xf0]  ;;  %v6170_v20 = vor.u32 %v8744_v13, %v6169_v12  ;;  %1640 = vmatpush.bf16.msra.mxu0 %v5914_v16 }
  0x25   :  { %v5897_v17 = vld [vmem:[%s13842_s26] sm:$0xf]  ;;  %v8676_v18 = vld [vmem:[%s13842_s26 + $0xc] sm:$0xf0]  ;;  %v6298_v24 = vor.u32 %v8776_v15, %v6297_v14  ;;  %1653 = vmatpush.bf16.msra.mxu1 %v6042_v19 }
  0x26   :  { %v6025_v21 = vld [vmem:[%s13842_s26 + $0x100] sm:$0xf]  ;;  %v8708_v22 = vld [vmem:[%s13842_s26 + $0x10c] sm:$0xf0]  ;;  %v5898_v31 = vor.u32 %v8676_v18, %v5897_v17  ;;  %1666 = vmatpush.bf16.msra.mxu2 %v6170_v20 }
  0x27   :  { %v6153_v23 = vld [vmem:[%s13842_s26 + $0x200] sm:$0xf]  ;;  %v8740_v25 = vld [vmem:[%s13842_s26 + $0x20c] sm:$0xf0]  ;;  %v6026_v35 = vor.u32 %v8708_v22, %v6025_v21  ;;  %1679 = vmatpush.bf16.msra.mxu3 %v6298_v24 }
  0x28   :  { %v6281_v26 = vld [vmem:[%s13842_s26 + $0x300] sm:$0xf]  ;;  %v8772_v27 = vld [vmem:[%s13842_s26 + $0x30c] sm:$0xf0]  ;;  %v6154_v36 = vor.u32 %v8740_v25, %v6153_v23  ;;  %1641 = vmatpush.bf16.msra.mxu0 %v5898_v31 }
  0x29   :  { %v6521_v28 = vld [vmem:[%s13842_s26 + $0x4e0] sm:$0xf]  ;;  %v8832_v29 = vld [vmem:[%s13842_s26 + $0x4ec] sm:$0xf0]  ;;  %v6282_v39 = vor.u32 %v8772_v27, %v6281_v26  ;;  %1654 = vmatpush.bf16.msra.mxu1 %v6026_v35 }
  0x2a   :  { %v6649_v30 = vld [vmem:[%s13842_s26 + $0x5e0] sm:$0xf]  ;;  %v8864_v32 = vld [vmem:[%s13842_s26 + $0x5ec] sm:$0xf0]  ;;  %v6522_v40 = vor.u32 %v8832_v29, %v6521_v28  ;;  %1667 = vmatpush.bf16.msra.mxu2 %v6154_v36 }
  0x2b   :  { %v6777_v33 = vld [vmem:[%s13842_s26 + $0x6e0] sm:$0xf]  ;;  %v8896_v34 = vld [vmem:[%s13842_s26 + $0x6ec] sm:$0xf0]  ;;  %v6650_v41 = vor.u32 %v8864_v32, %v6649_v30  ;;  %1680 = vmatpush.bf16.msra.mxu3 %v6282_v39 }
  0x2c   :  { %v6905_v37 = vld [vmem:[%s13842_s26 + $0x7e0] sm:$0xf]  ;;  %v8928_v38 = vld [vmem:[%s13842_s26 + $0x7ec] sm:$0xf0]  ;;  %v6778_v42 = vor.u32 %v8896_v34, %v6777_v33  ;;  %1686 = vmatpush.bf16.msrb.mxu0 %v6522_v40 }
  0x2d   :  { %v6505_v43 = vld [vmem:[%s13842_s26 + $0x4c0] sm:$0xf]  ;;  %v8828_v44 = vld [vmem:[%s13842_s26 + $0x4cc] sm:$0xf0]  ;;  %v6906_v46 = vor.u32 %v8928_v38, %v6905_v37  ;;  %1699 = vmatpush.bf16.msrb.mxu1 %v6650_v41 }
  0x2e   :  { %v6633_v45 = vld [vmem:[%s13842_s26 + $0x5c0] sm:$0xf]  ;;  %v8860_v47 = vld [vmem:[%s13842_s26 + $0x5cc] sm:$0xf0]  ;;  %v6506_v52 = vor.u32 %v8828_v44, %v6505_v43  ;;  %1712 = vmatpush.bf16.msrb.mxu2 %v6778_v42 }
  0x2f   :  { %v6761_v48 = vld [vmem:[%s13842_s26 + $0x6c0] sm:$0xf]  ;;  %v8892_v49 = vld [vmem:[%s13842_s26 + $0x6cc] sm:$0xf0]  ;;  %v6634_v53 = vor.u32 %v8860_v47, %v6633_v45  ;;  %1725 = vmatpush.bf16.msrb.mxu3 %v6906_v46 }
  0x30   :  { %v6889_v50 = vld [vmem:[%s13842_s26 + $0x7c0] sm:$0xf]  ;;  %v8924_v51 = vld [vmem:[%s13842_s26 + $0x7cc] sm:$0xf0]  ;;  %v6762_v54 = vor.u32 %v8892_v49, %v6761_v48  ;;  %1687 = vmatpush.bf16.msrb.mxu0 %v6506_v52  ;;  %v58_v52 = vld [vmem:[%s13843_s22 + $0x8] sm:$0xff] }
  0x31   :  { %v6489_v55 = vld [vmem:[%s13842_s26 + $0x4a0] sm:$0xf]  ;;  %v8824_v56 = vld [vmem:[%s13842_s26 + $0x4ac] sm:$0xf0]  ;;  %v6890_v58 = vor.u32 %v8924_v51, %v6889_v50  ;;  %1700 = vmatpush.bf16.msrb.mxu1 %v6634_v53  ;;  %63 = vst [vmem:[#allocation1 + $0x20] ss:$4 sm:$0xff] %v58_v52 }
  0x32   :  { %v6617_v57 = vld [vmem:[%s13842_s26 + $0x5a0] sm:$0xf]  ;;  %v8856_v59 = vld [vmem:[%s13842_s26 + $0x5ac] sm:$0xf0]  ;;  %v6490_v0 = vor.u32 %v8824_v56, %v6489_v55  ;;  %1713 = vmatpush.bf16.msrb.mxu2 %v6762_v54  ;;  %v8790_v52 = vld [vmem:[%s13842_s26 + $0x3a4] sm:$0xf] }
  0x33   :  { %v6745_v60 = vld [vmem:[%s13842_s26 + $0x6a0] sm:$0xf]  ;;  %v8888_v61 = vld [vmem:[%s13842_s26 + $0x6ac] sm:$0xf0]  ;;  %v6618_v3 = vor.u32 %v8856_v59, %v6617_v57  ;;  %1726 = vmatpush.bf16.msrb.mxu3 %v6890_v58 }
  0x34   :  { %v6873_v62 = vld [vmem:[%s13842_s26 + $0x7a0] sm:$0xf]  ;;  %v8920_v63 = vld [vmem:[%s13842_s26 + $0x7ac] sm:$0xf0]  ;;  %v6746_v4 = vor.u32 %v8888_v61, %v6745_v60  ;;  %1688 = vmatpush.bf16.msrb.mxu0 %v6490_v0 }
  0x35   :  { %v6473_v1 = vld [vmem:[%s13842_s26 + $0x480] sm:$0xf]  ;;  %v8820_v5 = vld [vmem:[%s13842_s26 + $0x48c] sm:$0xf0]  ;;  %v6874_v7 = vor.u32 %v8920_v63, %v6873_v62  ;;  %1701 = vmatpush.bf16.msrb.mxu1 %v6618_v3 }
  0x36   :  { %v57_v2 = vld [vmem:[%s13843_s22] sm:$0xff]  ;;  %v8852_v8 = vld [vmem:[%s13842_s26 + $0x58c] sm:$0xf0]  ;;  %v6474_v13 = vor.u32 %v8820_v5, %v6473_v1  ;;  %1714 = vmatpush.bf16.msrb.mxu2 %v6746_v4 }
  0x37   :  { %v6601_v6 = vld [vmem:[%s13842_s26 + $0x580] sm:$0xf]  ;;  %61 = vst [vmem:[#allocation1] ss:$4 sm:$0xff] %v57_v2  ;;  %v8884_v10 = vld [vmem:[%s13842_s26 + $0x68c] sm:$0xf0]  ;;  %1727 = vmatpush.bf16.msrb.mxu3 %v6874_v7 }
  0x38   :  { %v6729_v9 = vld [vmem:[%s13842_s26 + $0x680] sm:$0xf]  ;;  %v8916_v12 = vld [vmem:[%s13842_s26 + $0x78c] sm:$0xf0]  ;;  %v6602_v15 = vor.u32 %v8852_v8, %v6601_v6  ;;  %1689 = vmatpush.bf16.msrb.mxu0 %v6474_v13  ;;  %v8702_v6 = vld [vmem:[%s13842_s26 + $0xe4] sm:$0xf] }
  0x39   :  { %v6857_v11 = vld [vmem:[%s13842_s26 + $0x780] sm:$0xf]  ;;  %v6730_v16 = vor.u32 %v8884_v10, %v6729_v9  ;;  %v8816_v17 = vld [vmem:[%s13842_s26 + $0x46c] sm:$0xf0]  ;;  %v6011_v7 = vld [vmem:[%s13842_s26 + $0xf0] sm:$0xf0] }
  0x3a   :  { %v6457_v14 = vld [vmem:[%s13842_s26 + $0x460] sm:$0xf]  ;;  %v8848_v19 = vld [vmem:[%s13842_s26 + $0x56c] sm:$0xf0]  ;;  %v6858_v20 = vor.u32 %v8916_v12, %v6857_v11  ;;  %1702 = vmatpush.bf16.msrb.mxu1 %v6602_v15  ;;  %v8734_v8 = vld [vmem:[%s13842_s26 + $0x1e4] sm:$0xf] }
  0x3b   :  { %v6585_v18 = vld [vmem:[%s13842_s26 + $0x560] sm:$0xf]  ;;  %v8880_v22 = vld [vmem:[%s13842_s26 + $0x66c] sm:$0xf0]  ;;  %v6458_v27 = vor.u32 %v8816_v17, %v6457_v14  ;;  %1715 = vmatpush.bf16.msrb.mxu2 %v6730_v16  ;;  %v6139_v9 = vld [vmem:[%s13842_s26 + $0x1f0] sm:$0xf0] }
  0x3c   :  { %v6713_v21 = vld [vmem:[%s13842_s26 + $0x660] sm:$0xf]  ;;  %v8912_v24 = vld [vmem:[%s13842_s26 + $0x76c] sm:$0xf0]  ;;  %v6586_v28 = vor.u32 %v8848_v19, %v6585_v18  ;;  %1728 = vmatpush.bf16.msrb.mxu3 %v6858_v20  ;;  %v8766_v10 = vld [vmem:[%s13842_s26 + $0x2e4] sm:$0xf] }
  0x3d   :  { %v6841_v23 = vld [vmem:[%s13842_s26 + $0x760] sm:$0xf]  ;;  %v8812_v26 = vld [vmem:[%s13842_s26 + $0x44c] sm:$0xf0]  ;;  %v6714_v32 = vor.u32 %v8880_v22, %v6713_v21  ;;  %1690 = vmatpush.bf16.msrb.mxu0 %v6458_v27  ;;  %v6267_v12 = vld [vmem:[%s13842_s26 + $0x2f0] sm:$0xf0]  ;;  %v6014_v21 = vor.u32 %v8702_v6, %v6011_v7 }
  0x3e   :  { %v6441_v25 = vld [vmem:[%s13842_s26 + $0x440] sm:$0xf]  ;;  %v66_v30 = vld.sshfl [vmem:[#allocation1 + $0x10] sm:$0xff pattern:$0x73625140]  ;;  %v6842_v37 = vor.u32 %v8912_v24, %v6841_v23  ;;  %1703 = vmatpush.bf16.msrb.mxu1 %v6586_v28  ;;  %v6142_v24 = vor.u32 %v8734_v8, %v6139_v9 }
  0x3f   :  { %v6569_v29 = vld [vmem:[%s13842_s26 + $0x540] sm:$0xf]  ;;  %v9780_v33 = vpack.c.bf16 %v66_v30, %v66_v30  ;;  %v67_v35 = vld.sshfl [vmem:[#allocation1 + $0x18] sm:$0xff pattern:$0x73625140]  ;;  %v6442_v45 = vor.u32 %v8812_v26, %v6441_v25  ;;  %1716 = vmatpush.bf16.msrb.mxu2 %v6714_v32  ;;  %v6270_v25 = vor.u32 %v8766_v10, %v6267_v12 }
  0x40   :  { %v64_v31 = vld.sshfl [vmem:[#allocation1] sm:$0xff pattern:$0x73625140]  ;;  %v65_v36 = vld.sshfl [vmem:[#allocation1 + $0x8] sm:$0xff pattern:$0x73625140]  ;;  %v9793_v41 = vpack.c.bf16 %v67_v35, %v67_v35  ;;  %1729 = vmatpush.bf16.msrb.mxu3 %v6842_v37 }
  0x41   :  { %v9782_v34 = vpack.c.bf16 %v64_v31, %v64_v31  ;;  %v8844_v38 = vld [vmem:[%s13842_s26 + $0x54c] sm:$0xf0]  ;;  %v6697_v39 = vld [vmem:[%s13842_s26 + $0x640] sm:$0xf]  ;;  %v9795_v42 = vpack.c.bf16 %v65_v36, %v65_v36  ;;  %1668 = vmatmul.bf16.vlgmr.msra.gmra.mxu2 %v9780_v33  ;;  %1691 = vmatpush.bf16.msrb.mxu0 %v6442_v45  ;;  %v8798_v13 = vld [vmem:[%s13842_s26 + $0x3e4] sm:$0xf] }
  0x42   :  { %v8876_v40 = vld [vmem:[%s13842_s26 + $0x64c] sm:$0xf0]  ;;  %v6825_v43 = vld [vmem:[%s13842_s26 + $0x740] sm:$0xf]  ;;  %1681 = vmatmul.bf16.vlgmr.msra.gmra.mxu3 %v9793_v41  ;;  %v6570_v48 = vor.u32 %v8844_v38, %v6569_v29  ;;  %v6395_v14 = vld [vmem:[%s13842_s26 + $0x3f0] sm:$0xf0] }
  0x43   :  { %v8908_v44 = vld [vmem:[%s13842_s26 + $0x74c] sm:$0xf0]  ;;  %1642 = vmatmul.bf16.vlgmr.msra.gmra.mxu0 %v9782_v34  ;;  %v6425_v46 = vld [vmem:[%s13842_s26 + $0x420] sm:$0xf]  ;;  %v6698_v49 = vor.u32 %v8876_v40, %v6697_v39  ;;  %1655 = vmatmul.bf16.vlgmr.msra.gmra.mxu1 %v9795_v42  ;;  %v8698_v17 = vld [vmem:[%s13842_s26 + $0xc4] sm:$0xf]  ;;  %v6398_v28 = vor.u32 %v8798_v13, %v6395_v14 }
  0x44   :  { %v8808_v47 = vld [vmem:[%s13842_s26 + $0x42c] sm:$0xf0]  ;;  %v6553_v50 = vld [vmem:[%s13842_s26 + $0x520] sm:$0xf]  ;;  %v6826_v53 = vor.u32 %v8908_v44, %v6825_v43  ;;  %1704 = vmatpush.bf16.msrb.mxu1 %v6570_v48  ;;  %v5995_v18 = vld [vmem:[%s13842_s26 + $0xd0] sm:$0xf0] }
  0x45   :  { %v8840_v51 = vld [vmem:[%s13842_s26 + $0x52c] sm:$0xf0]  ;;  %v6681_v54 = vld [vmem:[%s13842_s26 + $0x620] sm:$0xf]  ;;  %v6426_v59 = vor.u32 %v8808_v47, %v6425_v46  ;;  %1717 = vmatpush.bf16.msrb.mxu2 %v6698_v49  ;;  %v8730_v26 = vld [vmem:[%s13842_s26 + $0x1c4] sm:$0xf]  ;;  %v5998_v39 = vor.u32 %v8698_v17, %v5995_v18 }
  0x46   :  { %v8872_v55 = vld [vmem:[%s13842_s26 + $0x62c] sm:$0xf0]  ;;  %v6809_v56 = vld [vmem:[%s13842_s26 + $0x720] sm:$0xf]  ;;  %v6554_v63 = vor.u32 %v8840_v51, %v6553_v50  ;;  %1730 = vmatpush.bf16.msrb.mxu3 %v6826_v53  ;;  %v6123_v29 = vld [vmem:[%s13842_s26 + $0x1d0] sm:$0xf0] }
  0x47   :  { %v8904_v57 = vld [vmem:[%s13842_s26 + $0x72c] sm:$0xf0]  ;;  %v6409_v58 = vld [vmem:[%s13842_s26 + $0x400] sm:$0xf]  ;;  %v6682_v0 = vor.u32 %v8872_v55, %v6681_v54  ;;  %1692 = vmatpush.bf16.msrb.mxu0 %v6426_v59  ;;  %v8762_v30 = vld [vmem:[%s13842_s26 + $0x2c4] sm:$0xf]  ;;  %v6126_v43 = vor.u32 %v8730_v26, %v6123_v29 }
  0x48   :  { %v8804_v60 = vld [vmem:[%s13842_s26 + $0x40c] sm:$0xf0]  ;;  %v6537_v61 = vld [vmem:[%s13842_s26 + $0x500] sm:$0xf]  ;;  %v6810_v4 = vor.u32 %v8904_v57, %v6809_v56  ;;  %1705 = vmatpush.bf16.msrb.mxu1 %v6554_v63  ;;  %v6251_v31 = vld [vmem:[%s13842_s26 + $0x2d0] sm:$0xf0] }
  0x49   :  { %v8836_v62 = vld [vmem:[%s13842_s26 + $0x50c] sm:$0xf0]  ;;  %v6665_v1 = vld [vmem:[%s13842_s26 + $0x600] sm:$0xf]  ;;  %v6410_v11 = vor.u32 %v8804_v60, %v6409_v58  ;;  %1718 = vmatpush.bf16.msrb.mxu2 %v6682_v0  ;;  %v8794_v35 = vld [vmem:[%s13842_s26 + $0x3c4] sm:$0xf]  ;;  %v6254_v44 = vor.u32 %v8762_v30, %v6251_v31 }
  0x4a   :  { %v8868_v2 = vld [vmem:[%s13842_s26 + $0x60c] sm:$0xf0]  ;;  %v6793_v3 = vld [vmem:[%s13842_s26 + $0x700] sm:$0xf]  ;;  %v6538_v15 = vor.u32 %v8836_v62, %v6537_v61  ;;  %1731 = vmatpush.bf16.msrb.mxu3 %v6810_v4  ;;  %v6379_v36 = vld [vmem:[%s13842_s26 + $0x3d0] sm:$0xf0] }
  0x4b   :  { %v8900_v5 = vld [vmem:[%s13842_s26 + $0x70c] sm:$0xf0]  ;;  %v6666_v16 = vor.u32 %v8868_v2, %v6665_v1  ;;  %v68_v22 = vld.sshfl [vmem:[#allocation1 + $0x20] sm:$0xff pattern:$0x73625140]  ;;  %1693 = vmatpush.bf16.msrb.mxu0 %v6410_v11  ;;  %v6382_v48 = vor.u32 %v8794_v35, %v6379_v36 }
  0x4c   :  { %v70_v19 = vld.sshfl [vmem:[#allocation1 + $0x30] sm:$0xff pattern:$0x73625140]  ;;  %v6794_v20 = vor.u32 %v8900_v5, %v6793_v3  ;;  %v71_v23 = vld.sshfl [vmem:[#allocation1 + $0x38] sm:$0xff pattern:$0x73625140]  ;;  %1706 = vmatpush.bf16.msrb.mxu1 %v6538_v15  ;;  %v9908_v37 = vpack.c.bf16 %v68_v22, %v68_v22 }
  0x4d   :  { %v69_v27 = vld.sshfl [vmem:[#allocation1 + $0x28] sm:$0xff pattern:$0x73625140]  ;;  %v9900_v32 = vpack.c.bf16 %v70_v19, %v70_v19  ;;  %1719 = vmatpush.bf16.msrb.mxu2 %v6666_v16  ;;  %v9910_v38 = vpack.c.bf16 %v71_v23, %v71_v23  ;;  %v8694_v45 = vld [vmem:[%s13842_s26 + $0xa4] sm:$0xf] }
  0x4e   :  { %1732 = vmatpush.bf16.msrb.mxu3 %v6794_v20  ;;  %v9912_v40 = vpack.c.bf16 %v69_v27, %v69_v27  ;;  %v5979_v46 = vld [vmem:[%s13842_s26 + $0xb0] sm:$0xf0]  ;;  %v8726_v47 = vld [vmem:[%s13842_s26 + $0x1a4] sm:$0xf] }
  0x4f   :  { %1738 = vmatpush.bf16.msra.mxu0 %v6014_v21  ;;  %v6107_v49 = vld [vmem:[%s13842_s26 + $0x1b0] sm:$0xf0]  ;;  %v8758_v50 = vld [vmem:[%s13842_s26 + $0x2a4] sm:$0xf]  ;;  %v5982_v54 = vor.u32 %v8694_v45, %v5979_v46 }
  0x50   :  { %1751 = vmatpush.bf16.msra.mxu1 %v6142_v24  ;;  %v6235_v51 = vld [vmem:[%s13842_s26 + $0x2b0] sm:$0xf0]  ;;  %v6110_v55 = vor.u32 %v8726_v47, %v6107_v49  ;;  %v8690_v57 = vld [vmem:[%s13842_s26 + $0x84] sm:$0xf] }
  0x51   :  { %1764 = vmatpush.bf16.msra.mxu2 %v6270_v25  ;;  %v6363_v53 = vld [vmem:[%s13842_s26 + $0x3b0] sm:$0xf0]  ;;  %v6238_v56 = vor.u32 %v8758_v50, %v6235_v51  ;;  %v8722_v59 = vld [vmem:[%s13842_s26 + $0x184] sm:$0xf] }
  0x52   :  { %1777 = vmatpush.bf16.msra.mxu3 %v6398_v28  ;;  %1720 = vmatmul.bf16.vlgmr.msrb.gmra.mxu2 %v9900_v32  ;;  %v5963_v58 = vld [vmem:[%s13842_s26 + $0x90] sm:$0xf0]  ;;  %v6366_v60 = vor.u32 %v8790_v52, %v6363_v53  ;;  %v8754_v62 = vld [vmem:[%s13842_s26 + $0x284] sm:$0xf] }
  0x53   :  { %1694 = vmatmul.bf16.vlgmr.msrb.gmra.mxu0 %v9908_v37  ;;  %1733 = vmatmul.bf16.vlgmr.msrb.gmra.mxu3 %v9910_v38  ;;  %v6091_v61 = vld [vmem:[%s13842_s26 + $0x190] sm:$0xf0]  ;;  %v8786_v0 = vld [vmem:[%s13842_s26 + $0x384] sm:$0xf]  ;;  %v5966_v2 = vor.u32 %v8690_v57, %v5963_v58 }
  0x54   :  { %1739 = vmatpush.bf16.msra.mxu0 %v5998_v39  ;;  %1707 = vmatmul.bf16.vlgmr.msrb.gmra.mxu1 %v9912_v40  ;;  %v6219_v63 = vld [vmem:[%s13842_s26 + $0x290] sm:$0xf0]  ;;  %v6094_v3 = vor.u32 %v8722_v59, %v6091_v61  ;;  %v8686_v5 = vld [vmem:[%s13842_s26 + $0x64] sm:$0xf] }
  0x55   :  { %1752 = vmatpush.bf16.msra.mxu1 %v6126_v43  ;;  %1765 = vmatpush.bf16.msra.mxu2 %v6254_v44  ;;  %v6347_v1 = vld [vmem:[%s13842_s26 + $0x390] sm:$0xf0]  ;;  %v6222_v4 = vor.u32 %v8754_v62, %v6219_v63  ;;  %v8718_v7 = vld [vmem:[%s13842_s26 + $0x164] sm:$0xf] }
  0x56   :  { %1778 = vmatpush.bf16.msra.mxu3 %v6382_v48  ;;  %v5947_v6 = vld [vmem:[%s13842_s26 + $0x70] sm:$0xf0]  ;;  %v6350_v8 = vor.u32 %v8786_v0, %v6347_v1  ;;  %v8750_v10 = vld [vmem:[%s13842_s26 + $0x264] sm:$0xf] }
  0x57   :  { %v6075_v9 = vld [vmem:[%s13842_s26 + $0x170] sm:$0xf0]  ;;  %v8782_v12 = vld [vmem:[%s13842_s26 + $0x364] sm:$0xf]  ;;  %v5950_v14 = vor.u32 %v8686_v5, %v5947_v6 }
  0x58   :  { %1740 = vmatpush.bf16.msra.mxu0 %v5982_v54  ;;  %v6203_v11 = vld [vmem:[%s13842_s26 + $0x270] sm:$0xf0]  ;;  %v6078_v15 = vor.u32 %v8718_v7, %v6075_v9  ;;  %v8682_v17 = vld [vmem:[%s13842_s26 + $0x44] sm:$0xf] }
  0x59   :  { %1753 = vmatpush.bf16.msra.mxu1 %v6110_v55  ;;  %1766 = vmatpush.bf16.msra.mxu2 %v6238_v56  ;;  %v6331_v13 = vld [vmem:[%s13842_s26 + $0x370] sm:$0xf0]  ;;  %v6206_v16 = vor.u32 %v8750_v10, %v6203_v11  ;;  %v8714_v19 = vld [vmem:[%s13842_s26 + $0x144] sm:$0xf] }
  0x5a   :  { %1779 = vmatpush.bf16.msra.mxu3 %v6366_v60  ;;  %v5931_v18 = vld [vmem:[%s13842_s26 + $0x50] sm:$0xf0]  ;;  %v6334_v20 = vor.u32 %v8782_v12, %v6331_v13  ;;  %v8746_v22 = vld [vmem:[%s13842_s26 + $0x244] sm:$0xf] }
  0x5b   :  { %v6059_v21 = vld [vmem:[%s13842_s26 + $0x150] sm:$0xf0]  ;;  %v8778_v24 = vld [vmem:[%s13842_s26 + $0x344] sm:$0xf]  ;;  %v5934_v26 = vor.u32 %v8682_v17, %v5931_v18 }
  0x5c   :  { %1741 = vmatpush.bf16.msra.mxu0 %v5966_v2  ;;  %v6187_v23 = vld [vmem:[%s13842_s26 + $0x250] sm:$0xf0]  ;;  %v6062_v27 = vor.u32 %v8714_v19, %v6059_v21  ;;  %v8678_v29 = vld [vmem:[%s13842_s26 + $0x24] sm:$0xf] }
  0x5d   :  { %1754 = vmatpush.bf16.msra.mxu1 %v6094_v3  ;;  %1767 = vmatpush.bf16.msra.mxu2 %v6222_v4  ;;  %v6315_v25 = vld [vmem:[%s13842_s26 + $0x350] sm:$0xf0]  ;;  %v6190_v28 = vor.u32 %v8746_v22, %v6187_v23  ;;  %v8710_v31 = vld [vmem:[%s13842_s26 + $0x124] sm:$0xf] }
  0x5e   :  { %1780 = vmatpush.bf16.msra.mxu3 %v6350_v8  ;;  %v5915_v30 = vld [vmem:[%s13842_s26 + $0x30] sm:$0xf0]  ;;  %v6318_v35 = vor.u32 %v8778_v24, %v6315_v25  ;;  %v8742_v39 = vld [vmem:[%s13842_s26 + $0x224] sm:$0xf] }
  0x5f   :  { %v6043_v36 = vld [vmem:[%s13842_s26 + $0x130] sm:$0xf0]  ;;  %v8774_v44 = vld [vmem:[%s13842_s26 + $0x324] sm:$0xf]  ;;  %v5918_v46 = vor.u32 %v8678_v29, %v5915_v30 }
  0x60   :  { %1742 = vmatpush.bf16.msra.mxu0 %v5950_v14  ;;  %v6171_v43 = vld [vmem:[%s13842_s26 + $0x230] sm:$0xf0]  ;;  %v8674_v47 = vld [vmem:[%s13842_s26 + $0x4] sm:$0xf]  ;;  %v6046_v49 = vor.u32 %v8710_v31, %v6043_v36 }
  0x61   :  { %1755 = vmatpush.bf16.msra.mxu1 %v6078_v15  ;;  %1768 = vmatpush.bf16.msra.mxu2 %v6206_v16  ;;  %v6299_v45 = vld [vmem:[%s13842_s26 + $0x330] sm:$0xf0]  ;;  %v6174_v50 = vor.u32 %v8742_v39, %v6171_v43  ;;  %v8706_v51 = vld [vmem:[%s13842_s26 + $0x104] sm:$0xf] }
  0x62   :  { %1781 = vmatpush.bf16.msra.mxu3 %v6334_v20  ;;  %v5899_v48 = vld [vmem:[%s13842_s26 + $0x10] sm:$0xf0]  ;;  %v8738_v53 = vld [vmem:[%s13842_s26 + $0x204] sm:$0xf]  ;;  %v6302_v54 = vor.u32 %v8774_v44, %v6299_v45 }
  0x63   :  { %v6027_v52 = vld [vmem:[%s13842_s26 + $0x110] sm:$0xf0]  ;;  %v8770_v56 = vld [vmem:[%s13842_s26 + $0x304] sm:$0xf]  ;;  %v5902_v61 = vor.u32 %v8674_v47, %v5899_v48 }
  0x64   :  { %1743 = vmatpush.bf16.msra.mxu0 %v5934_v26  ;;  %v6155_v55 = vld [vmem:[%s13842_s26 + $0x210] sm:$0xf0]  ;;  %v8830_v58 = vld [vmem:[%s13842_s26 + $0x4e4] sm:$0xf]  ;;  %v6030_v1 = vor.u32 %v8706_v51, %v6027_v52 }
  0x65   :  { %1756 = vmatpush.bf16.msra.mxu1 %v6062_v27  ;;  %1769 = vmatpush.bf16.msra.mxu2 %v6190_v28  ;;  %v6283_v57 = vld [vmem:[%s13842_s26 + $0x310] sm:$0xf0]  ;;  %v8862_v60 = vld [vmem:[%s13842_s26 + $0x5e4] sm:$0xf]  ;;  %v6158_v2 = vor.u32 %v8738_v53, %v6155_v55 }
  0x66   :  { %1782 = vmatpush.bf16.msra.mxu3 %v6318_v35  ;;  %v6523_v59 = vld [vmem:[%s13842_s26 + $0x4f0] sm:$0xf0]  ;;  %v8894_v63 = vld [vmem:[%s13842_s26 + $0x6e4] sm:$0xf]  ;;  %v6286_v5 = vor.u32 %v8770_v56, %v6283_v57 }
  0x67   :  { %v6651_v62 = vld [vmem:[%s13842_s26 + $0x5f0] sm:$0xf0]  ;;  %v8926_v3 = vld [vmem:[%s13842_s26 + $0x7e4] sm:$0xf]  ;;  %v6526_v6 = vor.u32 %v8830_v58, %v6523_v59 }
  0x68   :  { %1744 = vmatpush.bf16.msra.mxu0 %v5918_v46  ;;  %v6779_v0 = vld [vmem:[%s13842_s26 + $0x6f0] sm:$0xf0]  ;;  %v6654_v7 = vor.u32 %v8862_v60, %v6651_v62  ;;  %v8826_v9 = vld [vmem:[%s13842_s26 + $0x4c4] sm:$0xf] }
  0x69   :  { %1757 = vmatpush.bf16.msra.mxu1 %v6046_v49  ;;  %1770 = vmatpush.bf16.msra.mxu2 %v6174_v50  ;;  %v6907_v4 = vld [vmem:[%s13842_s26 + $0x7f0] sm:$0xf0]  ;;  %v6782_v8 = vor.u32 %v8894_v63, %v6779_v0  ;;  %v8858_v11 = vld [vmem:[%s13842_s26 + $0x5c4] sm:$0xf] }
  0x6a   :  { %1783 = vmatpush.bf16.msra.mxu3 %v6302_v54  ;;  %v6507_v10 = vld [vmem:[%s13842_s26 + $0x4d0] sm:$0xf0]  ;;  %v6910_v12 = vor.u32 %v8926_v3, %v6907_v4  ;;  %v8890_v14 = vld [vmem:[%s13842_s26 + $0x6c4] sm:$0xf] }
  0x6b   :  { %v6635_v13 = vld [vmem:[%s13842_s26 + $0x5d0] sm:$0xf0]  ;;  %v8922_v16 = vld [vmem:[%s13842_s26 + $0x7c4] sm:$0xf]  ;;  %v6510_v18 = vor.u32 %v8826_v9, %v6507_v10 }
  0x6c   :  { %1745 = vmatpush.bf16.msra.mxu0 %v5902_v61  ;;  %v6763_v15 = vld [vmem:[%s13842_s26 + $0x6d0] sm:$0xf0]  ;;  %v6638_v19 = vor.u32 %v8858_v11, %v6635_v13  ;;  %v8822_v21 = vld [vmem:[%s13842_s26 + $0x4a4] sm:$0xf] }
  0x6d   :  { %1758 = vmatpush.bf16.msra.mxu1 %v6030_v1  ;;  %1771 = vmatpush.bf16.msra.mxu2 %v6158_v2  ;;  %v6891_v17 = vld [vmem:[%s13842_s26 + $0x7d0] sm:$0xf0]  ;;  %v6766_v20 = vor.u32 %v8890_v14, %v6763_v15  ;;  %v8854_v23 = vld [vmem:[%s13842_s26 + $0x5a4] sm:$0xf] }
  0x6e   :  { %1784 = vmatpush.bf16.msra.mxu3 %v6286_v5  ;;  %v6491_v22 = vld [vmem:[%s13842_s26 + $0x4b0] sm:$0xf0]  ;;  %v6894_v24 = vor.u32 %v8922_v16, %v6891_v17  ;;  %v8886_v26 = vld [vmem:[%s13842_s26 + $0x6a4] sm:$0xf] }
  0x6f   :  { %v6619_v25 = vld [vmem:[%s13842_s26 + $0x5b0] sm:$0xf0]  ;;  %v8918_v28 = vld [vmem:[%s13842_s26 + $0x7a4] sm:$0xf]  ;;  %1746 = vmatmul.bf16.vlgmr.msra.gmra.mxu0 %v9782_v34  ;;  %v6494_v30 = vor.u32 %v8822_v21, %v6491_v22 }
  0x70   :  { %1790 = vmatpush.bf16.msrb.mxu0 %v6526_v6  ;;  %v6747_v27 = vld [vmem:[%s13842_s26 + $0x6b0] sm:$0xf0]  ;;  %1772 = vmatmul.bf16.vlgmr.msra.gmra.mxu2 %v9780_v33  ;;  %v6622_v31 = vor.u32 %v8854_v23, %v6619_v25  ;;  %v8818_v36 = vld [vmem:[%s13842_s26 + $0x484] sm:$0xf] }
  0x71   :  { %1803 = vmatpush.bf16.msrb.mxu1 %v6654_v7  ;;  %1816 = vmatpush.bf16.msrb.mxu2 %v6782_v8  ;;  %v6875_v29 = vld [vmem:[%s13842_s26 + $0x7b0] sm:$0xf0]  ;;  %v6750_v35 = vor.u32 %v8886_v26, %v6747_v27  ;;  %v8850_v43 = vld [vmem:[%s13842_s26 + $0x584] sm:$0xf] }
  0x72   :  { %1829 = vmatpush.bf16.msrb.mxu3 %v6910_v12  ;;  %1759 = vmatmul.bf16.vlgmr.msra.gmra.mxu1 %v9795_v42  ;;  %v6475_v39 = vld [vmem:[%s13842_s26 + $0x490] sm:$0xf0]  ;;  %v6878_v44 = vor.u32 %v8918_v28, %v6875_v29  ;;  %v8882_v46 = vld [vmem:[%s13842_s26 + $0x684] sm:$0xf] }
  0x73   :  { %1785 = vmatmul.bf16.vlgmr.msra.gmra.mxu3 %v9793_v41  ;;  %v6603_v45 = vld [vmem:[%s13842_s26 + $0x590] sm:$0xf0]  ;;  %v8914_v48 = vld [vmem:[%s13842_s26 + $0x784] sm:$0xf]  ;;  %v6478_v50 = vor.u32 %v8818_v36, %v6475_v39  ;;  %v6017_v39 = vld [vmem:[%s13842_s26 + $0xe8] sm:$0xf] }
  0x74   :  { %1791 = vmatpush.bf16.msrb.mxu0 %v6510_v18  ;;  %v6731_v47 = vld [vmem:[%s13842_s26 + $0x690] sm:$0xf0]  ;;  %v6606_v51 = vor.u32 %v8850_v43, %v6603_v45  ;;  %v8814_v53 = vld [vmem:[%s13842_s26 + $0x464] sm:$0xf]  ;;  %v8705_v43 = vld [vmem:[%s13842_s26 + $0xf4] sm:$0xf0] }
  0x75   :  { %1804 = vmatpush.bf16.msrb.mxu1 %v6638_v19  ;;  %1817 = vmatpush.bf16.msrb.mxu2 %v6766_v20  ;;  %v6859_v49 = vld [vmem:[%s13842_s26 + $0x790] sm:$0xf0]  ;;  %v6734_v52 = vor.u32 %v8882_v46, %v6731_v47  ;;  %v8846_v55 = vld [vmem:[%s13842_s26 + $0x564] sm:$0xf]  ;;  %v8737_v46 = vld [vmem:[%s13842_s26 + $0x1f4] sm:$0xf0] }
  0x76   :  { %1830 = vmatpush.bf16.msrb.mxu3 %v6894_v24  ;;  %v6459_v54 = vld [vmem:[%s13842_s26 + $0x470] sm:$0xf0]  ;;  %v6862_v56 = vor.u32 %v8914_v48, %v6859_v49  ;;  %v8878_v58 = vld [vmem:[%s13842_s26 + $0x664] sm:$0xf]  ;;  %v6273_v47 = vld [vmem:[%s13842_s26 + $0x2e8] sm:$0xf] }
  0x77   :  { %v6587_v57 = vld [vmem:[%s13842_s26 + $0x570] sm:$0xf0]  ;;  %v8910_v60 = vld [vmem:[%s13842_s26 + $0x764] sm:$0xf]  ;;  %v6462_v62 = vor.u32 %v8814_v53, %v6459_v54  ;;  %v8769_v48 = vld [vmem:[%s13842_s26 + $0x2f4] sm:$0xf0]  ;;  %v6018_v54 = vor.u32 %v8705_v43, %v6017_v39 }
  0x78   :  { %1792 = vmatpush.bf16.msrb.mxu0 %v6494_v30  ;;  %v6715_v59 = vld [vmem:[%s13842_s26 + $0x670] sm:$0xf0]  ;;  %v6590_v63 = vor.u32 %v8846_v55, %v6587_v57  ;;  %v8810_v1 = vld [vmem:[%s13842_s26 + $0x444] sm:$0xf]  ;;  %v6001_v57 = vld [vmem:[%s13842_s26 + $0xc8] sm:$0xf] }
  0x79   :  { %1805 = vmatpush.bf16.msrb.mxu1 %v6622_v31  ;;  %1818 = vmatpush.bf16.msrb.mxu2 %v6750_v35  ;;  %v6843_v61 = vld [vmem:[%s13842_s26 + $0x770] sm:$0xf0]  ;;  %v6718_v0 = vor.u32 %v8878_v58, %v6715_v59  ;;  %v8842_v3 = vld [vmem:[%s13842_s26 + $0x544] sm:$0xf]  ;;  %v8701_v58 = vld [vmem:[%s13842_s26 + $0xd4] sm:$0xf0] }
  0x7a   :  { %1831 = vmatpush.bf16.msrb.mxu3 %v6878_v44  ;;  %v6443_v2 = vld [vmem:[%s13842_s26 + $0x450] sm:$0xf0]  ;;  %v6846_v4 = vor.u32 %v8910_v60, %v6843_v61  ;;  %v8874_v6 = vld [vmem:[%s13842_s26 + $0x644] sm:$0xf]  ;;  %v6145_v44 = vld [vmem:[%s13842_s26 + $0x1e8] sm:$0xf] }
  0x7b   :  { %v6571_v5 = vld [vmem:[%s13842_s26 + $0x550] sm:$0xf0]  ;;  %v8906_v8 = vld [vmem:[%s13842_s26 + $0x744] sm:$0xf]  ;;  %v6446_v10 = vor.u32 %v8810_v1, %v6443_v2  ;;  %v6146_v55 = vor.u32 %v8737_v46, %v6145_v44  ;;  %v6129_v59 = vld [vmem:[%s13842_s26 + $0x1c8] sm:$0xf]  ;;  %v6002_v2 = vor.u32 %v8701_v58, %v6001_v57 }
  0x7c   :  { %1793 = vmatpush.bf16.msrb.mxu0 %v6478_v50  ;;  %v6699_v7 = vld [vmem:[%s13842_s26 + $0x650] sm:$0xf0]  ;;  %v6574_v11 = vor.u32 %v8842_v3, %v6571_v5  ;;  %v8806_v13 = vld [vmem:[%s13842_s26 + $0x424] sm:$0xf]  ;;  %v8733_v61 = vld [vmem:[%s13842_s26 + $0x1d4] sm:$0xf0] }
  0x7d   :  { %1806 = vmatpush.bf16.msrb.mxu1 %v6606_v51  ;;  %1819 = vmatpush.bf16.msrb.mxu2 %v6734_v52  ;;  %v6827_v9 = vld [vmem:[%s13842_s26 + $0x750] sm:$0xf0]  ;;  %v6702_v12 = vor.u32 %v8874_v6, %v6699_v7  ;;  %v8838_v15 = vld [vmem:[%s13842_s26 + $0x524] sm:$0xf]  ;;  %v6401_v51 = vld [vmem:[%s13842_s26 + $0x3e8] sm:$0xf]  ;;  %v6130_v3 = vor.u32 %v8733_v61, %v6129_v59 }
  0x7e   :  { %1832 = vmatpush.bf16.msrb.mxu3 %v6862_v56  ;;  %v6427_v14 = vld [vmem:[%s13842_s26 + $0x430] sm:$0xf0]  ;;  %v6830_v16 = vor.u32 %v8906_v8, %v6827_v9  ;;  %v8870_v18 = vld [vmem:[%s13842_s26 + $0x624] sm:$0xf]  ;;  %v8801_v52 = vld [vmem:[%s13842_s26 + $0x3f4] sm:$0xf0]  ;;  %v6274_v56 = vor.u32 %v8769_v48, %v6273_v47 }
  0x7f   :  { %v6555_v17 = vld [vmem:[%s13842_s26 + $0x530] sm:$0xf0]  ;;  %v8902_v20 = vld [vmem:[%s13842_s26 + $0x724] sm:$0xf]  ;;  %v6430_v22 = vor.u32 %v8806_v13, %v6427_v14  ;;  %v6402_v60 = vor.u32 %v8801_v52, %v6401_v51  ;;  %v8797_v1 = vld [vmem:[%s13842_s26 + $0x3d4] sm:$0xf0] }
  0x80   :  { %1794 = vmatpush.bf16.msrb.mxu0 %v6462_v62  ;;  %v6683_v19 = vld [vmem:[%s13842_s26 + $0x630] sm:$0xf0]  ;;  %v8802_v23 = vld [vmem:[%s13842_s26 + $0x404] sm:$0xf]  ;;  %v6558_v25 = vor.u32 %v8838_v15, %v6555_v17  ;;  %v6257_v62 = vld [vmem:[%s13842_s26 + $0x2c8] sm:$0xf] }
  0x81   :  { %1807 = vmatpush.bf16.msrb.mxu1 %v6590_v63  ;;  %1820 = vmatpush.bf16.msrb.mxu2 %v6718_v0  ;;  %v6811_v21 = vld [vmem:[%s13842_s26 + $0x730] sm:$0xf0]  ;;  %v6686_v26 = vor.u32 %v8870_v18, %v6683_v19  ;;  %v8834_v27 = vld [vmem:[%s13842_s26 + $0x504] sm:$0xf]  ;;  %v8765_v63 = vld [vmem:[%s13842_s26 + $0x2d4] sm:$0xf0] }
  0x82   :  { %1833 = vmatpush.bf16.msrb.mxu3 %v6846_v4  ;;  %v6411_v24 = vld [vmem:[%s13842_s26 + $0x410] sm:$0xf0]  ;;  %v8866_v29 = vld [vmem:[%s13842_s26 + $0x604] sm:$0xf]  ;;  %v6814_v30 = vor.u32 %v8902_v20, %v6811_v21  ;;  %v6385_v0 = vld [vmem:[%s13842_s26 + $0x3c8] sm:$0xf]  ;;  %v6258_v4 = vor.u32 %v8765_v63, %v6257_v62 }
  0x83   :  { %v6539_v28 = vld [vmem:[%s13842_s26 + $0x510] sm:$0xf0]  ;;  %v8898_v35 = vld [vmem:[%s13842_s26 + $0x704] sm:$0xf]  ;;  %v6414_v45 = vor.u32 %v8802_v23, %v6411_v24  ;;  %v5985_v5 = vld [vmem:[%s13842_s26 + $0xa8] sm:$0xf]  ;;  %v6386_v8 = vor.u32 %v8797_v1, %v6385_v0 }
  0x84   :  { %1795 = vmatpush.bf16.msrb.mxu0 %v6446_v10  ;;  %v6667_v31 = vld [vmem:[%s13842_s26 + $0x610] sm:$0xf0]  ;;  %v6542_v49 = vor.u32 %v8834_v27, %v6539_v28  ;;  %v8697_v6 = vld [vmem:[%s13842_s26 + $0xb4] sm:$0xf0]  ;;  %v6113_v7 = vld [vmem:[%s13842_s26 + $0x1a8] sm:$0xf] }
  0x85   :  { %1808 = vmatpush.bf16.msrb.mxu1 %v6574_v11  ;;  %1821 = vmatpush.bf16.msrb.mxu2 %v6702_v12  ;;  %v6795_v36 = vld [vmem:[%s13842_s26 + $0x710] sm:$0xf0]  ;;  %v6670_v50 = vor.u32 %v8866_v29, %v6667_v31  ;;  %v8729_v9 = vld [vmem:[%s13842_s26 + $0x1b4] sm:$0xf0]  ;;  %v6241_v10 = vld [vmem:[%s13842_s26 + $0x2a8] sm:$0xf]  ;;  %v5986_v14 = vor.u32 %v8697_v6, %v5985_v5 }
  0x86   :  { %1834 = vmatpush.bf16.msrb.mxu3 %v6830_v16  ;;  %v6798_v53 = vor.u32 %v8898_v35, %v6795_v36  ;;  %v8761_v11 = vld [vmem:[%s13842_s26 + $0x2b4] sm:$0xf0]  ;;  %v6369_v12 = vld [vmem:[%s13842_s26 + $0x3a8] sm:$0xf]  ;;  %v6114_v15 = vor.u32 %v8729_v9, %v6113_v7 }
  0x87   :  { %v8793_v13 = vld [vmem:[%s13842_s26 + $0x3b4] sm:$0xf0]  ;;  %v6242_v16 = vor.u32 %v8761_v11, %v6241_v10  ;;  %v5969_v17 = vld [vmem:[%s13842_s26 + $0x88] sm:$0xf] }
  0x88   :  { %1796 = vmatpush.bf16.msrb.mxu0 %v6430_v22  ;;  %v8693_v18 = vld [vmem:[%s13842_s26 + $0x94] sm:$0xf0]  ;;  %v6097_v19 = vld [vmem:[%s13842_s26 + $0x188] sm:$0xf]  ;;  %v6370_v20 = vor.u32 %v8793_v13, %v6369_v12 }
  0x89   :  { %1809 = vmatpush.bf16.msrb.mxu1 %v6558_v25  ;;  %1822 = vmatpush.bf16.msrb.mxu2 %v6686_v26  ;;  %v8725_v21 = vld [vmem:[%s13842_s26 + $0x194] sm:$0xf0]  ;;  %v6225_v22 = vld [vmem:[%s13842_s26 + $0x288] sm:$0xf]  ;;  %v5970_v26 = vor.u32 %v8693_v18, %v5969_v17 }
  0x8a   :  { %1835 = vmatpush.bf16.msrb.mxu3 %v6814_v30  ;;  %v8757_v23 = vld [vmem:[%s13842_s26 + $0x294] sm:$0xf0]  ;;  %v6353_v24 = vld [vmem:[%s13842_s26 + $0x388] sm:$0xf]  ;;  %v6098_v27 = vor.u32 %v8725_v21, %v6097_v19 }
  0x8b   :  { %v8789_v25 = vld [vmem:[%s13842_s26 + $0x394] sm:$0xf0]  ;;  %v6226_v28 = vor.u32 %v8757_v23, %v6225_v22  ;;  %v5953_v29 = vld [vmem:[%s13842_s26 + $0x68] sm:$0xf] }
  0x8c   :  { %1797 = vmatpush.bf16.msrb.mxu0 %v6414_v45  ;;  %v8689_v30 = vld [vmem:[%s13842_s26 + $0x74] sm:$0xf0]  ;;  %v6081_v31 = vld [vmem:[%s13842_s26 + $0x168] sm:$0xf]  ;;  %v6354_v35 = vor.u32 %v8789_v25, %v6353_v24 }
  0x8d   :  { %1810 = vmatpush.bf16.msrb.mxu1 %v6542_v49  ;;  %1823 = vmatpush.bf16.msrb.mxu2 %v6670_v50  ;;  %v8721_v36 = vld [vmem:[%s13842_s26 + $0x174] sm:$0xf0]  ;;  %v6209_v39 = vld [vmem:[%s13842_s26 + $0x268] sm:$0xf]  ;;  %v5954_v46 = vor.u32 %v8689_v30, %v5953_v29 }
  0x8e   :  { %1836 = vmatpush.bf16.msrb.mxu3 %v6798_v53  ;;  %v8753_v43 = vld [vmem:[%s13842_s26 + $0x274] sm:$0xf0]  ;;  %v6337_v44 = vld [vmem:[%s13842_s26 + $0x368] sm:$0xf]  ;;  %v6082_v47 = vor.u32 %v8721_v36, %v6081_v31 }
  0x8f   :  { %1798 = vmatmul.bf16.vlgmr.msrb.gmra.mxu0 %v9908_v37  ;;  %v8785_v45 = vld [vmem:[%s13842_s26 + $0x374] sm:$0xf0]  ;;  %v6210_v48 = vor.u32 %v8753_v43, %v6209_v39  ;;  %v5937_v49 = vld [vmem:[%s13842_s26 + $0x48] sm:$0xf] }
  0x90   :  { %1842 = vmatpush.bf16.msra.mxu0 %v6018_v54  ;;  %1824 = vmatmul.bf16.vlgmr.msrb.gmra.mxu2 %v9900_v32  ;;  %v8685_v50 = vld [vmem:[%s13842_s26 + $0x54] sm:$0xf0]  ;;  %v6065_v51 = vld [vmem:[%s13842_s26 + $0x148] sm:$0xf]  ;;  %v6338_v52 = vor.u32 %v8785_v45, %v6337_v44 }
  0x91   :  { %1855 = vmatpush.bf16.msra.mxu1 %v6146_v55  ;;  %1868 = vmatpush.bf16.msra.mxu2 %v6274_v56  ;;  %v8717_v53 = vld [vmem:[%s13842_s26 + $0x154] sm:$0xf0]  ;;  %v6193_v54 = vld [vmem:[%s13842_s26 + $0x248] sm:$0xf]  ;;  %v5938_v58 = vor.u32 %v8685_v50, %v5937_v49 }
  0x92   :  { %1881 = vmatpush.bf16.msra.mxu3 %v6402_v60  ;;  %1811 = vmatmul.bf16.vlgmr.msrb.gmra.mxu1 %v9912_v40  ;;  %v8749_v55 = vld [vmem:[%s13842_s26 + $0x254] sm:$0xf0]  ;;  %v6321_v56 = vld [vmem:[%s13842_s26 + $0x348] sm:$0xf]  ;;  %v6066_v59 = vor.u32 %v8717_v53, %v6065_v51 }
  0x93   :  { %1837 = vmatmul.bf16.vlgmr.msrb.gmra.mxu3 %v9910_v38  ;;  %v8781_v57 = vld [vmem:[%s13842_s26 + $0x354] sm:$0xf0]  ;;  %v6194_v60 = vor.u32 %v8749_v55, %v6193_v54  ;;  %v5921_v61 = vld [vmem:[%s13842_s26 + $0x28] sm:$0xf] }
  0x94   :  { %1843 = vmatpush.bf16.msra.mxu0 %v6002_v2  ;;  %v8681_v62 = vld [vmem:[%s13842_s26 + $0x34] sm:$0xf0]  ;;  %v6049_v63 = vld [vmem:[%s13842_s26 + $0x128] sm:$0xf]  ;;  %v6322_v0 = vor.u32 %v8781_v57, %v6321_v56 }
  0x95   :  { %1856 = vmatpush.bf16.msra.mxu1 %v6130_v3  ;;  %1869 = vmatpush.bf16.msra.mxu2 %v6258_v4  ;;  %v8713_v1 = vld [vmem:[%s13842_s26 + $0x134] sm:$0xf0]  ;;  %v6177_v2 = vld [vmem:[%s13842_s26 + $0x228] sm:$0xf]  ;;  %v5922_v6 = vor.u32 %v8681_v62, %v5921_v61 }
  0x96   :  { %1882 = vmatpush.bf16.msra.mxu3 %v6386_v8  ;;  %v8745_v3 = vld [vmem:[%s13842_s26 + $0x234] sm:$0xf0]  ;;  %v6305_v4 = vld [vmem:[%s13842_s26 + $0x328] sm:$0xf]  ;;  %v6050_v9 = vor.u32 %v8713_v1, %v6049_v63 }
  0x97   :  { %v8777_v5 = vld [vmem:[%s13842_s26 + $0x334] sm:$0xf0]  ;;  %v5905_v7 = vld [vmem:[%s13842_s26 + $0x8] sm:$0xf]  ;;  %v6178_v10 = vor.u32 %v8745_v3, %v6177_v2 }
  0x98   :  { %1844 = vmatpush.bf16.msra.mxu0 %v5986_v14  ;;  %v8677_v8 = vld [vmem:[%s13842_s26 + $0x14] sm:$0xf0]  ;;  %v6033_v11 = vld [vmem:[%s13842_s26 + $0x108] sm:$0xf]  ;;  %v6306_v14 = vor.u32 %v8777_v5, %v6305_v4 }
  0x99   :  { %1857 = vmatpush.bf16.msra.mxu1 %v6114_v15  ;;  %1870 = vmatpush.bf16.msra.mxu2 %v6242_v16  ;;  %v8709_v12 = vld [vmem:[%s13842_s26 + $0x114] sm:$0xf0]  ;;  %v6161_v13 = vld [vmem:[%s13842_s26 + $0x208] sm:$0xf]  ;;  %v5906_v21 = vor.u32 %v8677_v8, %v5905_v7 }
  0x9a   :  { %1883 = vmatpush.bf16.msra.mxu3 %v6370_v20  ;;  %v8741_v15 = vld [vmem:[%s13842_s26 + $0x214] sm:$0xf0]  ;;  %v6289_v16 = vld [vmem:[%s13842_s26 + $0x308] sm:$0xf]  ;;  %v6034_v25 = vor.u32 %v8709_v12, %v6033_v11 }
  0x9b   :  { %v8773_v17 = vld [vmem:[%s13842_s26 + $0x314] sm:$0xf0]  ;;  %v6529_v18 = vld [vmem:[%s13842_s26 + $0x4e8] sm:$0xf] }
  0x9c   :  { %1845 = vmatpush.bf16.msra.mxu0 %v5970_v26  ;;  %v8833_v19 = vld [vmem:[%s13842_s26 + $0x4f4] sm:$0xf0]  ;;  %v6657_v20 = vld [vmem:[%s13842_s26 + $0x5e8] sm:$0xf]  ;;  %v6162_v26 = vor.u32 %v8741_v15, %v6161_v13  ;;  %v6290_v29 = vor.u32 %v8773_v17, %v6289_v16 }
  0x9d   :  { %1858 = vmatpush.bf16.msra.mxu1 %v6098_v27  ;;  %1871 = vmatpush.bf16.msra.mxu2 %v6226_v28  ;;  %v8865_v22 = vld [vmem:[%s13842_s26 + $0x5f4] sm:$0xf0]  ;;  %v6785_v23 = vld [vmem:[%s13842_s26 + $0x6e8] sm:$0xf]  ;;  %v6530_v30 = vor.u32 %v8833_v19, %v6529_v18 }
  0x9e   :  { %1884 = vmatpush.bf16.msra.mxu3 %v6354_v35  ;;  %v8897_v24 = vld [vmem:[%s13842_s26 + $0x6f4] sm:$0xf0]  ;;  %v6913_v27 = vld [vmem:[%s13842_s26 + $0x7e8] sm:$0xf]  ;;  %v6658_v31 = vor.u32 %v8865_v22, %v6657_v20 }
  0x9f   :  { %v8929_v28 = vld [vmem:[%s13842_s26 + $0x7f4] sm:$0xf0]  ;;  %v6786_v35 = vor.u32 %v8897_v24, %v6785_v23  ;;  %v6513_v36 = vld [vmem:[%s13842_s26 + $0x4c8] sm:$0xf] }
  0xa0   :  { %1846 = vmatpush.bf16.msra.mxu0 %v5954_v46  ;;  %v8829_v39 = vld [vmem:[%s13842_s26 + $0x4d4] sm:$0xf0]  ;;  %v6641_v43 = vld [vmem:[%s13842_s26 + $0x5c8] sm:$0xf]  ;;  %v6914_v44 = vor.u32 %v8929_v28, %v6913_v27 }
  0xa1   :  { %1859 = vmatpush.bf16.msra.mxu1 %v6082_v47  ;;  %1872 = vmatpush.bf16.msra.mxu2 %v6210_v48  ;;  %v8861_v45 = vld [vmem:[%s13842_s26 + $0x5d4] sm:$0xf0]  ;;  %v6769_v46 = vld [vmem:[%s13842_s26 + $0x6c8] sm:$0xf]  ;;  %v6514_v50 = vor.u32 %v8829_v39, %v6513_v36 }
  0xa2   :  { %1885 = vmatpush.bf16.msra.mxu3 %v6338_v52  ;;  %v8893_v47 = vld [vmem:[%s13842_s26 + $0x6d4] sm:$0xf0]  ;;  %v6897_v48 = vld [vmem:[%s13842_s26 + $0x7c8] sm:$0xf]  ;;  %v6642_v51 = vor.u32 %v8861_v45, %v6641_v43 }
  0xa3   :  { %v8925_v49 = vld [vmem:[%s13842_s26 + $0x7d4] sm:$0xf0]  ;;  %v6770_v52 = vor.u32 %v8893_v47, %v6769_v46  ;;  %v6497_v53 = vld [vmem:[%s13842_s26 + $0x4a8] sm:$0xf] }
  0xa4   :  { %1847 = vmatpush.bf16.msra.mxu0 %v5938_v58  ;;  %v8825_v54 = vld [vmem:[%s13842_s26 + $0x4b4] sm:$0xf0]  ;;  %v6625_v55 = vld [vmem:[%s13842_s26 + $0x5a8] sm:$0xf]  ;;  %v6898_v56 = vor.u32 %v8925_v49, %v6897_v48 }
  0xa5   :  { %1860 = vmatpush.bf16.msra.mxu1 %v6066_v59  ;;  %1873 = vmatpush.bf16.msra.mxu2 %v6194_v60  ;;  %v8857_v57 = vld [vmem:[%s13842_s26 + $0x5b4] sm:$0xf0]  ;;  %v6753_v58 = vld [vmem:[%s13842_s26 + $0x6a8] sm:$0xf]  ;;  %v6498_v62 = vor.u32 %v8825_v54, %v6497_v53 }
  0xa6   :  { %1886 = vmatpush.bf16.msra.mxu3 %v6322_v0  ;;  %v8889_v59 = vld [vmem:[%s13842_s26 + $0x6b4] sm:$0xf0]  ;;  %v6881_v60 = vld [vmem:[%s13842_s26 + $0x7a8] sm:$0xf]  ;;  %v6626_v63 = vor.u32 %v8857_v57, %v6625_v55 }
  0xa7   :  { %v8921_v61 = vld [vmem:[%s13842_s26 + $0x7b4] sm:$0xf0]  ;;  %v6754_v0 = vor.u32 %v8889_v59, %v6753_v58  ;;  %v6481_v1 = vld [vmem:[%s13842_s26 + $0x488] sm:$0xf] }
  0xa8   :  { %1848 = vmatpush.bf16.msra.mxu0 %v5922_v6  ;;  %v8821_v2 = vld [vmem:[%s13842_s26 + $0x494] sm:$0xf0]  ;;  %v6609_v3 = vld [vmem:[%s13842_s26 + $0x588] sm:$0xf]  ;;  %v6882_v4 = vor.u32 %v8921_v61, %v6881_v60 }
  0xa9   :  { %1861 = vmatpush.bf16.msra.mxu1 %v6050_v9  ;;  %1874 = vmatpush.bf16.msra.mxu2 %v6178_v10  ;;  %v8853_v5 = vld [vmem:[%s13842_s26 + $0x594] sm:$0xf0]  ;;  %v6737_v6 = vld [vmem:[%s13842_s26 + $0x688] sm:$0xf]  ;;  %v6482_v10 = vor.u32 %v8821_v2, %v6481_v1 }
  0xaa   :  { %1887 = vmatpush.bf16.msra.mxu3 %v6306_v14  ;;  %v8885_v7 = vld [vmem:[%s13842_s26 + $0x694] sm:$0xf0]  ;;  %v6865_v8 = vld [vmem:[%s13842_s26 + $0x788] sm:$0xf]  ;;  %v6610_v11 = vor.u32 %v8853_v5, %v6609_v3 }
  0xab   :  { %v8917_v9 = vld [vmem:[%s13842_s26 + $0x794] sm:$0xf0]  ;;  %v6738_v12 = vor.u32 %v8885_v7, %v6737_v6  ;;  %v6465_v13 = vld [vmem:[%s13842_s26 + $0x468] sm:$0xf]  ;;  %v8703_v6 = vld [vmem:[%s13842_s26 + $0xec] sm:$0xf] }
  0xac   :  { %1849 = vmatpush.bf16.msra.mxu0 %v5906_v21  ;;  %v8817_v14 = vld [vmem:[%s13842_s26 + $0x474] sm:$0xf0]  ;;  %v6593_v15 = vld [vmem:[%s13842_s26 + $0x568] sm:$0xf]  ;;  %v6866_v16 = vor.u32 %v8917_v9, %v6865_v8  ;;  %v6019_v7 = vld [vmem:[%s13842_s26 + $0xf8] sm:$0xf0] }
  0xad   :  { %1862 = vmatpush.bf16.msra.mxu1 %v6034_v25  ;;  %1875 = vmatpush.bf16.msra.mxu2 %v6162_v26  ;;  %v8849_v17 = vld [vmem:[%s13842_s26 + $0x574] sm:$0xf0]  ;;  %v6721_v18 = vld [vmem:[%s13842_s26 + $0x668] sm:$0xf]  ;;  %v6466_v22 = vor.u32 %v8817_v14, %v6465_v13  ;;  %v8735_v8 = vld [vmem:[%s13842_s26 + $0x1ec] sm:$0xf] }
  0xae   :  { %1888 = vmatpush.bf16.msra.mxu3 %v6290_v29  ;;  %v8881_v19 = vld [vmem:[%s13842_s26 + $0x674] sm:$0xf0]  ;;  %v6849_v20 = vld [vmem:[%s13842_s26 + $0x768] sm:$0xf]  ;;  %v6594_v24 = vor.u32 %v8849_v17, %v6593_v15  ;;  %v6275_v13 = vld [vmem:[%s13842_s26 + $0x2f8] sm:$0xf0] }
  0xaf   :  { %1850 = vmatmul.bf16.vlgmr.msra.gmra.mxu0 %v9782_v34  ;;  %v8913_v21 = vld [vmem:[%s13842_s26 + $0x774] sm:$0xf0]  ;;  %v6449_v23 = vld [vmem:[%s13842_s26 + $0x448] sm:$0xf]  ;;  %v6722_v25 = vor.u32 %v8881_v19, %v6721_v18  ;;  %v8799_v17 = vld [vmem:[%s13842_s26 + $0x3ec] sm:$0xf] }
  0xb0   :  { %1894 = vmatpush.bf16.msrb.mxu0 %v6530_v30  ;;  %1876 = vmatmul.bf16.vlgmr.msra.gmra.mxu2 %v9780_v33  ;;  %v8813_v26 = vld [vmem:[%s13842_s26 + $0x454] sm:$0xf0]  ;;  %v6577_v27 = vld [vmem:[%s13842_s26 + $0x548] sm:$0xf]  ;;  %v6850_v29 = vor.u32 %v8913_v21, %v6849_v20  ;;  %v6403_v18 = vld [vmem:[%s13842_s26 + $0x3f8] sm:$0xf0]  ;;  %v6022_v20 = vor.u32 %v8703_v6, %v6019_v7 }
  0xb1   :  { %1907 = vmatpush.bf16.msrb.mxu1 %v6658_v31  ;;  %1920 = vmatpush.bf16.msrb.mxu2 %v6786_v35  ;;  %v8845_v28 = vld [vmem:[%s13842_s26 + $0x554] sm:$0xf0]  ;;  %v6705_v30 = vld [vmem:[%s13842_s26 + $0x648] sm:$0xf]  ;;  %v10599_v35 = vld [vmem:[%s13822_s3] sm:$0xf]  ;;  %v6450_v43 = vor.u32 %v8813_v26, %v6449_v23 }
  0xb2   :  { %1933 = vmatpush.bf16.msrb.mxu3 %v6914_v44  ;;  %1863 = vmatmul.bf16.vlgmr.msra.gmra.mxu1 %v9795_v42  ;;  %v8877_v31 = vld [vmem:[%s13842_s26 + $0x654] sm:$0xf0]  ;;  %v6833_v36 = vld [vmem:[%s13842_s26 + $0x748] sm:$0xf]  ;;  %v6578_v45 = vor.u32 %v8845_v28, %v6577_v27  ;;  %v346_v49 = vperm.slane %v10599_v35, 0 }
  0xb3   :  { %1889 = vmatmul.bf16.vlgmr.msra.gmra.mxu3 %v9793_v41  ;;  %v8909_v39 = vld [vmem:[%s13842_s26 + $0x754] sm:$0xf0]  ;;  %v6433_v44 = vld [vmem:[%s13842_s26 + $0x428] sm:$0xf]  ;;  %v6706_v46 = vor.u32 %v8877_v31, %v6705_v30  ;;  %v8731_v26 = vld [vmem:[%s13842_s26 + $0x1cc] sm:$0xf] }
  0xb4   :  { %1895 = vmatpush.bf16.msrb.mxu0 %v6514_v50  ;;  %v8809_v47 = vld [vmem:[%s13842_s26 + $0x434] sm:$0xf0]  ;;  %v6561_v48 = vld [vmem:[%s13842_s26 + $0x528] sm:$0xf]  ;;  %v6834_v50 = vor.u32 %v8909_v39, %v6833_v36  ;;  %v6131_v30 = vld [vmem:[%s13842_s26 + $0x1d8] sm:$0xf0] }
  0xb5   :  { %1908 = vmatpush.bf16.msrb.mxu1 %v6642_v51  ;;  %1921 = vmatpush.bf16.msrb.mxu2 %v6770_v52  ;;  %v8841_v51 = vld [vmem:[%s13842_s26 + $0x534] sm:$0xf0]  ;;  %v6689_v52 = vld [vmem:[%s13842_s26 + $0x628] sm:$0xf]  ;;  %v8763_v31 = vld [vmem:[%s13842_s26 + $0x2cc] sm:$0xf] }
  0xb6   :  { %1934 = vmatpush.bf16.msrb.mxu3 %v6898_v56  ;;  %v8873_v53 = vld [vmem:[%s13842_s26 + $0x634] sm:$0xf0]  ;;  %v6817_v54 = vld [vmem:[%s13842_s26 + $0x728] sm:$0xf]  ;;  %v6434_v56 = vor.u32 %v8809_v47, %v6433_v44  ;;  %v6562_v60 = vor.u32 %v8841_v51, %v6561_v48  ;;  %v6259_v36 = vld [vmem:[%s13842_s26 + $0x2d8] sm:$0xf0]  ;;  %v6134_v47 = vor.u32 %v8731_v26, %v6131_v30 }
  0xb7   :  { %v8905_v55 = vld [vmem:[%s13842_s26 + $0x734] sm:$0xf0]  ;;  %v6417_v57 = vld [vmem:[%s13842_s26 + $0x408] sm:$0xf]  ;;  %v6690_v61 = vor.u32 %v8873_v53, %v6689_v52  ;;  %v6387_v44 = vld [vmem:[%s13842_s26 + $0x3d8] sm:$0xf0]  ;;  %v6262_v48 = vor.u32 %v8763_v31, %v6259_v36 }
  0xb8   :  { %1896 = vmatpush.bf16.msrb.mxu0 %v6498_v62  ;;  %v8805_v58 = vld [vmem:[%s13842_s26 + $0x414] sm:$0xf0]  ;;  %v6545_v62 = vld [vmem:[%s13842_s26 + $0x508] sm:$0xf]  ;;  %v6818_v2 = vor.u32 %v8905_v55, %v6817_v54  ;;  %v8727_v51 = vld [vmem:[%s13842_s26 + $0x1ac] sm:$0xf] }
  0xb9   :  { %1909 = vmatpush.bf16.msrb.mxu1 %v6626_v63  ;;  %1922 = vmatpush.bf16.msrb.mxu2 %v6754_v0  ;;  %v8837_v63 = vld [vmem:[%s13842_s26 + $0x514] sm:$0xf0]  ;;  %v6673_v0 = vld [vmem:[%s13842_s26 + $0x608] sm:$0xf]  ;;  %v6115_v54 = vld [vmem:[%s13842_s26 + $0x1b8] sm:$0xf0] }
  0xba   :  { %1935 = vmatpush.bf16.msrb.mxu3 %v6882_v4  ;;  %v8869_v3 = vld [vmem:[%s13842_s26 + $0x614] sm:$0xf0]  ;;  %v6801_v4 = vld [vmem:[%s13842_s26 + $0x708] sm:$0xf]  ;;  %v6546_v15 = vor.u32 %v8837_v63, %v6545_v62  ;;  %v8759_v55 = vld [vmem:[%s13842_s26 + $0x2ac] sm:$0xf] }
  0xbb   :  { %v8901_v5 = vld [vmem:[%s13842_s26 + $0x714] sm:$0xf0]  ;;  %v8691_v63 = vld [vmem:[%s13842_s26 + $0x8c] sm:$0xf]  ;;  %v6227_v6 = vld [vmem:[%s13842_s26 + $0x298] sm:$0xf0] }
  0xbc   :  { %1897 = vmatpush.bf16.msrb.mxu0 %v6482_v10  ;;  %v6418_v10 = vor.u32 %v8805_v58, %v6417_v57  ;;  %v6802_v19 = vor.u32 %v8901_v5, %v6801_v4  ;;  %v8791_v57 = vld [vmem:[%s13842_s26 + $0x3ac] sm:$0xf]  ;;  %v6371_v58 = vld [vmem:[%s13842_s26 + $0x3b8] sm:$0xf0] }
  0xbd   :  { %1910 = vmatpush.bf16.msrb.mxu1 %v6610_v11  ;;  %1923 = vmatpush.bf16.msrb.mxu2 %v6738_v12  ;;  %v6147_v11 = vld [vmem:[%s13842_s26 + $0x1f8] sm:$0xf0]  ;;  %v8767_v12 = vld [vmem:[%s13842_s26 + $0x2ec] sm:$0xf] }
  0xbe   :  { %1936 = vmatpush.bf16.msrb.mxu3 %v6866_v16  ;;  %v6674_v16 = vor.u32 %v8869_v3, %v6673_v0  ;;  %v6278_v23 = vor.u32 %v8767_v12, %v6275_v13  ;;  %v5971_v0 = vld [vmem:[%s13842_s26 + $0x98] sm:$0xf0]  ;;  %v6374_v3 = vor.u32 %v8791_v57, %v6371_v58  ;;  %v8755_v5 = vld [vmem:[%s13842_s26 + $0x28c] sm:$0xf] }
  0xbf   :  { %v6099_v4 = vld [vmem:[%s13842_s26 + $0x198] sm:$0xf0]  ;;  %v8787_v7 = vld [vmem:[%s13842_s26 + $0x38c] sm:$0xf]  ;;  %v6230_v12 = vor.u32 %v8755_v5, %v6227_v6 }
  0xc0   :  { %1898 = vmatpush.bf16.msrb.mxu0 %v6466_v22  ;;  %v1643_v59 = vpop.f32.mrf.mxu0  ;;  %v1656_v9 = vpop.f32.mrf.mxu1  ;;  %v6150_v22 = vor.u32 %v8735_v8, %v6147_v11  ;;  %v6355_v8 = vld [vmem:[%s13842_s26 + $0x398] sm:$0xf0]  ;;  %v8687_v13 = vld [vmem:[%s13842_s26 + $0x6c] sm:$0xf] }
  0xc1   :  { %1911 = vmatpush.bf16.msrb.mxu1 %v6594_v24  ;;  %1924 = vmatpush.bf16.msrb.mxu2 %v6722_v25  ;;  %v1644_v1 = vadd.f32 %v1643_v59, %v346_v49  ;;  %v8699_v24 = vld [vmem:[%s13842_s26 + $0xcc] sm:$0xf]  ;;  %v6003_v25 = vld [vmem:[%s13842_s26 + $0xd8] sm:$0xf0] }
  0xc2   :  { %1937 = vmatpush.bf16.msrb.mxu3 %v6850_v29  ;;  %v6406_v29 = vor.u32 %v8799_v17, %v6403_v18  ;;  %v8695_v49 = vld [vmem:[%s13842_s26 + $0xac] sm:$0xf]  ;;  %v6358_v18 = vor.u32 %v8787_v7, %v6355_v8  ;;  %v6035_v6 = vld [vmem:[%s13842_s26 + $0x118] sm:$0xf0] }
  0xc3   :  { %v1657_v14 = vadd.f32 %v1656_v9, %v1644_v1  ;;  %v8723_v1 = vld [vmem:[%s13842_s26 + $0x18c] sm:$0xf]  ;;  %v5974_v9 = vor.u32 %v8691_v63, %v5971_v0  ;;  %v6307_v63 = vld [vmem:[%s13842_s26 + $0x338] sm:$0xf0] }
  0xc4   :  { %1899 = vmatpush.bf16.msrb.mxu0 %v6450_v43  ;;  %v1669_v21 = vpop.f32.mrf.mxu2  ;;  %v8795_v43 = vld [vmem:[%s13842_s26 + $0x3cc] sm:$0xf]  ;;  %v6102_v11 = vor.u32 %v8723_v1, %v6099_v4 }
  0xc5   :  { %1912 = vmatpush.bf16.msrb.mxu1 %v6578_v45  ;;  %1925 = vmatpush.bf16.msrb.mxu2 %v6706_v46  ;;  %v1670_v27 = vadd.f32 %v1669_v21, %v1657_v14  ;;  %v1682_v28 = vpop.f32.mrf.mxu3  ;;  %v6006_v46 = vor.u32 %v8699_v24, %v6003_v25  ;;  %v6390_v53 = vor.u32 %v8795_v43, %v6387_v44  ;;  %v5955_v14 = vld [vmem:[%s13842_s26 + $0x78] sm:$0xf0]  ;;  %v8715_v30 = vld [vmem:[%s13842_s26 + $0x14c] sm:$0xf] }
  0xc6   :  { %1938 = vmatpush.bf16.msrb.mxu3 %v6834_v50  ;;  %v5987_v50 = vld [vmem:[%s13842_s26 + $0xb8] sm:$0xf0]  ;;  %v5958_v25 = vor.u32 %v8687_v13, %v5955_v14  ;;  %v8747_v43 = vld [vmem:[%s13842_s26 + $0x24c] sm:$0xf] }
  0xc7   :  { %v1683_v45 = vadd.f32 %v1682_v28, %v1670_v27  ;;  %v5990_v59 = vor.u32 %v8695_v49, %v5987_v50  ;;  %v6211_v21 = vld [vmem:[%s13842_s26 + $0x278] sm:$0xf0]  ;;  %v8683_v28 = vld [vmem:[%s13842_s26 + $0x4c] sm:$0xf] }
  0xc8   :  { %1900 = vmatpush.bf16.msrb.mxu0 %v6434_v56  ;;  %v1645_v39 = vpop.f32.mrf.mxu0  ;;  %v1658_v52 = vpop.f32.mrf.mxu1  ;;  %v6243_v56 = vld [vmem:[%s13842_s26 + $0x2b8] sm:$0xf0]  ;;  %v8675_v1 = vld [vmem:[%s13842_s26 + $0xc] sm:$0xf] }
  0xc9   :  { %1913 = vmatpush.bf16.msrb.mxu1 %v6562_v60  ;;  %1926 = vmatpush.bf16.msrb.mxu2 %v6690_v61  ;;  %v6118_v61 = vor.u32 %v8727_v51, %v6115_v54  ;;  %v6246_v62 = vor.u32 %v8759_v55, %v6243_v56  ;;  %v6067_v39 = vld [vmem:[%s13842_s26 + $0x158] sm:$0xf0]  ;;  %v8679_v54 = vld [vmem:[%s13842_s26 + $0x2c] sm:$0xf] }
  0xca   :  { %1939 = vmatpush.bf16.msrb.mxu3 %v6818_v2  ;;  %v6195_v44 = vld [vmem:[%s13842_s26 + $0x258] sm:$0xf0]  ;;  %v6070_v52 = vor.u32 %v8715_v30, %v6067_v39  ;;  %v8711_v56 = vld [vmem:[%s13842_s26 + $0x12c] sm:$0xf] }
  0xcb   :  { %v5923_v55 = vld [vmem:[%s13842_s26 + $0x38] sm:$0xf0]  ;;  %v8707_v5 = vld [vmem:[%s13842_s26 + $0x10c] sm:$0xf] }
  0xcc   :  { %1901 = vmatpush.bf16.msrb.mxu0 %v6418_v10  ;;  %v1671_v60 = vpop.f32.mrf.mxu2  ;;  %v5926_v0 = vor.u32 %v8679_v54, %v5923_v55  ;;  %v8739_v7 = vld [vmem:[%s13842_s26 + $0x20c] sm:$0xf]  ;;  %v6515_v30 = vld [vmem:[%s13842_s26 + $0x4d8] sm:$0xf0] }
  0xcd   :  { %1914 = vmatpush.bf16.msrb.mxu1 %v6546_v15  ;;  %1927 = vmatpush.bf16.msrb.mxu2 %v6674_v16  ;;  %v1684_v2 = vpop.f32.mrf.mxu3  ;;  %v8719_v15 = vld [vmem:[%s13842_s26 + $0x16c] sm:$0xf]  ;;  %v6643_v39 = vld [vmem:[%s13842_s26 + $0x5d8] sm:$0xf0] }
  0xce   :  { %1940 = vmatpush.bf16.msrb.mxu3 %v6802_v19  ;;  %v6083_v19 = vld [vmem:[%s13842_s26 + $0x178] sm:$0xf0]  ;;  %v8743_v60 = vld [vmem:[%s13842_s26 + $0x22c] sm:$0xf] }
  0xcf   :  { %1902 = vmatmul.bf16.vlgmr.msrb.gmra.mxu0 %v9908_v37  ;;  %v6086_v26 = vor.u32 %v8719_v15, %v6083_v19  ;;  %v5907_v2 = vld [vmem:[%s13842_s26 + $0x18] sm:$0xf0]  ;;  %v8831_v14 = vld [vmem:[%s13842_s26 + $0x4ec] sm:$0xf] }
  0xd0   :  { %1946 = vmatpush.bf16.msra.mxu0 %v6022_v20  ;;  %1928 = vmatmul.bf16.vlgmr.msrb.gmra.mxu2 %v9900_v32  ;;  %v1695_v10 = vpop.f32.mrf.mxu0  ;;  %v8751_v20 = vld [vmem:[%s13842_s26 + $0x26c] sm:$0xf]  ;;  %v6531_v15 = vld [vmem:[%s13842_s26 + $0x4f8] sm:$0xf0] }
  0xd1   :  { %1959 = vmatpush.bf16.msra.mxu1 %v6150_v22  ;;  %1972 = vmatpush.bf16.msra.mxu2 %v6278_v23  ;;  %v1696_v16 = vadd.f32 %v1695_v10, %v1683_v45  ;;  %v1708_v17 = vpop.f32.mrf.mxu1  ;;  %v8783_v22 = vld [vmem:[%s13842_s26 + $0x36c] sm:$0xf]  ;;  %v6339_v23 = vld [vmem:[%s13842_s26 + $0x378] sm:$0xf0]  ;;  %v6214_v27 = vor.u32 %v8751_v20, %v6211_v21  ;;  %v6038_v21 = vor.u32 %v8707_v5, %v6035_v6 }
  0xd2   :  { %1985 = vmatpush.bf16.msra.mxu3 %v6406_v29  ;;  %1915 = vmatmul.bf16.vlgmr.msrb.gmra.mxu1 %v9912_v40  ;;  %v5939_v29 = vld [vmem:[%s13842_s26 + $0x58] sm:$0xf0]  ;;  %v6342_v36 = vor.u32 %v8783_v22, %v6339_v23  ;;  %v8895_v19 = vld [vmem:[%s13842_s26 + $0x6ec] sm:$0xf] }
  0xd3   :  { %1941 = vmatmul.bf16.vlgmr.msrb.gmra.mxu3 %v9910_v38  ;;  %v1709_v24 = vadd.f32 %v1708_v17, %v1696_v16  ;;  %v5942_v49 = vor.u32 %v8683_v28, %v5939_v29  ;;  %v6163_v10 = vld [vmem:[%s13842_s26 + $0x218] sm:$0xf0]  ;;  %v8863_v16 = vld [vmem:[%s13842_s26 + $0x5ec] sm:$0xf]  ;;  %v5910_v17 = vor.u32 %v8675_v1, %v5907_v2 }
  0xd4   :  { %1947 = vmatpush.bf16.msra.mxu0 %v6006_v46  ;;  %v6787_v20 = vld [vmem:[%s13842_s26 + $0x6f8] sm:$0xf0]  ;;  %v6166_v22 = vor.u32 %v8739_v7, %v6163_v10  ;;  %v8927_v23 = vld [vmem:[%s13842_s26 + $0x7ec] sm:$0xf] }
  0xd5   :  { %1960 = vmatpush.bf16.msra.mxu1 %v6134_v47  ;;  %1973 = vmatpush.bf16.msra.mxu2 %v6262_v48  ;;  %v1721_v31 = vpop.f32.mrf.mxu2  ;;  %v8779_v47 = vld [vmem:[%s13842_s26 + $0x34c] sm:$0xf]  ;;  %v6323_v48 = vld [vmem:[%s13842_s26 + $0x358] sm:$0xf0]  ;;  %v6790_v28 = vor.u32 %v8895_v19, %v6787_v20 }
  0xd6   :  { %1986 = vmatpush.bf16.msra.mxu3 %v6390_v53  ;;  %v1722_v45 = vadd.f32 %v1721_v31, %v1709_v24  ;;  %v1734_v46 = vpop.f32.mrf.mxu3  ;;  %v6198_v53 = vor.u32 %v8747_v43, %v6195_v44  ;;  %v6326_v58 = vor.u32 %v8779_v47, %v6323_v48  ;;  %v6915_v24 = vld [vmem:[%s13842_s26 + $0x7f8] sm:$0xf0]  ;;  %v8827_v29 = vld [vmem:[%s13842_s26 + $0x4cc] sm:$0xf] }
  0xd7   :  { %v8859_v31 = vld [vmem:[%s13842_s26 + $0x5cc] sm:$0xf]  ;;  %v6771_v44 = vld [vmem:[%s13842_s26 + $0x6d8] sm:$0xf0]  ;;  %v6518_v47 = vor.u32 %v8827_v29, %v6515_v30 }
  0xd8   :  { %1948 = vmatpush.bf16.msra.mxu0 %v5990_v59  ;;  %v10804_v50 = vadd.f32 %v1734_v46, %v1722_v45  ;;  %v1697_v51 = vpop.f32.mrf.mxu0  ;;  %v6051_v59 = vld [vmem:[%s13842_s26 + $0x138] sm:$0xf0]  ;;  %v8891_v43 = vld [vmem:[%s13842_s26 + $0x6cc] sm:$0xf]  ;;  %v6646_v48 = vor.u32 %v8859_v31, %v6643_v39 }
  0xd9   :  { %1961 = vmatpush.bf16.msra.mxu1 %v6118_v61  ;;  %1974 = vmatpush.bf16.msra.mxu2 %v6246_v62  ;;  %v1710_v57 = vpop.f32.mrf.mxu1  ;;  %v6179_v61 = vld [vmem:[%s13842_s26 + $0x238] sm:$0xf0]  ;;  %v8775_v62 = vld [vmem:[%s13842_s26 + $0x32c] sm:$0xf] }
  0xda   :  { %1987 = vmatpush.bf16.msra.mxu3 %v6374_v3  ;;  %v6054_v3 = vor.u32 %v8711_v56, %v6051_v59  ;;  %v6182_v4 = vor.u32 %v8743_v60, %v6179_v61  ;;  %v8923_v45 = vld [vmem:[%s13842_s26 + $0x7cc] sm:$0xf]  ;;  %v6899_v46 = vld [vmem:[%s13842_s26 + $0x7d8] sm:$0xf0] }
  0xdb   :  { %v8823_v51 = vld [vmem:[%s13842_s26 + $0x4ac] sm:$0xf]  ;;  %v6902_v54 = vor.u32 %v8923_v45, %v6899_v46  ;;  %v6627_v55 = vld [vmem:[%s13842_s26 + $0x5b8] sm:$0xf0] }
  0xdc   :  { %1949 = vmatpush.bf16.msra.mxu0 %v5974_v9  ;;  %v6310_v9 = vor.u32 %v8775_v62, %v6307_v63  ;;  %v8887_v56 = vld [vmem:[%s13842_s26 + $0x6ac] sm:$0xf]  ;;  %v6755_v57 = vld [vmem:[%s13842_s26 + $0x6b8] sm:$0xf0] }
  0xdd   :  { %1962 = vmatpush.bf16.msra.mxu1 %v6102_v11  ;;  %1975 = vmatpush.bf16.msra.mxu2 %v6230_v12  ;;  %v1723_v8 = vpop.f32.mrf.mxu2  ;;  %v8771_v11 = vld [vmem:[%s13842_s26 + $0x30c] sm:$0xf]  ;;  %v6291_v12 = vld [vmem:[%s13842_s26 + $0x318] sm:$0xf0]  ;;  %v6758_v61 = vor.u32 %v8887_v56, %v6755_v57  ;;  %v347_v56 = vperm.slane %v10599_v35, 1 }
  0xde   :  { %1988 = vmatpush.bf16.msra.mxu3 %v6358_v18  ;;  %v1736_v13 = vpop.f32.mrf.mxu3  ;;  %v6659_v18 = vld [vmem:[%s13842_s26 + $0x5f8] sm:$0xf0]  ;;  %v8819_v62 = vld [vmem:[%s13842_s26 + $0x48c] sm:$0xf] }
  0xdf   :  { %v6483_v63 = vld [vmem:[%s13842_s26 + $0x498] sm:$0xf0]  ;;  %v8915_v2 = vld [vmem:[%s13842_s26 + $0x78c] sm:$0xf] }
  0xe0   :  { %1950 = vmatpush.bf16.msra.mxu0 %v5958_v25  ;;  %v6294_v25 = vor.u32 %v8771_v11, %v6291_v12  ;;  %v6739_v1 = vld [vmem:[%s13842_s26 + $0x698] sm:$0xf0]  ;;  %v8815_v8 = vld [vmem:[%s13842_s26 + $0x46c] sm:$0xf] }
  0xe1   :  { %1963 = vmatpush.bf16.msra.mxu1 %v6086_v26  ;;  %1976 = vmatpush.bf16.msra.mxu2 %v6214_v27  ;;  %v6534_v26 = vor.u32 %v8831_v14, %v6531_v15  ;;  %v6662_v27 = vor.u32 %v8863_v16, %v6659_v18  ;;  %v8847_v10 = vld [vmem:[%s13842_s26 + $0x56c] sm:$0xf]  ;;  %v6595_v13 = vld [vmem:[%s13842_s26 + $0x578] sm:$0xf0] }
  0xe2   :  { %1989 = vmatpush.bf16.msra.mxu3 %v6342_v36  ;;  %v6918_v36 = vor.u32 %v8927_v23, %v6915_v24  ;;  %v8879_v14 = vld [vmem:[%s13842_s26 + $0x66c] sm:$0xf]  ;;  %v6723_v15 = vld [vmem:[%s13842_s26 + $0x678] sm:$0xf0]  ;;  %v6598_v19 = vor.u32 %v8847_v10, %v6595_v13 }
  0xe3   :  { %v8911_v16 = vld [vmem:[%s13842_s26 + $0x76c] sm:$0xf]  ;;  %v6726_v20 = vor.u32 %v8879_v14, %v6723_v15  ;;  %v6835_v31 = vld [vmem:[%s13842_s26 + $0x758] sm:$0xf0]  ;;  %v7017_v15 = vld [vmem:[%s13823_s4 + $0xc0] sm:$0xf] }
  0xe4   :  { %1951 = vmatpush.bf16.msra.mxu0 %v5942_v49  ;;  %v6774_v49 = vor.u32 %v8891_v43, %v6771_v44  ;;  %v8843_v23 = vld [vmem:[%s13842_s26 + $0x54c] sm:$0xf]  ;;  %v6435_v46 = vld [vmem:[%s13842_s26 + $0x438] sm:$0xf0] }
  0xe5   :  { %1964 = vmatpush.bf16.msra.mxu1 %v6070_v52  ;;  %1977 = vmatpush.bf16.msra.mxu2 %v6198_v53  ;;  %v6499_v52 = vld [vmem:[%s13842_s26 + $0x4b8] sm:$0xf0]  ;;  %v8855_v53 = vld [vmem:[%s13842_s26 + $0x5ac] sm:$0xf] }
  0xe6   :  { %1990 = vmatpush.bf16.msra.mxu3 %v6326_v58  ;;  %v8919_v58 = vld [vmem:[%s13842_s26 + $0x7ac] sm:$0xf]  ;;  %v6502_v59 = vor.u32 %v8823_v51, %v6499_v52  ;;  %v6630_v60 = vor.u32 %v8855_v53, %v6627_v55  ;;  %v6563_v51 = vld [vmem:[%s13842_s26 + $0x538] sm:$0xf0] }
  0xe7   :  { %v8907_v30 = vld [vmem:[%s13842_s26 + $0x74c] sm:$0xf]  ;;  %v6691_v53 = vld [vmem:[%s13842_s26 + $0x638] sm:$0xf0] }
  0xe8   :  { %1952 = vmatpush.bf16.msra.mxu0 %v5926_v0  ;;  %v8883_v0 = vld [vmem:[%s13842_s26 + $0x68c] sm:$0xf]  ;;  %v6819_v55 = vld [vmem:[%s13842_s26 + $0x738] sm:$0xf0] }
  0xe9   :  { %1965 = vmatpush.bf16.msra.mxu1 %v6054_v3  ;;  %1978 = vmatpush.bf16.msra.mxu2 %v6182_v4  ;;  %v6867_v3 = vld [vmem:[%s13842_s26 + $0x798] sm:$0xf0]  ;;  %v6486_v4 = vor.u32 %v8819_v62, %v6483_v63  ;;  %v6742_v7 = vor.u32 %v8883_v0, %v6739_v1  ;;  %v8807_v45 = vld [vmem:[%s13842_s26 + $0x42c] sm:$0xf] }
  0xea   :  { %1991 = vmatpush.bf16.msra.mxu3 %v6310_v9  ;;  %v6467_v9 = vld [vmem:[%s13842_s26 + $0x478] sm:$0xf0]  ;;  %v6870_v12 = vor.u32 %v8915_v2, %v6867_v3  ;;  %v8871_v52 = vld [vmem:[%s13842_s26 + $0x62c] sm:$0xf]  ;;  %v6438_v57 = vor.u32 %v8807_v45, %v6435_v46  ;;  %v7033_v2 = vld [vmem:[%s13823_s4 + $0xe0] sm:$0xf] }
  0xeb   :  { %v6470_v18 = vor.u32 %v8815_v8, %v6467_v9  ;;  %v6547_v35 = vld [vmem:[%s13842_s26 + $0x518] sm:$0xf0]  ;;  %v8960_v3 = vld [vmem:[%s13823_s4 + $0xec] sm:$0xf0] }
  0xec   :  { %1953 = vmatpush.bf16.msra.mxu0 %v5910_v17  ;;  %v10954_v5 = vpop.f32.mrf.mxu0  ;;  %v6851_v17 = vld [vmem:[%s13842_s26 + $0x778] sm:$0xf0]  ;;  %v8992_v8 = vld [vmem:[%s13823_s4 + $0x1ec] sm:$0xf0]  ;;  %v7034_v13 = vor.u32 %v8960_v3, %v7033_v2 }
  0xed   :  { %1966 = vmatpush.bf16.msra.mxu1 %v6038_v21  ;;  %1979 = vmatpush.bf16.msra.mxu2 %v6166_v22  ;;  %v8811_v21 = vld [vmem:[%s13842_s26 + $0x44c] sm:$0xf]  ;;  %v6451_v22 = vld [vmem:[%s13842_s26 + $0x458] sm:$0xf0]  ;;  %v8976_v45 = vld [vmem:[%s13823_s4 + $0x16c] sm:$0xf0] }
  0xee   :  { %1992 = vmatpush.bf16.msra.mxu3 %v6294_v25  ;;  %v6854_v25 = vor.u32 %v8911_v16, %v6851_v17  ;;  %v6803_v1 = vld [vmem:[%s13842_s26 + $0x718] sm:$0xf0]  ;;  %v8956_v16 = vld [vmem:[%s13823_s4 + $0xcc] sm:$0xf0]  ;;  %v7145_v17 = vld [vmem:[%s13823_s4 + $0x1c0] sm:$0xf] }
  0xef   :  { %1954 = vmatmul.bf16.vlgmr.msra.gmra.mxu0 %v9782_v34  ;;  %v8851_v34 = vld [vmem:[%s13842_s26 + $0x58c] sm:$0xf]  ;;  %v10965_v11 = vpop.f32.mrf.mxu1  ;;  %v8932_v2 = vld [vmem:[%s13823_s4 + $0xc] sm:$0xf0] }
  0xf0   :  { %1998 = vmatpush.bf16.msrb.mxu0 %v6534_v26  ;;  %1980 = vmatmul.bf16.vlgmr.msra.gmra.mxu2 %v9780_v33  ;;  %v6883_v33 = vld [vmem:[%s13842_s26 + $0x7b8] sm:$0xf0] }
  0xf1   :  { %2011 = vmatpush.bf16.msrb.mxu1 %v6662_v27  ;;  %2024 = vmatpush.bf16.msrb.mxu2 %v6790_v28  ;;  %v6579_v26 = vld [vmem:[%s13842_s26 + $0x558] sm:$0xf0]  ;;  %v8875_v27 = vld [vmem:[%s13842_s26 + $0x64c] sm:$0xf] }
  0xf2   :  { %2037 = vmatpush.bf16.msrb.mxu3 %v6918_v36  ;;  %1967 = vmatmul.bf16.vlgmr.msra.gmra.mxu1 %v9795_v42  ;;  %v6611_v42 = vld [vmem:[%s13842_s26 + $0x598] sm:$0xf0]  ;;  %v6454_v36 = vor.u32 %v8811_v21, %v6451_v22  ;;  %v6582_v43 = vor.u32 %v8843_v23, %v6579_v26  ;;  %v7001_v21 = vld [vmem:[%s13823_s4 + $0xa0] sm:$0xf]  ;;  %v8952_v22 = vld [vmem:[%s13823_s4 + $0xac] sm:$0xf0] }
  0xf3   :  { %1993 = vmatmul.bf16.vlgmr.msra.gmra.mxu3 %v9793_v41  ;;  %v6886_v41 = vor.u32 %v8919_v58, %v6883_v33  ;;  %v6614_v6 = vor.u32 %v8851_v34, %v6611_v42  ;;  %v10991_v24 = vpop.f32.mrf.mxu2  ;;  %v6707_v28 = vld [vmem:[%s13842_s26 + $0x658] sm:$0xf0]  ;;  %v8803_v58 = vld [vmem:[%s13842_s26 + $0x40c] sm:$0xf]  ;;  %v7129_v23 = vld [vmem:[%s13823_s4 + $0x1a0] sm:$0xf] }
  0xf4   :  { %1999 = vmatpush.bf16.msrb.mxu0 %v6518_v47  ;;  %v1749_v39 = vpop.f32.mrf.mxu0  ;;  %v6710_v44 = vor.u32 %v8875_v27, %v6707_v28  ;;  %v8839_v47 = vld [vmem:[%s13842_s26 + $0x52c] sm:$0xf]  ;;  %v7113_v27 = vld [vmem:[%s13823_s4 + $0x180] sm:$0xf] }
  0xf5   :  { %2012 = vmatpush.bf16.msrb.mxu1 %v6646_v48  ;;  %2025 = vmatpush.bf16.msrb.mxu2 %v6774_v49  ;;  %v6838_v49 = vor.u32 %v8907_v30, %v6835_v31  ;;  %v6566_v33 = vor.u32 %v8839_v47, %v6563_v51  ;;  %v8867_v34 = vld [vmem:[%s13842_s26 + $0x60c] sm:$0xf]  ;;  %v6969_v31 = vld [vmem:[%s13823_s4 + $0x60] sm:$0xf]  ;;  %v8940_v51 = vld [vmem:[%s13823_s4 + $0x4c] sm:$0xf0] }
  0xf6   :  { %2038 = vmatpush.bf16.msrb.mxu3 %v6902_v54  ;;  %v11002_v29 = vpop.f32.mrf.mxu3  ;;  %v8903_v54 = vld [vmem:[%s13842_s26 + $0x72c] sm:$0xf] }
  0xf7   :  { %v1762_v48 = vpop.f32.mrf.mxu1  ;;  %v6822_v63 = vor.u32 %v8903_v54, %v6819_v55  ;;  %v8899_v42 = vld [vmem:[%s13842_s26 + $0x70c] sm:$0xf]  ;;  %v8972_v54 = vld [vmem:[%s13823_s4 + $0x14c] sm:$0xf0] }
  0xf8   :  { %2000 = vmatpush.bf16.msrb.mxu0 %v6502_v59  ;;  %v6694_v59 = vor.u32 %v8871_v52, %v6691_v53  ;;  %v7081_v53 = vld [vmem:[%s13823_s4 + $0x140] sm:$0xf] }
  0xf9   :  { %2013 = vmatpush.bf16.msrb.mxu1 %v6630_v60  ;;  %2026 = vmatpush.bf16.msrb.mxu2 %v6758_v61  ;;  %v6419_v60 = vld [vmem:[%s13842_s26 + $0x418] sm:$0xf0]  ;;  %v8835_v61 = vld [vmem:[%s13842_s26 + $0x50c] sm:$0xf] }
  0xfa   :  { %2039 = vmatpush.bf16.msrb.mxu3 %v6886_v41  ;;  %v6675_v41 = vld [vmem:[%s13842_s26 + $0x618] sm:$0xf0]  ;;  %v6550_v9 = vor.u32 %v8835_v61, %v6547_v35  ;;  %v7289_v35 = vld [vmem:[%s13823_s4 + $0x2e0] sm:$0xf] }
  0xfb   :  { %v1775_v62 = vpop.f32.mrf.mxu2  ;;  %v6678_v10 = vor.u32 %v8867_v34, %v6675_v41  ;;  %v8968_v34 = vld [vmem:[%s13823_s4 + $0x12c] sm:$0xf0] }
  0xfc   :  { %2001 = vmatpush.bf16.msrb.mxu0 %v6486_v4  ;;  %v1748_v4 = vadd.f32 %v10954_v5, %v347_v56  ;;  %v9024_v62 = vld [vmem:[%s13823_s4 + $0x2ec] sm:$0xf0] }
  0xfd   :  { %2014 = vmatpush.bf16.msrb.mxu1 %v6614_v6  ;;  %2027 = vmatpush.bf16.msrb.mxu2 %v6742_v7  ;;  %v6422_v6 = vor.u32 %v8803_v58, %v6419_v60  ;;  %v7161_v7 = vld [vmem:[%s13823_s4 + $0x1e0] sm:$0xf]  ;;  %v8936_v60 = vld [vmem:[%s13823_s4 + $0x2c] sm:$0xf0]  ;;  %v7290_v41 = vor.u32 %v9024_v62, %v7289_v35 }
  0xfe   :  { %2040 = vmatpush.bf16.msrb.mxu3 %v6870_v12  ;;  %v1788_v0 = vpop.f32.mrf.mxu3  ;;  %v6806_v12 = vor.u32 %v8899_v42, %v6803_v1  ;;  %v7162_v14 = vor.u32 %v8992_v8, %v7161_v7  ;;  %v1761_v5 = vadd.f32 %v10965_v11, %v1748_v4  ;;  %v7018_v11 = vor.u32 %v8956_v16, %v7017_v15  ;;  %v6937_v58 = vld [vmem:[%s13823_s4 + $0x20] sm:$0xf]  ;;  %v9020_v8 = vld [vmem:[%s13823_s4 + $0x2cc] sm:$0xf0]  ;;  %v7291_v15 = vld [vmem:[%s13823_s4 + $0x2f0] sm:$0xf0] }
  0xff   :  { %v6938_v0 = vor.u32 %v8936_v60, %v6937_v58  ;;  %v6921_v1 = vld [vmem:[%s13823_s4] sm:$0xf]  ;;  %v9006_v58 = vld [vmem:[%s13823_s4 + $0x264] sm:$0xf] }
 0x100   :  { %2002 = vmatpush.bf16.msrb.mxu0 %v6470_v18  ;;  %v8988_v18 = vld [vmem:[%s13823_s4 + $0x1cc] sm:$0xf0]  ;;  %v7049_v4 = vld [vmem:[%s13823_s4 + $0x100] sm:$0xf] }
 0x101   :  { %2015 = vmatpush.bf16.msrb.mxu1 %v6598_v19  ;;  %2028 = vmatpush.bf16.msrb.mxu2 %v6726_v20  ;;  %v7146_v19 = vor.u32 %v8988_v18, %v7145_v17  ;;  %v1774_v20 = vadd.f32 %v10991_v24, %v1761_v5  ;;  %v7002_v24 = vor.u32 %v8952_v22, %v7001_v21  ;;  %v7273_v7 = vld [vmem:[%s13823_s4 + $0x2c0] sm:$0xf]  ;;  %v9022_v5 = vld [vmem:[%s13823_s4 + $0x2e4] sm:$0xf]  ;;  %v2050_v18 = vmax.f32 %v10804_v50, 0.0 }
 0x102   :  { %2041 = vmatpush.bf16.msrb.mxu3 %v6854_v25  ;;  %v6922_v17 = vor.u32 %v8932_v2, %v6921_v1  ;;  %v7147_v21 = vld [vmem:[%s13823_s4 + $0x1d0] sm:$0xf0]  ;;  %v7294_v22 = vor.u32 %v9022_v5, %v7291_v15  ;;  %v7209_v60 = vld [vmem:[%s13823_s4 + $0x240] sm:$0xf] }
 0x103   :  { %v1787_v25 = vadd.f32 %v11002_v29, %v1774_v20  ;;  %v8986_v20 = vld [vmem:[%s13823_s4 + $0x1c4] sm:$0xf]  ;;  %v7275_v50 = vld [vmem:[%s13823_s4 + $0x2d0] sm:$0xf0]  ;;  %v7193_v2 = vld [vmem:[%s13823_s4 + $0x220] sm:$0xf] }
 0x104   :  { %2003 = vmatpush.bf16.msrb.mxu0 %v6454_v36  ;;  %v8944_v36 = vld [vmem:[%s13823_s4 + $0x6c] sm:$0xf0]  ;;  %v7211_v1 = vld [vmem:[%s13823_s4 + $0x250] sm:$0xf0]  ;;  %v7177_v15 = vld [vmem:[%s13823_s4 + $0x200] sm:$0xf] }
 0x105   :  { %2016 = vmatpush.bf16.msrb.mxu1 %v6582_v43  ;;  %2029 = vmatpush.bf16.msrb.mxu2 %v6710_v44  ;;  %v7097_v44 = vld [vmem:[%s13823_s4 + $0x160] sm:$0xf]  ;;  %v6970_v46 = vor.u32 %v8944_v36, %v6969_v31  ;;  %v9014_v31 = vld [vmem:[%s13823_s4 + $0x2a4] sm:$0xf]  ;;  %v7259_v36 = vld [vmem:[%s13823_s4 + $0x2b0] sm:$0xf0] }
 0x106   :  { %2042 = vmatpush.bf16.msrb.mxu3 %v6838_v49  ;;  %v7098_v48 = vor.u32 %v8976_v45, %v7097_v44  ;;  %v6953_v49 = vld [vmem:[%s13823_s4 + $0x40] sm:$0xf]  ;;  %v8978_v44 = vld [vmem:[%s13823_s4 + $0x184] sm:$0xf]  ;;  %v7115_v45 = vld [vmem:[%s13823_s4 + $0x190] sm:$0xf0] }
 0x107   :  { %v6954_v56 = vor.u32 %v8940_v51, %v6953_v49  ;;  %v9010_v49 = vld [vmem:[%s13823_s4 + $0x284] sm:$0xf]  ;;  %v7243_v51 = vld [vmem:[%s13823_s4 + $0x290] sm:$0xf0] }
 0x108   :  { %2004 = vmatpush.bf16.msrb.mxu0 %v6438_v57  ;;  %v7195_v5 = vld [vmem:[%s13823_s4 + $0x230] sm:$0xf0] }
 0x109   :  { %2017 = vmatpush.bf16.msrb.mxu1 %v6566_v33  ;;  %2030 = vmatpush.bf16.msrb.mxu2 %v6694_v59  ;;  %v7082_v59 = vor.u32 %v8972_v54, %v7081_v53  ;;  %v7118_v53 = vor.u32 %v8978_v44, %v7115_v45  ;;  %v8974_v54 = vld [vmem:[%s13823_s4 + $0x164] sm:$0xf]  ;;  %v9017_v44 = vld [vmem:[%s13823_s4 + $0x2b4] sm:$0xf0] }
 0x10a   :  { %2043 = vmatpush.bf16.msrb.mxu3 %v6822_v63  ;;  %v7065_v63 = vld [vmem:[%s13823_s4 + $0x120] sm:$0xf] }
 0x10b   :  { %v7066_v3 = vor.u32 %v8968_v34, %v7065_v63  ;;  %v8970_v63 = vld [vmem:[%s13823_s4 + $0x144] sm:$0xf]  ;;  %v7083_v34 = vld [vmem:[%s13823_s4 + $0x150] sm:$0xf0] }
 0x10c   :  { %2005 = vmatpush.bf16.msrb.mxu0 %v6422_v6  ;;  %v1799_v29 = vpop.f32.mrf.mxu0 }
 0x10d   :  { %2018 = vmatpush.bf16.msrb.mxu1 %v6550_v9  ;;  %2031 = vmatpush.bf16.msrb.mxu2 %v6678_v10  ;;  %v1800_v39 = vadd.f32 %v1799_v29, %v1787_v25  ;;  %v8964_v9 = vld [vmem:[%s13823_s4 + $0x10c] sm:$0xf0]  ;;  %v8990_v10 = vld [vmem:[%s13823_s4 + $0x1e4] sm:$0xf]  ;;  %v7241_v29 = vld [vmem:[%s13823_s4 + $0x280] sm:$0xf] }
 0x10e   :  { %2044 = vmatpush.bf16.msrb.mxu3 %v6806_v12  ;;  %v7163_v12 = vld [vmem:[%s13823_s4 + $0x1f0] sm:$0xf0] }
 0x10f   :  { %2006 = vmatmul.bf16.vlgmr.msrb.gmra.mxu0 %v9908_v37  ;;  %v8984_v37 = vld [vmem:[%s13823_s4 + $0x1ac] sm:$0xf0]  ;;  %v1812_v43 = vpop.f32.mrf.mxu1 }
 0x110   :  { %2673 = vmatpush.bf16.msra.mxu0 %v7034_v13  ;;  %2019 = vmatmul.bf16.vlgmr.msrb.gmra.mxu1 %v9912_v40  ;;  %v7130_v26 = vor.u32 %v8984_v37, %v7129_v23  ;;  %v8948_v40 = vld [vmem:[%s13823_s4 + $0x8c] sm:$0xf0]  ;;  %v1813_v47 = vadd.f32 %v1812_v43, %v1800_v39  ;;  %v9018_v23 = vld [vmem:[%s13823_s4 + $0x2c4] sm:$0xf]  ;;  %v7257_v37 = vld [vmem:[%s13823_s4 + $0x2a0] sm:$0xf] }
 0x111   :  { %2686 = vmatpush.bf16.msra.mxu1 %v7162_v14  ;;  %2032 = vmatmul.bf16.vlgmr.msrb.gmra.mxu2 %v9900_v32  ;;  %v6985_v32 = vld [vmem:[%s13823_s4 + $0x80] sm:$0xf]  ;;  %v7274_v14 = vor.u32 %v9020_v8, %v7273_v7  ;;  %v7086_v7 = vor.u32 %v8970_v63, %v7083_v34  ;;  %v8966_v8 = vld [vmem:[%s13823_s4 + $0x124] sm:$0xf] }
 0x112   :  { %2045 = vmatmul.bf16.vlgmr.msrb.gmra.mxu3 %v9910_v38  ;;  %v8980_v38 = vld [vmem:[%s13823_s4 + $0x18c] sm:$0xf0]  ;;  %v6986_v28 = vor.u32 %v8948_v40, %v6985_v32  ;;  %2699 = vmatpush.bf16.msra.mxu2 %v7290_v41  ;;  %v11208_v32 = vpack.c.bf16 %v2050_v18, %v2050_v18  ;;  %v7150_v40 = vor.u32 %v8986_v20, %v7147_v21  ;;  %v8962_v20 = vld [vmem:[%s13823_s4 + $0x104] sm:$0xf]  ;;  %v7051_v21 = vld [vmem:[%s13823_s4 + $0x110] sm:$0xf0] }
 0x113   :  { %v7114_v30 = vor.u32 %v8980_v38, %v7113_v27  ;;  %v1825_v52 = vpop.f32.mrf.mxu2  ;;  %v8982_v27 = vld [vmem:[%s13823_s4 + $0x1a4] sm:$0xf]  ;;  %v7131_v38 = vld [vmem:[%s13823_s4 + $0x1b0] sm:$0xf0] }
 0x114   :  { %2674 = vmatpush.bf16.msra.mxu0 %v7018_v11  ;;  %v1826_v57 = vadd.f32 %v1825_v52, %v1813_v47  ;;  %v1801_v33 = vpop.f32.mrf.mxu0  ;;  %v7050_v11 = vor.u32 %v8964_v9, %v7049_v4  ;;  %v7134_v43 = vor.u32 %v8982_v27, %v7131_v38  ;;  %v7225_v47 = vld [vmem:[%s13823_s4 + $0x260] sm:$0xf]  ;;  %v7067_v9 = vld [vmem:[%s13823_s4 + $0x130] sm:$0xf0]  ;;  %v7054_v38 = vor.u32 %v8962_v20, %v7051_v21  ;;  %v8958_v34 = vld [vmem:[%s13823_s4 + $0xe4] sm:$0xf] }
 0x115   :  { %2687 = vmatpush.bf16.msra.mxu1 %v7146_v19  ;;  %v7166_v19 = vor.u32 %v8990_v10, %v7163_v12  ;;  %v7070_v18 = vor.u32 %v8966_v8, %v7067_v9  ;;  %v2154_v63 = vld [vmem:[%s13823_s4 + $0x300] sm:$0xff]  ;;  %v7019_v20 = vld [vmem:[%s13823_s4 + $0xd0] sm:$0xf0] }
 0x116   :  { %v1838_v55 = vpop.f32.mrf.mxu3  ;;  %2700 = vmatpush.bf16.msra.mxu2 %v7274_v14 }
 0x117   :  { %v1814_v61 = vpop.f32.mrf.mxu1  ;;  %v1839_v42 = vadd.f32 %v1838_v55, %v1826_v57  ;;  %v7099_v55 = vld [vmem:[%s13823_s4 + $0x170] sm:$0xf0]  ;;  %v7246_v57 = vor.u32 %v9010_v49, %v7243_v51 }
 0x118   :  { %2675 = vmatpush.bf16.msra.mxu0 %v7002_v24  ;;  %v9016_v24 = vld [vmem:[%s13823_s4 + $0x2ac] sm:$0xf0]  ;;  %v7102_v62 = vor.u32 %v8974_v54, %v7099_v55 }
 0x119   :  { %2688 = vmatpush.bf16.msra.mxu1 %v7130_v26  ;;  %v2051_v16 = vmax.f32 %v1839_v42, 0.0  ;;  %v7258_v26 = vor.u32 %v9016_v24, %v7257_v37  ;;  %v9004_v61 = vld [vmem:[%s13823_s4 + $0x24c] sm:$0xf0]  ;;  %v9002_v42 = vld [vmem:[%s13823_s4 + $0x244] sm:$0xf] }
 0x11a   :  { %v7210_v35 = vor.u32 %v9004_v61, %v7209_v60  ;;  %v7214_v12 = vor.u32 %v9002_v42, %v7211_v1  ;;  %v8994_v24 = vld [vmem:[%s13823_s4 + $0x204] sm:$0xf]  ;;  %v7201_v42 = vld [vmem:[%s13823_s4 + $0x228] sm:$0xf]  ;;  %v2456_v1 = vunpack.c.l.b16 %v2154_v63 }
 0x11b   :  { %v1827_v6 = vpop.f32.mrf.mxu2  ;;  %v11206_v25 = vpack.c.bf16 %v2051_v16, %v2051_v16  ;;  %2701 = vmatpush.bf16.msra.mxu2 %v7258_v26  ;;  %v8996_v16 = vld [vmem:[%s13823_s4 + $0x20c] sm:$0xf0]  ;;  %v7179_v26 = vld [vmem:[%s13823_s4 + $0x210] sm:$0xf0] }
 0x11c   :  { %2676 = vmatpush.bf16.msra.mxu0 %v6986_v28  ;;  %v7278_v28 = vor.u32 %v9018_v23, %v7275_v50  ;;  %v9025_v50 = vld [vmem:[%s13823_s4 + $0x2f4] sm:$0xf0]  ;;  %v2556_v9 = vpack.c.b16 %v2456_v1, %v2456_v1 }
 0x11d   :  { %2689 = vmatpush.bf16.msra.mxu1 %v7114_v30  ;;  %v9012_v30 = vld [vmem:[%s13823_s4 + $0x28c] sm:$0xf0]  ;;  %v8941_v1 = vld [vmem:[%s13823_s4 + $0x54] sm:$0xf0] }
 0x11e   :  { %v1840_v13 = vpop.f32.mrf.mxu3  ;;  %v7242_v39 = vor.u32 %v9012_v30, %v7241_v29  ;;  %v7182_v29 = vor.u32 %v8994_v24, %v7179_v26  ;;  %v7281_v30 = vld [vmem:[%s13823_s4 + $0x2c8] sm:$0xf] }
 0x11f   :  { %v8998_v13 = vld [vmem:[%s13823_s4 + $0x224] sm:$0xf] }
 0x120   :  { %2677 = vmatpush.bf16.msra.mxu0 %v6970_v46  ;;  %v7262_v46 = vor.u32 %v9014_v31, %v7259_v36  ;;  %2702 = vmatpush.bf16.msra.mxu2 %v7242_v39  ;;  %v7198_v23 = vor.u32 %v8998_v13, %v7195_v5  ;;  %v9021_v31 = vld [vmem:[%s13823_s4 + $0x2d4] sm:$0xf0]  ;;  %v7185_v5 = vld [vmem:[%s13823_s4 + $0x208] sm:$0xf] }
 0x121   :  { %2690 = vmatpush.bf16.msra.mxu1 %v7098_v48  ;;  %v9008_v48 = vld [vmem:[%s13823_s4 + $0x26c] sm:$0xf0]  ;;  %v7282_v39 = vor.u32 %v9021_v31, %v7281_v30  ;;  %v8953_v30 = vld [vmem:[%s13823_s4 + $0xb4] sm:$0xf0] }
 0x122   :  { %v7226_v52 = vor.u32 %v9008_v48, %v7225_v47  ;;  %v7249_v47 = vld [vmem:[%s13823_s4 + $0x288] sm:$0xf]  ;;  %v9013_v48 = vld [vmem:[%s13823_s4 + $0x294] sm:$0xf0] }
 0x123   :  { %v7250_v51 = vor.u32 %v9013_v48, %v7249_v47  ;;  %v8949_v47 = vld [vmem:[%s13823_s4 + $0x94] sm:$0xf0] }
 0x124   :  { %2678 = vmatpush.bf16.msra.mxu0 %v6954_v56  ;;  %2703 = vmatpush.bf16.msra.mxu2 %v7226_v52  ;;  %v7233_v52 = vld [vmem:[%s13823_s4 + $0x268] sm:$0xf] }
 0x125   :  { %2691 = vmatpush.bf16.msra.mxu1 %v7082_v59  ;;  %v7227_v59 = vld [vmem:[%s13823_s4 + $0x270] sm:$0xf0] }
 0x126   :  { %v7230_v41 = vor.u32 %v9006_v58, %v7227_v59  ;;  %v9005_v59 = vld [vmem:[%s13823_s4 + $0x254] sm:$0xf0] }
 0x128   :  { %2679 = vmatpush.bf16.msra.mxu0 %v6938_v0  ;;  %2704 = vmatpush.bf16.msra.mxu2 %v7210_v35 }
 0x129   :  { %2692 = vmatpush.bf16.msra.mxu1 %v7066_v3  ;;  %v9000_v3 = vld [vmem:[%s13823_s4 + $0x22c] sm:$0xf0] }
 0x12a   :  { %v7194_v6 = vor.u32 %v9000_v3, %v7193_v2  ;;  %v2457_v2 = vunpack.c.h.b16 %v2154_v63 }
 0x12c   :  { %2680 = vmatpush.bf16.msra.mxu0 %v6922_v17  ;;  %v1851_v56 = vpop.f32.mrf.mxu0  ;;  %2705 = vmatpush.bf16.msra.mxu2 %v7194_v6  ;;  %v7178_v17 = vor.u32 %v8996_v16, %v7177_v15  ;;  %v7041_v6 = vld [vmem:[%s13823_s4 + $0xe8] sm:$0xf]  ;;  %v8997_v15 = vld [vmem:[%s13823_s4 + $0x214] sm:$0xf0]  ;;  %v2662_v16 = vsel %vm2660_vm0, %v2556_v9, 0 }
 0x12d   :  { %2693 = vmatpush.bf16.msra.mxu1 %v7050_v11  ;;  %v11305_v11 = vld [vmem:[%s13822_s3] sm:$0xf]  ;;  %2719 = vmatpush.bf16.msra.mxu3 %v2662_v16  ;;  %v7186_v24 = vor.u32 %v8997_v15, %v7185_v5  ;;  %v6939_v9 = vld [vmem:[%s13823_s4 + $0x30] sm:$0xf0]  ;;  %v8937_v5 = vld [vmem:[%s13823_s4 + $0x34] sm:$0xf0] }
 0x12e   :  { %v8947_v16 = vld [vmem:[%s13823_s4 + $0x8c] sm:$0xf] }
 0x12f   :  { %2681 = vmatmul.bf16.vlgmr.msra.gmra.mxu0 %v11208_v32  ;;  %v1864_v33 = vpop.f32.mrf.mxu1 }
 0x130   :  { %2738 = vmatpush.bf16.msrb.mxu0 %v7166_v19  ;;  %2694 = vmatmul.bf16.vlgmr.msra.gmra.mxu1 %v11206_v25  ;;  %v348_v19 = vperm.slane %v11305_v11, 2 }
 0x131   :  { %2751 = vmatpush.bf16.msrb.mxu1 %v7294_v22  ;;  %v7297_v22 = vld [vmem:[%s13823_s4 + $0x2e8] sm:$0xf]  ;;  %2706 = vmatpush.bf16.msra.mxu2 %v7178_v17 }
 0x132   :  { %v1852_v27 = vadd.f32 %v1851_v56, %v348_v19  ;;  %v8954_v19 = vld [vmem:[%s13823_s4 + $0xc4] sm:$0xf] }
 0x133   :  { %v1877_v0 = vpop.f32.mrf.mxu2 }
 0x134   :  { %2739 = vmatpush.bf16.msrb.mxu0 %v7150_v40  ;;  %v1853_v10 = vpop.f32.mrf.mxu0  ;;  %v1865_v36 = vadd.f32 %v1864_v33, %v1852_v27  ;;  %v7217_v33 = vld [vmem:[%s13823_s4 + $0x248] sm:$0xf]  ;;  %v7003_v27 = vld [vmem:[%s13823_s4 + $0xb0] sm:$0xf0] }
 0x135   :  { %2752 = vmatpush.bf16.msrb.mxu1 %v7278_v28  ;;  %v7298_v28 = vor.u32 %v9025_v50, %v7297_v22  ;;  %v7025_v22 = vld [vmem:[%s13823_s4 + $0xc8] sm:$0xf] }
 0x136   :  { %v1890_v4 = vpop.f32.mrf.mxu3  ;;  %v1878_v45 = vadd.f32 %v1877_v0, %v1865_v36  ;;  %v9001_v0 = vld [vmem:[%s13823_s4 + $0x234] sm:$0xf0] }
 0x137   :  { %v1866_v14 = vpop.f32.mrf.mxu1 }
 0x138   :  { %2740 = vmatpush.bf16.msrb.mxu0 %v7134_v43  ;;  %v7265_v43 = vld [vmem:[%s13823_s4 + $0x2a8] sm:$0xf]  ;;  %v1891_v49 = vadd.f32 %v1890_v4, %v1878_v45  ;;  %v7202_v14 = vor.u32 %v9001_v0, %v7201_v42 }
 0x139   :  { %2753 = vmatpush.bf16.msrb.mxu1 %v7262_v46  ;;  %v7266_v46 = vor.u32 %v9017_v44, %v7265_v43  ;;  %v6987_v43 = vld [vmem:[%s13823_s4 + $0x90] sm:$0xf0]  ;;  %v6961_v0 = vld [vmem:[%s13823_s4 + $0x48] sm:$0xf] }
 0x13b   :  { %v1879_v37 = vpop.f32.mrf.mxu2 }
 0x13c   :  { %2741 = vmatpush.bf16.msrb.mxu0 %v7118_v53  ;;  %v9009_v53 = vld [vmem:[%s13823_s4 + $0x274] sm:$0xf0]  ;;  %v7022_v37 = vor.u32 %v8954_v19, %v7019_v20 }
 0x13d   :  { %2754 = vmatpush.bf16.msrb.mxu1 %v7246_v57  ;;  %v7234_v57 = vor.u32 %v9009_v53, %v7233_v52  ;;  %v8959_v52 = vld [vmem:[%s13823_s4 + $0xec] sm:$0xf]  ;;  %v7043_v53 = vld [vmem:[%s13823_s4 + $0xf8] sm:$0xf0] }
 0x13e   :  { %v1892_v40 = vpop.f32.mrf.mxu3 }
 0x13f   :  { %v8950_v40 = vld [vmem:[%s13823_s4 + $0xa4] sm:$0xf] }
 0x140   :  { %2742 = vmatpush.bf16.msrb.mxu0 %v7102_v62  ;;  %v7218_v62 = vor.u32 %v9005_v59, %v7217_v33  ;;  %v7006_v36 = vor.u32 %v8950_v40, %v7003_v27  ;;  %v8945_v33 = vld [vmem:[%s13823_s4 + $0x74] sm:$0xf0] }
 0x141   :  { %2755 = vmatpush.bf16.msrb.mxu1 %v7230_v41  ;;  %v7035_v41 = vld [vmem:[%s13823_s4 + $0xf0] sm:$0xf0]  ;;  %v8933_v40 = vld [vmem:[%s13823_s4 + $0x14] sm:$0xf0] }
 0x142   :  { %v7038_v10 = vor.u32 %v8958_v34, %v7035_v41  ;;  %v8938_v34 = vld [vmem:[%s13823_s4 + $0x44] sm:$0xf]  ;;  %v6955_v41 = vld [vmem:[%s13823_s4 + $0x50] sm:$0xf0] }
 0x143   :  { %v6958_v42 = vor.u32 %v8938_v34, %v6955_v41  ;;  %v8993_v34 = vld [vmem:[%s13823_s4 + $0x1f4] sm:$0xf0]  ;;  %v8991_v41 = vld [vmem:[%s13823_s4 + $0x1ec] sm:$0xf] }
 0x144   :  { %2743 = vmatpush.bf16.msrb.mxu0 %v7086_v7  ;;  %v8961_v7 = vld [vmem:[%s13823_s4 + $0xf4] sm:$0xf0]  ;;  %2725 = vmatpush.bf16.msrb.mxu3 %v7038_v10 }
 0x145   :  { %2756 = vmatpush.bf16.msrb.mxu1 %v7214_v12  ;;  %v2557_v12 = vpack.c.b16 %v2457_v2, %v2457_v2  ;;  %v6962_v2 = vor.u32 %v8941_v1, %v6961_v0 }
 0x147   :  { %v2665_v17 = vsel %vm2660_vm0, %v2557_v12, 0 }
 0x148   :  { %2744 = vmatpush.bf16.msrb.mxu0 %v7070_v18  ;;  %v7042_v18 = vor.u32 %v8961_v7, %v7041_v6  ;;  %2771 = vmatpush.bf16.msrb.mxu2 %v2665_v17  ;;  %v6995_v17 = vld [vmem:[%s13823_s4 + $0x98] sm:$0xf0] }
 0x149   :  { %2757 = vmatpush.bf16.msrb.mxu1 %v7198_v23  ;;  %v8957_v23 = vld [vmem:[%s13823_s4 + $0xd4] sm:$0xf0]  ;;  %2726 = vmatpush.bf16.msrb.mxu3 %v7022_v37  ;;  %v6998_v20 = vor.u32 %v8947_v16, %v6995_v17  ;;  %v6923_v37 = vld [vmem:[%s13823_s4 + $0x10] sm:$0xf0]  ;;  %v7139_v16 = vld [vmem:[%s13823_s4 + $0x1b8] sm:$0xf0] }
 0x14c   :  { %2745 = vmatpush.bf16.msrb.mxu0 %v7054_v38  ;;  %v1903_v54 = vpop.f32.mrf.mxu0  ;;  %v7026_v38 = vor.u32 %v8957_v23, %v7025_v22 }
 0x14d   :  { %2758 = vmatpush.bf16.msrb.mxu1 %v7182_v29  ;;  %v1904_v55 = vadd.f32 %v1903_v54, %v1891_v49  ;;  %v7009_v29 = vld [vmem:[%s13823_s4 + $0xa8] sm:$0xf]  ;;  %2727 = vmatpush.bf16.msrb.mxu3 %v7006_v36  ;;  %v7046_v54 = vor.u32 %v8959_v52, %v7043_v53  ;;  %v6931_v52 = vld [vmem:[%s13823_s4 + $0x18] sm:$0xf0] }
 0x14e   :  { %v7010_v45 = vor.u32 %v8953_v30, %v7009_v29  ;;  %v6979_v29 = vld [vmem:[%s13823_s4 + $0x78] sm:$0xf0] }
 0x14f   :  { %2746 = vmatmul.bf16.vlgmr.msrb.gmra.mxu0 %v11206_v25  ;;  %v1916_v56 = vpop.f32.mrf.mxu1 }
 0x150   :  { %2803 = vmatpush.bf16.msra.mxu0 %v7298_v28  ;;  %v1917_v58 = vadd.f32 %v1916_v56, %v1904_v55  ;;  %v11411_v28 = vld [vmem:[%s13823_s4 + $0x308] sm:$0xff]  ;;  %v8942_v55 = vld [vmem:[%s13823_s4 + $0x64] sm:$0xf]  ;;  %v6971_v56 = vld [vmem:[%s13823_s4 + $0x70] sm:$0xf0] }
 0x151   :  { %v2458_v31 = vunpack.c.l.b16 %v11411_v28  ;;  %v2459_v10 = vunpack.c.h.b16 %v11411_v28  ;;  %v8943_v28 = vld [vmem:[%s13823_s4 + $0x6c] sm:$0xf] }
 0x153   :  { %v1929_v60 = vpop.f32.mrf.mxu2  ;;  %v2558_v44 = vpack.c.b16 %v2458_v31, %v2458_v31  ;;  %v6982_v31 = vor.u32 %v8943_v28, %v6979_v29  ;;  %v7107_v28 = vld [vmem:[%s13823_s4 + $0x178] sm:$0xf0] }
 0x154   :  { %2804 = vmatpush.bf16.msra.mxu0 %v7282_v39  ;;  %v1930_v61 = vadd.f32 %v1929_v60, %v1917_v58  ;;  %v1905_v4 = vpop.f32.mrf.mxu0  ;;  %v8946_v39 = vld [vmem:[%s13823_s4 + $0x84] sm:$0xf]  ;;  %v6977_v58 = vld [vmem:[%s13823_s4 + $0x68] sm:$0xf]  ;;  %v8955_v60 = vld [vmem:[%s13823_s4 + $0xcc] sm:$0xf] }
 0x155   :  { %v2668_v48 = vsel %vm2660_vm0, %v2558_v44, 0  ;;  %v6990_v49 = vor.u32 %v8946_v39, %v6987_v43  ;;  %v6978_v59 = vor.u32 %v8945_v33, %v6977_v58  ;;  %v7011_v4 = vld [vmem:[%s13823_s4 + $0xb8] sm:$0xf0]  ;;  %v8939_v43 = vld [vmem:[%s13823_s4 + $0x4c] sm:$0xf] }
 0x156   :  { %v1942_v35 = vpop.f32.mrf.mxu3  ;;  %2823 = vmatpush.bf16.msra.mxu1 %v2668_v48 }
 0x157   :  { %v1943_v3 = vadd.f32 %v1942_v35, %v1930_v61  ;;  %v1918_v8 = vpop.f32.mrf.mxu1  ;;  %2728 = vmatpush.bf16.msrb.mxu3 %v6990_v49  ;;  %v7027_v61 = vld [vmem:[%s13823_s4 + $0xd8] sm:$0xf0] }
 0x158   :  { %2805 = vmatpush.bf16.msra.mxu0 %v7266_v46  ;;  %v6993_v46 = vld [vmem:[%s13823_s4 + $0x88] sm:$0xf]  ;;  %v8934_v8 = vld [vmem:[%s13823_s4 + $0x24] sm:$0xf] }
 0x159   :  { %v2052_v13 = vmax.f32 %v1943_v3, 0.0  ;;  %v8951_v3 = vld [vmem:[%s13823_s4 + $0xac] sm:$0xf] }
 0x15a   :  { %v7014_v6 = vor.u32 %v8951_v3, %v7011_v4  ;;  %v7153_v4 = vld [vmem:[%s13823_s4 + $0x1c8] sm:$0xf] }
 0x15b   :  { %v11392_v21 = vpack.c.bf16 %v2052_v13, %v2052_v13  ;;  %v1931_v50 = vpop.f32.mrf.mxu2  ;;  %v6942_v13 = vor.u32 %v8934_v8, %v6939_v9  ;;  %v8987_v8 = vld [vmem:[%s13823_s4 + $0x1cc] sm:$0xf]  ;;  %v7155_v9 = vld [vmem:[%s13823_s4 + $0x1d8] sm:$0xf0] }
 0x15c   :  { %2806 = vmatpush.bf16.msra.mxu0 %v7250_v51  ;;  %v6994_v51 = vor.u32 %v8949_v47, %v6993_v46  ;;  %v8930_v50 = vld [vmem:[%s13823_s4 + $0x4] sm:$0xf]  ;;  %v8935_v46 = vld [vmem:[%s13823_s4 + $0x2c] sm:$0xf]  ;;  %v6947_v47 = vld [vmem:[%s13823_s4 + $0x38] sm:$0xf0] }
 0x15d   :  { %2707 = vmatmul.bf16.vlgmr.msra.gmra.mxu2 %v11392_v21  ;;  %2759 = vmatmul.bf16.vlgmr.msrb.gmra.mxu1 %v11392_v21  ;;  %v6950_v48 = vor.u32 %v8935_v46, %v6947_v47 }
 0x15e   :  { %v1944_v26 = vpop.f32.mrf.mxu3  ;;  %2777 = vmatpush.bf16.msra.mxu2 %v7042_v18  ;;  %2829 = vmatpush.bf16.msrb.mxu1 %v7046_v54  ;;  %v2559_v18 = vpack.c.b16 %v2459_v10, %v2459_v10 }
 0x15f   :  { %v6929_v26 = vld [vmem:[%s13823_s4 + $0x8] sm:$0xf] }
 0x160   :  { %2807 = vmatpush.bf16.msra.mxu0 %v7234_v57  ;;  %v6974_v57 = vor.u32 %v8942_v55, %v6971_v56  ;;  %v2671_v23 = vsel %vm2660_vm0, %v2559_v18, 0  ;;  %v6930_v27 = vor.u32 %v8933_v40, %v6929_v26  ;;  %v7105_v26 = vld [vmem:[%s13823_s4 + $0x168] sm:$0xf]  ;;  %v8977_v40 = vld [vmem:[%s13823_s4 + $0x174] sm:$0xf0] }
 0x161   :  { %v7106_v29 = vor.u32 %v8977_v40, %v7105_v26 }
 0x162   :  { %2778 = vmatpush.bf16.msra.mxu2 %v7026_v38  ;;  %2729 = vmatpush.bf16.msrb.mxu3 %v6974_v57  ;;  %v349_v38 = vperm.slane %v11305_v11, 3  ;;  %v6963_v11 = vld [vmem:[%s13823_s4 + $0x58] sm:$0xf0] }
 0x163   :  { %v6966_v44 = vor.u32 %v8939_v43, %v6963_v11 }
 0x164   :  { %2808 = vmatpush.bf16.msra.mxu0 %v7218_v62  ;;  %v7030_v62 = vor.u32 %v8955_v60, %v7027_v61 }
 0x166   :  { %2779 = vmatpush.bf16.msra.mxu2 %v7010_v45  ;;  %2830 = vmatpush.bf16.msrb.mxu1 %v7030_v62 }
 0x167   :  { %2730 = vmatpush.bf16.msrb.mxu3 %v6958_v42  ;;  %v7171_v42 = vld [vmem:[%s13823_s4 + $0x1f8] sm:$0xf0] }
 0x168   :  { %2809 = vmatpush.bf16.msra.mxu0 %v7202_v14  ;;  %v6945_v14 = vld [vmem:[%s13823_s4 + $0x28] sm:$0xf]  ;;  %v7174_v3 = vor.u32 %v8991_v41, %v7171_v42  ;;  %v7283_v41 = vld [vmem:[%s13823_s4 + $0x2d8] sm:$0xf0] }
 0x169   :  { %v6946_v15 = vor.u32 %v8937_v5, %v6945_v14  ;;  %v7137_v14 = vld [vmem:[%s13823_s4 + $0x1a8] sm:$0xf]  ;;  %v8985_v5 = vld [vmem:[%s13823_s4 + $0x1b4] sm:$0xf0] }
 0x16a   :  { %2780 = vmatpush.bf16.msra.mxu2 %v6994_v51  ;;  %2831 = vmatpush.bf16.msrb.mxu1 %v7014_v6  ;;  %v8931_v51 = vld [vmem:[%s13823_s4 + $0xc] sm:$0xf]  ;;  %v8989_v6 = vld [vmem:[%s13823_s4 + $0x1d4] sm:$0xf0]  ;;  %v7138_v17 = vor.u32 %v8985_v5, %v7137_v14  ;;  %v7203_v5 = vld [vmem:[%s13823_s4 + $0x238] sm:$0xf0] }
 0x16b   :  { %2731 = vmatpush.bf16.msrb.mxu3 %v6942_v13  ;;  %v6934_v53 = vor.u32 %v8931_v51, %v6931_v52  ;;  %v7158_v13 = vor.u32 %v8987_v8, %v7155_v9  ;;  %v8969_v51 = vld [vmem:[%s13823_s4 + $0x134] sm:$0xf0]  ;;  %v8967_v52 = vld [vmem:[%s13823_s4 + $0x12c] sm:$0xf] }
 0x16c   :  { %2810 = vmatpush.bf16.msra.mxu0 %v7186_v24  ;;  %v1955_v35 = vpop.f32.mrf.mxu0  ;;  %v6926_v24 = vor.u32 %v8930_v50, %v6923_v37  ;;  %v11588_v50 = vld [vmem:[%s13824_s5] sm:$0xf]  ;;  %v8999_v14 = vld [vmem:[%s13823_s4 + $0x22c] sm:$0xf] }
 0x16d   :  { %v1956_v39 = vadd.f32 %v1955_v35, %v349_v38  ;;  %v8975_v38 = vld [vmem:[%s13823_s4 + $0x16c] sm:$0xf] }
 0x16e   :  { %2781 = vmatpush.bf16.msra.mxu2 %v6978_v59  ;;  %2832 = vmatpush.bf16.msrb.mxu1 %v6998_v20  ;;  %v8981_v20 = vld [vmem:[%s13823_s4 + $0x194] sm:$0xf0] }
 0x16f   :  { %2811 = vmatmul.bf16.vlgmr.msra.gmra.mxu0 %v11392_v21  ;;  %v1968_v63 = vpop.f32.mrf.mxu1  ;;  %2732 = vmatpush.bf16.msrb.mxu3 %v6926_v24 }
 0x170   :  { %2875 = vmatpush.bf16.msrb.mxu0 %v2671_v23  ;;  %v1969_v45 = vadd.f32 %v1968_v63, %v1956_v39  ;;  %v7169_v63 = vld [vmem:[%s13823_s4 + $0x1e8] sm:$0xf]  ;;  %v7123_v23 = vld [vmem:[%s13823_s4 + $0x198] sm:$0xf0]  ;;  %v8973_v39 = vld [vmem:[%s13823_s4 + $0x154] sm:$0xf0] }
 0x171   :  { %v7170_v1 = vor.u32 %v8993_v34, %v7169_v63  ;;  %v9019_v34 = vld [vmem:[%s13823_s4 + $0x2cc] sm:$0xf] }
 0x172   :  { %2782 = vmatpush.bf16.msra.mxu2 %v6962_v2  ;;  %2833 = vmatpush.bf16.msrb.mxu1 %v6982_v31  ;;  %v7110_v31 = vor.u32 %v8975_v38, %v7107_v28  ;;  %v7286_v42 = vor.u32 %v9019_v34, %v7283_v41 }
 0x173   :  { %v1981_v7 = vpop.f32.mrf.mxu2 }
 0x174   :  { %v1957_v19 = vpop.f32.mrf.mxu0  ;;  %v1982_v49 = vadd.f32 %v1981_v7, %v1969_v45  ;;  %v7091_v45 = vld [vmem:[%s13823_s4 + $0x158] sm:$0xf0] }
 0x175   :  { %v7121_v19 = vld [vmem:[%s13823_s4 + $0x188] sm:$0xf] }
 0x176   :  { %v1994_v12 = vpop.f32.mrf.mxu3  ;;  %2783 = vmatpush.bf16.msra.mxu2 %v6946_v15  ;;  %2834 = vmatpush.bf16.msrb.mxu1 %v6966_v44  ;;  %v8983_v15 = vld [vmem:[%s13823_s4 + $0x1ac] sm:$0xf]  ;;  %v7122_v37 = vor.u32 %v8981_v20, %v7121_v19  ;;  %v7187_v20 = vld [vmem:[%s13823_s4 + $0x218] sm:$0xf0] }
 0x177   :  { %v1970_v22 = vpop.f32.mrf.mxu1  ;;  %v1995_v54 = vadd.f32 %v1994_v12, %v1982_v49  ;;  %v7154_v12 = vor.u32 %v8989_v6, %v7153_v4  ;;  %v7142_v18 = vor.u32 %v8983_v15, %v7139_v16  ;;  %v8971_v44 = vld [vmem:[%s13823_s4 + $0x14c] sm:$0xf]  ;;  %v7073_v49 = vld [vmem:[%s13823_s4 + $0x128] sm:$0xf]  ;;  %v7251_v4 = vld [vmem:[%s13823_s4 + $0x298] sm:$0xf0]  ;;  %v7206_v16 = vor.u32 %v8999_v14, %v7203_v5 }
 0x178   :  { %v8979_v22 = vld [vmem:[%s13823_s4 + $0x18c] sm:$0xf]  ;;  %v9033_v15 = vld [vmem:[%s13825_s6 + $0x38] sm:$0xff] }
 0x179   :  { %v7126_v24 = vor.u32 %v8979_v22, %v7123_v23  ;;  %v8995_v19 = vld [vmem:[%s13823_s4 + $0x20c] sm:$0xf] }
 0x17a   :  { %2784 = vmatpush.bf16.msra.mxu2 %v6930_v27  ;;  %2835 = vmatpush.bf16.msrb.mxu1 %v6950_v48  ;;  %v2158_v27 = vperm.slane %v11588_v50, 0  ;;  %v7094_v48 = vor.u32 %v8971_v44, %v7091_v45  ;;  %v7190_v22 = vor.u32 %v8995_v19, %v7187_v20  ;;  %v9031_v23 = vld [vmem:[%s13825_s6 + $0x28] sm:$0xff]  ;;  %v2939_v45 = vld [vmem:[%s13827_s1] sm:$0x3] }
 0x17b   :  { %v1983_v30 = vpop.f32.mrf.mxu2  ;;  %v9039_v44 = vld [vmem:[%s13825_s6 + $0x68] sm:$0xff] }
 0x17e   :  { %v1996_v36 = vpop.f32.mrf.mxu3  ;;  %2836 = vmatpush.bf16.msrb.mxu1 %v6934_v53  ;;  %v7075_v53 = vld [vmem:[%s13823_s4 + $0x138] sm:$0xf0] }
 0x17f   :  { %v7089_v36 = vld [vmem:[%s13823_s4 + $0x148] sm:$0xf] }
 0x180   :  { %v7090_v47 = vor.u32 %v8973_v39, %v7089_v36  ;;  %v9040_v36 = vld [vmem:[%s13825_s6 + $0x70] sm:$0xff]  ;;  %v2941_v39 = vld [vmem:[%s13826_s7] sm:$0x3] }
 0x18c   :  { %v2007_v55 = vpop.f32.mrf.mxu0 }
 0x18d   :  { %v2020_v56 = vpop.f32.mrf.mxu1  ;;  %v2008_v57 = vadd.f32 %v2007_v55, %v1995_v54  ;;  %v7078_v55 = vor.u32 %v8967_v52, %v7075_v53  ;;  %v9048_v52 = vld [vmem:[%s13825_s6 + $0xb0] sm:$0xff] }
 0x18e   :  { %v9036_v53 = vld [vmem:[%s13825_s6 + $0x50] sm:$0xff] }
 0x18f   :  { %v2021_v58 = vadd.f32 %v2020_v56, %v2008_v57  ;;  %v7057_v56 = vld [vmem:[%s13823_s4 + $0x108] sm:$0xf]  ;;  %v8965_v57 = vld [vmem:[%s13823_s4 + $0x114] sm:$0xf0] }
 0x194   :  { %v2033_v33 = vpop.f32.mrf.mxu2  ;;  %v2009_v61 = vpop.f32.mrf.mxu0 }
 0x195   :  { %v2034_v59 = vadd.f32 %v2033_v33, %v2021_v58  ;;  %v2046_v60 = vpop.f32.mrf.mxu3  ;;  %v2022_v35 = vpop.f32.mrf.mxu1  ;;  %v8963_v58 = vld [vmem:[%s13823_s4 + $0x10c] sm:$0xf]  ;;  %v7299_v61 = vld [vmem:[%s13823_s4 + $0x2f8] sm:$0xf0] }
 0x196   :  { %v7058_v35 = vor.u32 %v8965_v57, %v7057_v56  ;;  %v9034_v56 = vld [vmem:[%s13825_s6 + $0x40] sm:$0xff] }
 0x197   :  { %v2047_v62 = vadd.f32 %v2046_v60, %v2034_v59  ;;  %v7059_v59 = vld [vmem:[%s13823_s4 + $0x118] sm:$0xf0]  ;;  %v9023_v60 = vld [vmem:[%s13823_s4 + $0x2ec] sm:$0xf] }
 0x198   :  { %v7302_v63 = vor.u32 %v9023_v60, %v7299_v61 }
 0x199   :  { %v2053_v0 = vmax.f32 %v2047_v62, 0.0  ;;  %v7062_v62 = vor.u32 %v8963_v58, %v7059_v59  ;;  %v9045_v58 = vld [vmem:[%s13825_s6 + $0x98] sm:$0xff] }
 0x19b   :  { %v2057_v2 = vpack.c.bf16 %v2053_v0, %v2053_v0  ;;  %v9015_v0 = vld [vmem:[%s13823_s4 + $0x2ac] sm:$0xf] }
 0x19c   :  { %v2035_v7 = vpop.f32.mrf.mxu2 }
 0x19d   :  { %v2048_v10 = vpop.f32.mrf.mxu3  ;;  %7303 = vmatmul.msk.bf16.vlgmr.msra.gmra.mxu3 %vm2656_vm1, %v2057_v2  ;;  %7304 = vmatmul.msk.bf16.vlgmr.msrb.gmra.mxu2 %vm2656_vm1, %v2057_v2  ;;  %v9007_v7 = vld [vmem:[%s13823_s4 + $0x26c] sm:$0xf] }
 0x19e   :  { %2790 = vmatpush.bf16.msra.mxu3 %v7170_v1  ;;  %7305 = vmatmul.msk.bf16.vlgmr.msra.gmra.mxu1 %vm2656_vm1, %v2057_v2  ;;  %v7267_v1 = vld [vmem:[%s13823_s4 + $0x2b8] sm:$0xf0]  ;;  %v9003_v10 = vld [vmem:[%s13823_s4 + $0x24c] sm:$0xf] }
 0x19f   :  { %7306 = vmatmul.msk.bf16.vlgmr.msrb.gmra.mxu0 %vm2656_vm1, %v2057_v2  ;;  %2842 = vmatpush.bf16.msrb.mxu2 %v7174_v3  ;;  %v7270_v2 = vor.u32 %v9015_v0, %v7267_v1  ;;  %v9011_v3 = vld [vmem:[%s13823_s4 + $0x28c] sm:$0xf] }
 0x1a0   :  { %v7254_v6 = vor.u32 %v9011_v3, %v7251_v4  ;;  %3117 = vmatpush.bf16.msra.mxu1 %v9033_v15  ;;  %v2159_v4 = vperm.slane %v11588_v50, 1 }
 0x1a2   :  { %2791 = vmatpush.bf16.msra.mxu3 %v7154_v12  ;;  %v7219_v12 = vld [vmem:[%s13823_s4 + $0x258] sm:$0xf0] }
 0x1a3   :  { %2843 = vmatpush.bf16.msrb.mxu2 %v7158_v13  ;;  %v7222_v13 = vor.u32 %v9003_v10, %v7219_v12 }
 0x1a6   :  { %2792 = vmatpush.bf16.msra.mxu3 %v7138_v17  ;;  %v9032_v17 = vld [vmem:[%s13825_s6 + $0x30] sm:$0xff] }
 0x1a7   :  { %2844 = vmatpush.bf16.msrb.mxu2 %v7142_v18  ;;  %3118 = vmatpush.bf16.msra.mxu1 %v9032_v17  ;;  %v2160_v17 = vperm.slane %v11588_v50, 2 }
 0x1aa   :  { %2793 = vmatpush.bf16.msra.mxu3 %v7122_v37  ;;  %v9030_v37 = vld [vmem:[%s13825_s6 + $0x20] sm:$0xff] }
 0x1ab   :  { %2845 = vmatpush.bf16.msrb.mxu2 %v7126_v24  ;;  %3119 = vmatpush.bf16.msra.mxu1 %v9031_v23  ;;  %v9029_v24 = vld [vmem:[%s13825_s6 + $0x18] sm:$0xff]  ;;  %v9050_v23 = vld [vmem:[%s13825_s6 + $0xc0] sm:$0xff] }
 0x1ac   :  { %v2682_v30 = vpop.f32.mrf.mxu0 }
 0x1ad   :  { %v2683_v43 = vadd.f32 %v2682_v30, %v2158_v27  ;;  %v2695_v11 = vpop.f32.mrf.mxu1  ;;  %2733 = vmatmul.bf16.vlgmr.msrb.gmra.mxu3 %v11208_v32  ;;  %2785 = vmatmul.bf16.vlgmr.msra.gmra.mxu2 %v11208_v32  ;;  %v9028_v30 = vld [vmem:[%s13825_s6 + $0x10] sm:$0xff] }
 0x1ae   :  { %2794 = vmatpush.bf16.msra.mxu3 %v7106_v29  ;;  %2837 = vmatmul.bf16.vlgmr.msrb.gmra.mxu1 %v11208_v32  ;;  %v7074_v32 = vor.u32 %v8969_v51, %v7073_v49  ;;  %v9049_v49 = vld [vmem:[%s13825_s6 + $0xb8] sm:$0xff] }
 0x1af   :  { %v11617_v46 = vadd.f32 %v2695_v11, %v2683_v43  ;;  %2846 = vmatpush.bf16.msrb.mxu2 %v7110_v31  ;;  %3120 = vmatpush.bf16.msra.mxu1 %v9030_v37  ;;  %v9027_v31 = vld [vmem:[%s13825_s6 + $0x8] sm:$0xff]  ;;  %v9026_v43 = vld [vmem:[%s13825_s6] sm:$0xff]  ;;  %v2948_v11 = vsel %vm2946_vm2, %v2941_v39, 0  ;;  %v9037_v51 = vld [vmem:[%s13825_s6 + $0x58] sm:$0xff] }
 0x1b0   :  { %2957 = vmatpush.bf16.msra.mxu0 %v2948_v11 }
 0x1b2   :  { %2795 = vmatpush.bf16.msra.mxu3 %v7090_v47  ;;  %v2940_v47 = vpack.c.bf16 %v2939_v45, %v2939_v45 }
 0x1b3   :  { %2847 = vmatpush.bf16.msrb.mxu2 %v7094_v48  ;;  %3121 = vmatpush.bf16.msra.mxu1 %v9029_v24  ;;  %v9038_v48 = vld [vmem:[%s13825_s6 + $0x60] sm:$0xff] }
 0x1b4   :  { %v2684_v54 = vpop.f32.mrf.mxu0  ;;  %7307 = vmatmul.msk.bf16.vlgmr.msra.gmra.mxu0 %vm2942_vm3, %v2940_v47 }
 0x1b5   :  { %v2697_v33 = vpop.f32.mrf.mxu1  ;;  %v9035_v54 = vld [vmem:[%s13825_s6 + $0x48] sm:$0xff]  ;;  %3163 = vmatpush.bf16.msrb.mxu0 %v9050_v23  ;;  %v9059_v23 = vld [vmem:[%s13831_s11 + $0x24] sm:$0xf] }
 0x1b6   :  { %2796 = vmatpush.bf16.msra.mxu3 %v7074_v32  ;;  %v9047_v32 = vld [vmem:[%s13825_s6 + $0xa8] sm:$0xff] }
 0x1b7   :  { %2848 = vmatpush.bf16.msrb.mxu2 %v7078_v55  ;;  %3122 = vmatpush.bf16.msra.mxu1 %v9028_v30  ;;  %v9046_v55 = vld [vmem:[%s13825_s6 + $0xa0] sm:$0xff] }
 0x1ba   :  { %2797 = vmatpush.bf16.msra.mxu3 %v7058_v35  ;;  %v9044_v35 = vld [vmem:[%s13825_s6 + $0x90] sm:$0xff] }
 0x1bb   :  { %2849 = vmatpush.bf16.msrb.mxu2 %v7062_v62  ;;  %3123 = vmatpush.bf16.msra.mxu1 %v9027_v31 }
 0x1bd   :  { %2798 = vmatmul.bf16.vlgmr.msra.gmra.mxu3 %v11206_v25 }
 0x1be   :  { %2855 = vmatpush.bf16.msrb.mxu3 %v7302_v63  ;;  %2850 = vmatmul.bf16.vlgmr.msrb.gmra.mxu2 %v11206_v25  ;;  %v7235_v25 = vld [vmem:[%s13823_s4 + $0x278] sm:$0xf0] }
 0x1bf   :  { %v7238_v8 = vor.u32 %v9007_v7, %v7235_v25  ;;  %3124 = vmatpush.bf16.msra.mxu1 %v9026_v43 }
 0x1c2   :  { %2856 = vmatpush.bf16.msrb.mxu3 %v7286_v42  ;;  %v9043_v42 = vld [vmem:[%s13825_s6 + $0x88] sm:$0xff] }
 0x1c6   :  { %2857 = vmatpush.bf16.msrb.mxu3 %v7270_v2  ;;  %v9042_v2 = vld [vmem:[%s13825_s6 + $0x80] sm:$0xff] }
 0x1ca   :  { %2858 = vmatpush.bf16.msrb.mxu3 %v7254_v6 }
 0x1cc   :  { %v11676_v9 = vpop.f32.mrf.mxu0 }
 0x1ce   :  { %2859 = vmatpush.bf16.msrb.mxu3 %v7238_v8 }
 0x1d2   :  { %2860 = vmatpush.bf16.msrb.mxu3 %v7222_v13 }
 0x1d4   :  { %v2749_v18 = vpop.f32.mrf.mxu0 }
 0x1d6   :  { %2861 = vmatpush.bf16.msrb.mxu3 %v7206_v16 }
 0x1da   :  { %2862 = vmatpush.bf16.msrb.mxu3 %v7190_v22  ;;  %v11712_v26 = vpop.f32.mrf.mxu1 }
 0x1dd   :  { %2863 = vmatmul.bf16.vlgmr.msrb.gmra.mxu3 %v11392_v21  ;;  %v9041_v21 = vld [vmem:[%s13825_s6 + $0x78] sm:$0xff] }
 0x1de   :  { %3130 = vmatpush.bf16.msra.mxu2 %v9041_v21  ;;  %3143 = vmatpush.bf16.msra.mxu3 %v9049_v49 }
 0x1e0   :  { %v2708_v40 = vpop.f32.mrf.mxu2 }
 0x1e1   :  { %v2709_v59 = vadd.f32 %v2708_v40, %v11617_v46 }
 0x1e2   :  { %v2762_v38 = vpop.f32.mrf.mxu1  ;;  %3131 = vmatpush.bf16.msra.mxu2 %v9040_v36  ;;  %3144 = vmatpush.bf16.msra.mxu3 %v9048_v52 }
 0x1e6   :  { %3132 = vmatpush.bf16.msra.mxu2 %v9039_v44  ;;  %3145 = vmatpush.bf16.msra.mxu3 %v9047_v32  ;;  %v7476_v32 = vld [vmem:[%s13831_s11 + $0x60] sm:$0xf] }
 0x1e8   :  { %v2710_v28 = vpop.f32.mrf.mxu2 }
 0x1e9   :  { %v2161_v28 = vperm.slane %v11588_v50, 3  ;;  %v9053_v50 = vld [vmem:[%s13830_s9 + $0x10] sm:$0xff] }
 0x1ea   :  { %3133 = vmatpush.bf16.msra.mxu2 %v9038_v48  ;;  %3146 = vmatpush.bf16.msra.mxu3 %v9046_v55  ;;  %v9054_v48 = vld [vmem:[%s13830_s9 + $0x18] sm:$0xff]  ;;  %v9067_v55 = vld [vmem:[%s13831_s11 + $0x64] sm:$0xf] }
 0x1eb   :  { %3220 = vmatpush.bf16.msra.mxu0 %v9054_v48  ;;  %v7438_v48 = vld [vmem:[%s13831_s11 + $0x18] sm:$0xf0] }
 0x1ec   :  { %v11714_v27 = vpop.f32.mrf.mxu0 }
 0x1ee   :  { %3134 = vmatpush.bf16.msra.mxu2 %v9037_v51  ;;  %3147 = vmatpush.bf16.msra.mxu3 %v9045_v58  ;;  %v9052_v51 = vld [vmem:[%s13830_s9 + $0x8] sm:$0xff] }
 0x1ef   :  { %3221 = vmatpush.bf16.msra.mxu0 %v9053_v50  ;;  %v7484_v58 = vld [vmem:[%s13831_s11 + $0x68] sm:$0xf] }
 0x1f2   :  { %3135 = vmatpush.bf16.msra.mxu2 %v9036_v53  ;;  %3148 = vmatpush.bf16.msra.mxu3 %v9044_v35  ;;  %v9051_v53 = vld [vmem:[%s13830_s9] sm:$0xff]  ;;  %v9068_v35 = vld [vmem:[%s13831_s11 + $0x6c] sm:$0xf] }
 0x1f3   :  { %3222 = vmatpush.bf16.msra.mxu0 %v9052_v51  ;;  %v9101_v51 = vld [vmem:[%s13832_s13 + $0xec] sm:$0xf0] }
 0x1f4   :  { %v2814_v29 = vpop.f32.mrf.mxu0 }
 0x1f6   :  { %3136 = vmatpush.bf16.msra.mxu2 %v9035_v54  ;;  %3149 = vmatpush.bf16.msra.mxu3 %v9043_v42  ;;  %v9069_v54 = vld [vmem:[%s13831_s11 + $0x6c] sm:$0xf0]  ;;  %v9063_v42 = vld [vmem:[%s13831_s11 + $0x44] sm:$0xf] }
 0x1f7   :  { %3223 = vmatpush.bf16.msra.mxu0 %v9051_v53 }
 0x1fa   :  { %3137 = vmatpush.bf16.msra.mxu2 %v9034_v56  ;;  %3150 = vmatpush.bf16.msra.mxu3 %v9042_v2  ;;  %v7477_v56 = vor.u32 %v9069_v54, %v7476_v32  ;;  %v7468_v2 = vld [vmem:[%s13831_s11 + $0x48] sm:$0xf]  ;;  %v9097_v32 = vld [vmem:[%s13832_s13 + $0xcc] sm:$0xf0] }
 0x1fc   :  { %3344 = vmatpush.bf16.msrb.mxu1 %v7477_v56  ;;  %v9133_v56 = vld [vmem:[%s13832_s13 + $0x1ec] sm:$0xf0] }
 0x21b   :  { %v2825_v57 = vpop.f32.mrf.mxu1 }
 0x21c   :  { %v2877_v33 = vpop.f32.mrf.mxu0 }
 0x220   :  { %v2721_v60 = vpop.f32.mrf.mxu3  ;;  %v2773_v61 = vpop.f32.mrf.mxu2 }
 0x221   :  { %v2722_v62 = vadd.f32 %v2721_v60, %v2709_v59 }
 0x223   :  { %v2881_v63 = vmax.f32 %v2722_v62, 0.0  ;;  %v2827_v34 = vpop.f32.mrf.mxu1  ;;  %v7486_v62 = vld [vmem:[%s13831_s11 + $0x78] sm:$0xf0] }
 0x224   :  { %v2879_v41 = vpop.f32.mrf.mxu0  ;;  %v7489_v34 = vor.u32 %v9068_v35, %v7486_v62  ;;  %v7880_v35 = vld [vmem:[%s13832_s13 + $0x300] sm:$0xf] }
 0x225   :  { %v2885_v0 = vpack.c.bf16 %v2881_v63, %v2881_v63  ;;  %v7460_v63 = vld [vmem:[%s13831_s11 + $0x40] sm:$0xf]  ;;  %v9065_v41 = vld [vmem:[%s13831_s11 + $0x4c] sm:$0xf0] }
 0x227   :  { %3125 = vmatmul.bf16.vlgmr.msra.gmra.mxu1 %v2885_v0  ;;  %v7462_v0 = vld [vmem:[%s13831_s11 + $0x50] sm:$0xf0] }
 0x228   :  { %v2723_v1 = vpop.f32.mrf.mxu3  ;;  %v2775_v46 = vpop.f32.mrf.mxu2 }
 0x229   :  { %v7461_v1 = vor.u32 %v9065_v41, %v7460_v63  ;;  %v7465_v46 = vor.u32 %v9063_v42, %v7462_v0  ;;  %v7704_v63 = vld [vmem:[%s13832_s13 + $0x1a0] sm:$0xf]  ;;  %v9169_v41 = vld [vmem:[%s13832_s13 + $0x30c] sm:$0xf0] }
 0x22a   :  { %v7560_v42 = vld [vmem:[%s13832_s13 + $0x80] sm:$0xf]  ;;  %v9089_v0 = vld [vmem:[%s13832_s13 + $0x8c] sm:$0xf0] }
 0x22b   :  { %v2838_v3 = vpop.f32.mrf.mxu1  ;;  %3345 = vmatpush.bf16.msrb.mxu1 %v7461_v1  ;;  %v7881_v1 = vor.u32 %v9169_v41, %v7880_v35  ;;  %v9095_v35 = vld [vmem:[%s13832_s13 + $0xc4] sm:$0xf]  ;;  %v7722_v41 = vld [vmem:[%s13832_s13 + $0x1d0] sm:$0xf0] }
 0x22c   :  { %v2839_v29 = vadd.f32 %v2838_v3, %v2161_v28  ;;  %v9066_v3 = vld [vmem:[%s13831_s11 + $0x54] sm:$0xf0]  ;;  %v9060_v28 = vld [vmem:[%s13831_s11 + $0x2c] sm:$0xf] }
 0x230   :  { %v2734_v6 = vpop.f32.mrf.mxu3  ;;  %v2786_v7 = vpop.f32.mrf.mxu2 }
 0x231   :  { %v2735_v25 = vadd.f32 %v2734_v6, %v2159_v4  ;;  %v2787_v18 = vadd.f32 %v2786_v7, %v2160_v17  ;;  %v9064_v4 = vld [vmem:[%s13831_s11 + $0x4c] sm:$0xf]  ;;  %v7469_v6 = vor.u32 %v9066_v3, %v7468_v2  ;;  %v7470_v7 = vld [vmem:[%s13831_s11 + $0x58] sm:$0xf0]  ;;  %v7864_v2 = vld [vmem:[%s13832_s13 + $0x2e0] sm:$0xf] }
 0x232   :  { %v9165_v3 = vld [vmem:[%s13832_s13 + $0x2ec] sm:$0xf0] }
 0x233   :  { %v2748_v8 = vadd.f32 %v11676_v9, %v2735_v25  ;;  %v2840_v10 = vpop.f32.mrf.mxu1  ;;  %v7473_v25 = vor.u32 %v9064_v4, %v7470_v7  ;;  %v7561_v4 = vor.u32 %v9089_v0, %v7560_v42  ;;  %v9121_v7 = vld [vmem:[%s13832_s13 + $0x18c] sm:$0xf0] }
 0x235   :  { %v2761_v12 = vadd.f32 %v11712_v26, %v2748_v8 }
 0x237   :  { %v2774_v13 = vadd.f32 %v2773_v61, %v2761_v12 }
 0x238   :  { %v2736_v14 = vpop.f32.mrf.mxu3  ;;  %v2788_v5 = vpop.f32.mrf.mxu2 }
 0x239   :  { %v2882_v15 = vmax.f32 %v2774_v13, 0.0  ;;  %v9363_v14 = vld [vmem:[%s13828_s8] ss:$0 sm:$0xff] }
 0x23b   :  { %v2886_v16 = vpack.c.bf16 %v2882_v15, %v2882_v15 }
 0x23d   :  { %3138 = vmatmul.bf16.vlgmr.msra.gmra.mxu2 %v2886_v16 }
 0x240   :  { %v2799_v19 = vpop.f32.mrf.mxu3 }
 0x241   :  { %v2800_v20 = vadd.f32 %v2799_v19, %v2787_v18  ;;  %v2851_v22 = vpop.f32.mrf.mxu2 }
 0x242   :  { %v2852_v30 = vadd.f32 %v2851_v22, %v2839_v29  ;;  %v9061_v22 = vld [vmem:[%s13831_s11 + $0x2c] sm:$0xf0]  ;;  %v7454_v29 = vld [vmem:[%s13831_s11 + $0x38] sm:$0xf0] }
 0x243   :  { %v2813_v9 = vadd.f32 %v11714_v27, %v2800_v20  ;;  %v2959_v27 = vpop.f32.mrf.mxu0  ;;  %v7444_v20 = vld [vmem:[%s13831_s11 + $0x20] sm:$0xf] }
 0x245   :  { %v2826_v37 = vadd.f32 %v2825_v57, %v2813_v9  ;;  %v7478_v57 = vld [vmem:[%s13831_s11 + $0x70] sm:$0xf0]  ;;  %v7445_v9 = vor.u32 %v9061_v22, %v7444_v20  ;;  %v7528_v20 = vld [vmem:[%s13832_s13 + $0x40] sm:$0xf]  ;;  %v9081_v22 = vld [vmem:[%s13832_s13 + $0x4c] sm:$0xf0] }
 0x246   :  { %v7481_v60 = vor.u32 %v9067_v55, %v7478_v57  ;;  %v7736_v55 = vld [vmem:[%s13832_s13 + $0x1e0] sm:$0xf] }
 0x247   :  { %v2883_v24 = vmax.f32 %v2826_v37, 0.0  ;;  %v7446_v37 = vld [vmem:[%s13831_s11 + $0x30] sm:$0xf0]  ;;  %3346 = vmatpush.bf16.msrb.mxu1 %v7445_v9  ;;  %v7576_v57 = vld [vmem:[%s13832_s13 + $0xa0] sm:$0xf] }
 0x248   :  { %v2801_v26 = vpop.f32.mrf.mxu3  ;;  %3357 = vmatpush.bf16.msrb.mxu2 %v7481_v60  ;;  %v9129_v60 = vld [vmem:[%s13832_s13 + $0x1cc] sm:$0xf0] }
 0x249   :  { %v2887_v40 = vpack.c.bf16 %v2883_v24, %v2883_v24  ;;  %v2853_v38 = vpop.f32.mrf.mxu2  ;;  %v7452_v24 = vld [vmem:[%s13831_s11 + $0x28] sm:$0xf]  ;;  %v9062_v26 = vld [vmem:[%s13831_s11 + $0x34] sm:$0xf0] }
 0x24a   :  { %v7453_v38 = vor.u32 %v9062_v26, %v7452_v24  ;;  %v9153_v24 = vld [vmem:[%s13832_s13 + $0x28c] sm:$0xf0]  ;;  %v7529_v26 = vor.u32 %v9081_v22, %v7528_v20  ;;  %v9079_v22 = vld [vmem:[%s13832_s13 + $0x44] sm:$0xf] }
 0x24b   :  { %3151 = vmatmul.bf16.vlgmr.msra.gmra.mxu3 %v2887_v40  ;;  %v2961_v44 = vpop.f32.mrf.mxu0  ;;  %v7449_v40 = vor.u32 %v9059_v23, %v7446_v37  ;;  %v7816_v37 = vld [vmem:[%s13832_s13 + $0x280] sm:$0xf] }
 0x24c   :  { %3358 = vmatpush.bf16.msrb.mxu2 %v7465_v46 }
 0x250   :  { %3359 = vmatpush.bf16.msrb.mxu2 %v7449_v40  ;;  %v7656_v40 = vld [vmem:[%s13832_s13 + $0x140] sm:$0xf] }
 0x260   :  { %v2864_v21 = vpop.f32.mrf.mxu3 }
 0x261   :  { %v2865_v31 = vadd.f32 %v2864_v21, %v2852_v30  ;;  %v7457_v30 = vor.u32 %v9060_v28, %v7454_v29  ;;  %v7428_v21 = vld [vmem:[%s13831_s11] sm:$0xf]  ;;  %v9077_v29 = vld [vmem:[%s13832_s13 + $0x2c] sm:$0xf0] }
 0x262   :  { %v7512_v28 = vld [vmem:[%s13832_s13 + $0x20] sm:$0xf] }
 0x263   :  { %v2878_v36 = vadd.f32 %v2877_v33, %v2865_v31  ;;  %v9070_v33 = vld [vmem:[%s13831_s11 + $0x74] sm:$0xf0]  ;;  %v9057_v31 = vld [vmem:[%s13831_s11 + $0xc] sm:$0xf0] }
 0x264   :  { %v7485_v61 = vor.u32 %v9070_v33, %v7484_v58  ;;  %v9093_v58 = vld [vmem:[%s13832_s13 + $0xac] sm:$0xf0]  ;;  %v7737_v33 = vor.u32 %v9133_v56, %v7736_v55  ;;  %v7624_v55 = vld [vmem:[%s13832_s13 + $0x100] sm:$0xf] }
 0x265   :  { %v2884_v39 = vmax.f32 %v2878_v36, 0.0  ;;  %v9055_v36 = vld [vmem:[%s13831_s11 + $0x4] sm:$0xf]  ;;  %v7577_v62 = vor.u32 %v9093_v58, %v7576_v57  ;;  %v9105_v56 = vld [vmem:[%s13832_s13 + $0x10c] sm:$0xf0] }
 0x266   :  { %3370 = vmatpush.bf16.msrb.mxu3 %v7485_v61  ;;  %v9163_v57 = vld [vmem:[%s13832_s13 + $0x2e4] sm:$0xf]  ;;  %v7866_v58 = vld [vmem:[%s13832_s13 + $0x2f0] sm:$0xf0] }
 0x267   :  { %v2888_v43 = vpack.c.bf16 %v2884_v39, %v2884_v39  ;;  %v7429_v39 = vor.u32 %v9057_v31, %v7428_v21  ;;  %v7817_v21 = vor.u32 %v9153_v24, %v7816_v37  ;;  %v7869_v42 = vor.u32 %v9163_v57, %v7866_v58  ;;  %v7658_v37 = vld [vmem:[%s13832_s13 + $0x150] sm:$0xf0]  ;;  %v9137_v57 = vld [vmem:[%s13832_s13 + $0x20c] sm:$0xf0] }
 0x268   :  { %v2866_v11 = vpop.f32.mrf.mxu3 }
 0x269   :  { %7408 = vmatmul.msk.bf16.vlgmr.msrb.gmra.mxu0 %vm3113_vm4, %v2888_v43  ;;  %v7430_v43 = vld [vmem:[%s13831_s11 + $0x10] sm:$0xf0]  ;;  %v7436_v11 = vld [vmem:[%s13831_s11 + $0x8] sm:$0xf]  ;;  %3347 = vmatpush.bf16.msrb.mxu1 %v7429_v39  ;;  %v9149_v39 = vld [vmem:[%s13832_s13 + $0x26c] sm:$0xf0] }
 0x26a   :  { %3383 = vmatpush.bf16.msrb.mxu0 %v7489_v34  ;;  %3371 = vmatpush.bf16.msrb.mxu3 %v7469_v6  ;;  %v7433_v44 = vor.u32 %v9055_v36, %v7430_v43  ;;  %v9125_v34 = vld [vmem:[%s13832_s13 + $0x1ac] sm:$0xf0]  ;;  %v7688_v6 = vld [vmem:[%s13832_s13 + $0x180] sm:$0xf]  ;;  %v7513_v43 = vor.u32 %v9077_v29, %v7512_v28  ;;  %v9075_v29 = vld [vmem:[%s13832_s13 + $0x24] sm:$0xf] }
 0x26b   :  { %v7705_v46 = vor.u32 %v9125_v34, %v7704_v63  ;;  %v7800_v36 = vld [vmem:[%s13832_s13 + $0x260] sm:$0xf]  ;;  %v7625_v63 = vor.u32 %v9105_v56, %v7624_v55  ;;  %v9127_v34 = vld [vmem:[%s13832_s13 + $0x1c4] sm:$0xf] }
 0x26c   :  { %3360 = vmatpush.bf16.msrb.mxu2 %v7433_v44  ;;  %v7752_v56 = vld [vmem:[%s13832_s13 + $0x200] sm:$0xf] }
 0x26d   :  { %v7753_v58 = vor.u32 %v9137_v57, %v7752_v56 }
 0x26e   :  { %3384 = vmatpush.bf16.msrb.mxu0 %v7473_v25  ;;  %3372 = vmatpush.bf16.msrb.mxu3 %v7453_v38  ;;  %v7865_v25 = vor.u32 %v9165_v3, %v7864_v2  ;;  %v9113_v38 = vld [vmem:[%s13832_s13 + $0x14c] sm:$0xf0]  ;;  %v9091_v2 = vld [vmem:[%s13832_s13 + $0xa4] sm:$0xf]  ;;  %v7578_v3 = vld [vmem:[%s13832_s13 + $0xb0] sm:$0xf0] }
 0x26f   :  { %v7657_v31 = vor.u32 %v9113_v38, %v7656_v40  ;;  %v7784_v40 = vld [vmem:[%s13832_s13 + $0x240] sm:$0xf]  ;;  %v9145_v38 = vld [vmem:[%s13832_s13 + $0x24c] sm:$0xf0] }
 0x270   :  { %4026 = vmatpush.bf16.msra.mxu2 %v7737_v33  ;;  %v7785_v28 = vor.u32 %v9145_v38, %v7784_v40  ;;  %v9162_v40 = vld [vmem:[%s13832_s13 + $0x2d4] sm:$0xf0] }
 0x272   :  { %3385 = vmatpush.bf16.msrb.mxu0 %v7457_v30  ;;  %v9364_v30 = vld [vmem:[%s13829_s10] ss:$0 sm:$0xff] }
 0x2a4   :  { %v3126_v45 = vpop.f32.mrf.mxu1 }
 0x2a5   :  { %v3127_v10 = vadd.f32 %v3126_v45, %v2959_v27  ;;  %v9058_v27 = vld [vmem:[%s13831_s11 + $0x14] sm:$0xf0] }
 0x2a6   :  { %v7437_v45 = vor.u32 %v9058_v27, %v7436_v11  ;;  %v7640_v11 = vld [vmem:[%s13832_s13 + $0x120] sm:$0xf]  ;;  %v9109_v27 = vld [vmem:[%s13832_s13 + $0x12c] sm:$0xf0] }
 0x2a8   :  { %3373 = vmatpush.bf16.msrb.mxu3 %v7437_v45 }
 0x2ac   :  { %v3128_v47 = vpop.f32.mrf.mxu1  ;;  %4039 = vmatpush.bf16.msra.mxu3 %v7865_v25 }
 0x2ad   :  { %v9056_v47 = vld [vmem:[%s13831_s11 + $0xc] sm:$0xf] }
 0x2ae   :  { %v7441_v50 = vor.u32 %v9056_v47, %v7438_v48  ;;  %v7496_v47 = vld [vmem:[%s13832_s13] sm:$0xf]  ;;  %v9073_v48 = vld [vmem:[%s13832_s13 + $0xc] sm:$0xf0] }
 0x2b0   :  { %3386 = vmatpush.bf16.msrb.mxu0 %v7441_v50  ;;  %v9099_v50 = vld [vmem:[%s13832_s13 + $0xe4] sm:$0xf] }
 0x2c0   :  { %v3139_v49 = vpop.f32.mrf.mxu2 }
 0x2c1   :  { %v3140_v12 = vadd.f32 %v3139_v49, %v3127_v10  ;;  %v7608_v49 = vld [vmem:[%s13832_s13 + $0xe0] sm:$0xf]  ;;  %v9085_v10 = vld [vmem:[%s13832_s13 + $0x6c] sm:$0xf0] }
 0x2c2   :  { %v7609_v53 = vor.u32 %v9101_v51, %v7608_v49  ;;  %v7801_v49 = vor.u32 %v9149_v39, %v7800_v36  ;;  %v7610_v51 = vld [vmem:[%s13832_s13 + $0xf0] sm:$0xf0]  ;;  %v9107_v39 = vld [vmem:[%s13832_s13 + $0x124] sm:$0xf] }
 0x2c3   :  { %v7850_v36 = vld [vmem:[%s13832_s13 + $0x2d0] sm:$0xf0] }
 0x2c4   :  { %4013 = vmatpush.bf16.msra.mxu1 %v7609_v53  ;;  %v7738_v53 = vld [vmem:[%s13832_s13 + $0x1f0] sm:$0xf0] }
 0x2c8   :  { %v3141_v52 = vpop.f32.mrf.mxu2 }
 0x2c9   :  { %v7592_v52 = vld [vmem:[%s13832_s13 + $0xc0] sm:$0xf] }
 0x2ca   :  { %v7593_v54 = vor.u32 %v9097_v32, %v7592_v52  ;;  %v9131_v52 = vld [vmem:[%s13832_s13 + $0x1e4] sm:$0xf]  ;;  %v7641_v32 = vor.u32 %v9109_v27, %v7640_v11  ;;  %v7642_v11 = vld [vmem:[%s13832_s13 + $0x130] sm:$0xf0] }
 0x2cb   :  { %v7645_v27 = vor.u32 %v9107_v39, %v7642_v11  ;;  %v9170_v39 = vld [vmem:[%s13832_s13 + $0x314] sm:$0xf0] }
 0x2cc   :  { %4014 = vmatpush.bf16.msra.mxu1 %v7593_v54 }
 0x2ce   :  { %v3152_v59 = vpop.f32.mrf.mxu3 }
 0x2cf   :  { %v3153_v13 = vadd.f32 %v3152_v59, %v3140_v12  ;;  %v7720_v59 = vld [vmem:[%s13832_s13 + $0x1c0] sm:$0xf] }
 0x2d0   :  { %v7721_v61 = vor.u32 %v9129_v60, %v7720_v59  ;;  %4015 = vmatpush.bf16.msra.mxu1 %v7577_v62  ;;  %v7848_v12 = vld [vmem:[%s13832_s13 + $0x2c0] sm:$0xf]  ;;  %v7497_v59 = vor.u32 %v9073_v48, %v7496_v47  ;;  %v7613_v60 = vor.u32 %v9099_v50, %v7610_v51  ;;  %v7594_v62 = vld [vmem:[%s13832_s13 + $0xd0] sm:$0xf0]  ;;  %v9071_v48 = vld [vmem:[%s13832_s13 + $0x4] sm:$0xf] }
 0x2d1   :  { %v7498_v50 = vld [vmem:[%s13832_s13 + $0x10] sm:$0xf0] }
 0x2d2   :  { %4027 = vmatpush.bf16.msra.mxu2 %v7721_v61  ;;  %v7741_v61 = vor.u32 %v9131_v52, %v7738_v53  ;;  %v7501_v51 = vor.u32 %v9071_v48, %v7498_v50  ;;  %v7834_v52 = vld [vmem:[%s13832_s13 + $0x2b0] sm:$0xf0]  ;;  %v9103_v53 = vld [vmem:[%s13832_s13 + $0x104] sm:$0xf] }
 0x2d4   :  { %4016 = vmatpush.bf16.msra.mxu1 %v7561_v4  ;;  %v9123_v4 = vld [vmem:[%s13832_s13 + $0x1a4] sm:$0xf] }
 0x2d6   :  { %v3154_v8 = vpop.f32.mrf.mxu3  ;;  %4028 = vmatpush.bf16.msra.mxu2 %v7705_v46  ;;  %v7725_v46 = vor.u32 %v9127_v34, %v7722_v41  ;;  %v7802_v34 = vld [vmem:[%s13832_s13 + $0x270] sm:$0xf0] }
 0x2d7   :  { %v7544_v8 = vld [vmem:[%s13832_s13 + $0x60] sm:$0xf] }
 0x2e6   :  { %v3165_v5 = vpop.f32.mrf.mxu0 }
 0x2e7   :  { %v3166_v15 = vadd.f32 %v3165_v5, %v3153_v13  ;;  %v9161_v13 = vld [vmem:[%s13832_s13 + $0x2cc] sm:$0xf0]  ;;  %v7672_v5 = vld [vmem:[%s13832_s13 + $0x160] sm:$0xf] }
 0x2e9   :  { %v3173_v16 = vadd.f32 %v9363_v14, %v3166_v15  ;;  %v7689_v14 = vor.u32 %v9121_v7, %v7688_v6  ;;  %v7849_v15 = vor.u32 %v9161_v13, %v7848_v12  ;;  %v7706_v6 = vld [vmem:[%s13832_s13 + $0x1b0] sm:$0xf0]  ;;  %v7581_v7 = vor.u32 %v9091_v2, %v7578_v3  ;;  %v9119_v12 = vld [vmem:[%s13832_s13 + $0x184] sm:$0xf] }
 0x2ea   :  { %v7709_v25 = vor.u32 %v9123_v4, %v7706_v6  ;;  %v7690_v13 = vld [vmem:[%s13832_s13 + $0x190] sm:$0xf0]  ;;  %v9135_v4 = vld [vmem:[%s13832_s13 + $0x204] sm:$0xf] }
 0x2eb   :  { %v3174_v17 = vmax.f32 %v3173_v16, 0.0  ;;  %v7545_v16 = vor.u32 %v9085_v10, %v7544_v8  ;;  %4040 = vmatpush.bf16.msra.mxu3 %v7849_v15  ;;  %4029 = vmatpush.bf16.msra.mxu2 %v7689_v14  ;;  %v9087_v8 = vld [vmem:[%s13832_s13 + $0x84] sm:$0xf]  ;;  %v7562_v10 = vld [vmem:[%s13832_s13 + $0x90] sm:$0xf0] }
 0x2ec   :  { %v7565_v14 = vor.u32 %v9087_v8, %v7562_v10  ;;  %v9083_v15 = vld [vmem:[%s13832_s13 + $0x64] sm:$0xf]  ;;  %v7770_v2 = vld [vmem:[%s13832_s13 + $0x230] sm:$0xf0] }
 0x2ed   :  { %v3175_v18 = vpack.c.bf16 %v3174_v17, %v3174_v17  ;;  %v9117_v17 = vld [vmem:[%s13832_s13 + $0x16c] sm:$0xf0]  ;;  %4017 = vmatpush.bf16.msra.mxu1 %v7545_v16  ;;  %v7546_v16 = vld [vmem:[%s13832_s13 + $0x70] sm:$0xf0] }
 0x2ee   :  { %v3167_v19 = vpop.f32.mrf.mxu0  ;;  %v7673_v9 = vor.u32 %v9117_v17, %v7672_v5  ;;  %v7693_v5 = vor.u32 %v9119_v12, %v7690_v13  ;;  %v9115_v17 = vld [vmem:[%s13832_s13 + $0x164] sm:$0xf]  ;;  %v7754_v6 = vld [vmem:[%s13832_s13 + $0x210] sm:$0xf0] }
 0x2ef   :  { %7425 = vmatmul.msk.bf16.vlgmr.msra.gmra.mxu0 %vm3212_vm5, %v3175_v18  ;;  %v7832_v18 = vld [vmem:[%s13832_s13 + $0x2a0] sm:$0xf]  ;;  %v9157_v19 = vld [vmem:[%s13832_s13 + $0x2ac] sm:$0xf0] }
 0x2f0   :  { %4059 = vmatpush.bf16.msra.mxu0 %v7881_v1  ;;  %v7833_v23 = vor.u32 %v9157_v19, %v7832_v18  ;;  %4030 = vmatpush.bf16.msra.mxu2 %v7673_v9  ;;  %v7597_v1 = vor.u32 %v9095_v35, %v7594_v62  ;;  %v7674_v18 = vld [vmem:[%s13832_s13 + $0x170] sm:$0xf0]  ;;  %v7549_v19 = vor.u32 %v9083_v15, %v7546_v16  ;;  %v9111_v9 = vld [vmem:[%s13832_s13 + $0x144] sm:$0xf]  ;;  %v9166_v15 = vld [vmem:[%s13832_s13 + $0x2f4] sm:$0xf0] }
 0x2f1   :  { %4018 = vmatpush.bf16.msra.mxu1 %v7529_v26  ;;  %v7677_v20 = vor.u32 %v9115_v17, %v7674_v18  ;;  %v7661_v26 = vor.u32 %v9111_v9, %v7658_v37  ;;  %v7882_v35 = vld [vmem:[%s13832_s13 + $0x310] sm:$0xf0]  ;;  %v7744_v17 = vld [vmem:[%s13832_s13 + $0x1e8] sm:$0xf]  ;;  %v9134_v18 = vld [vmem:[%s13832_s13 + $0x1f4] sm:$0xf0] }
 0x2f2   :  { %4041 = vmatpush.bf16.msra.mxu3 %v7833_v23  ;;  %v7530_v23 = vld [vmem:[%s13832_s13 + $0x50] sm:$0xf0] }
 0x2f3   :  { %v7533_v24 = vor.u32 %v9079_v22, %v7530_v23 }
 0x2f4   :  { %4031 = vmatpush.bf16.msra.mxu2 %v7657_v31  ;;  %v9159_v31 = vld [vmem:[%s13832_s13 + $0x2c4] sm:$0xf] }
 0x2f5   :  { %4019 = vmatpush.bf16.msra.mxu1 %v7513_v43  ;;  %v7853_v43 = vor.u32 %v9159_v31, %v7850_v36  ;;  %v7888_v36 = vld [vmem:[%s13832_s13 + $0x308] sm:$0xf] }
 0x2f6   :  { %4042 = vmatpush.bf16.msra.mxu3 %v7817_v21 }
 0x2f8   :  { %4032 = vmatpush.bf16.msra.mxu2 %v7641_v32  ;;  %v7626_v32 = vld [vmem:[%s13832_s13 + $0x110] sm:$0xf0] }
 0x2f9   :  { %4020 = vmatpush.bf16.msra.mxu1 %v7497_v59  ;;  %v7629_v55 = vor.u32 %v9103_v53, %v7626_v32  ;;  %v7818_v59 = vld [vmem:[%s13832_s13 + $0x290] sm:$0xf0]  ;;  %v7712_v53 = vld [vmem:[%s13832_s13 + $0x1a8] sm:$0xf]  ;;  %v9126_v32 = vld [vmem:[%s13832_s13 + $0x1b4] sm:$0xf0] }
 0x2fa   :  { %4043 = vmatpush.bf16.msra.mxu3 %v7801_v49  ;;  %v9155_v49 = vld [vmem:[%s13832_s13 + $0x2a4] sm:$0xf] }
 0x2fc   :  { %4033 = vmatpush.bf16.msra.mxu2 %v7625_v63  ;;  %v9147_v63 = vld [vmem:[%s13832_s13 + $0x264] sm:$0xf] }
 0x2fd   :  { %v7805_v41 = vor.u32 %v9147_v63, %v7802_v34  ;;  %v7696_v63 = vld [vmem:[%s13832_s13 + $0x188] sm:$0xf]  ;;  %v9122_v34 = vld [vmem:[%s13832_s13 + $0x194] sm:$0xf0] }
 0x2fe   :  { %4044 = vmatpush.bf16.msra.mxu3 %v7785_v28 }
 0x36c   :  { %v3225_v44 = vpop.f32.mrf.mxu0 }
 0x36d   :  { %v3226_v45 = vadd.f32 %v9364_v30, %v3225_v44  ;;  %v7514_v30 = vld [vmem:[%s13832_s13 + $0x30] sm:$0xf0]  ;;  %v7768_v44 = vld [vmem:[%s13832_s13 + $0x220] sm:$0xf] }
 0x36e   :  { %v7517_v21 = vor.u32 %v9075_v29, %v7514_v30  ;;  %v7728_v29 = vld [vmem:[%s13832_s13 + $0x1c8] sm:$0xf]  ;;  %v9130_v30 = vld [vmem:[%s13832_s13 + $0x1d4] sm:$0xf0] }
 0x36f   :  { %v3229_v54 = vmax.f32 %v3226_v45, 0.0  ;;  %v9141_v45 = vld [vmem:[%s13832_s13 + $0x22c] sm:$0xf0]  ;;  %v7729_v50 = vor.u32 %v9130_v30, %v7728_v29  ;;  %v9110_v29 = vld [vmem:[%s13832_s13 + $0x134] sm:$0xf0] }
 0x370   :  { %v7769_v47 = vor.u32 %v9141_v45, %v7768_v44  ;;  %v7616_v44 = vld [vmem:[%s13832_s13 + $0xe8] sm:$0xf]  ;;  %v9102_v45 = vld [vmem:[%s13832_s13 + $0xf4] sm:$0xf0] }
 0x371   :  { %v3230_v33 = vpack.c.bf16 %v3229_v54, %v3229_v54  ;;  %v7837_v54 = vor.u32 %v9155_v49, %v7834_v52  ;;  %v7840_v49 = vld [vmem:[%s13832_s13 + $0x2a8] sm:$0xf]  ;;  %v7617_v56 = vor.u32 %v9102_v45, %v7616_v44  ;;  %v9106_v44 = vld [vmem:[%s13832_s13 + $0x114] sm:$0xf0] }
 0x372   :  { %4045 = vmatpush.bf16.msra.mxu3 %v7769_v47  ;;  %v7760_v45 = vld [vmem:[%s13832_s13 + $0x208] sm:$0xf] }
 0x373   :  { %7490 = vmatmul.msk.bf16.vlgmr.msrb.gmra.mxu1 %vm3212_vm5, %v3230_v33  ;;  %7491 = vmatmul.msk.bf16.vlgmr.msrb.gmra.mxu2 %vm3212_vm5, %v3230_v33 }
 0x374   :  { %7492 = vmatmul.msk.bf16.vlgmr.msrb.gmra.mxu3 %vm3212_vm5, %v3230_v33  ;;  %7493 = vmatmul.msk.bf16.vlgmr.msrb.gmra.mxu0 %vm3212_vm5, %v3230_v33  ;;  %v3227_v0 = vpop.f32.mrf.mxu0  ;;  %v9151_v33 = vld [vmem:[%s13832_s13 + $0x284] sm:$0xf] }
 0x375   :  { %4065 = vmatpush.bf16.msrb.mxu0 %v7613_v60  ;;  %4078 = vmatpush.bf16.msrb.mxu1 %v7741_v61  ;;  %v7821_v60 = vor.u32 %v9151_v33, %v7818_v59  ;;  %v9167_v61 = vld [vmem:[%s13832_s13 + $0x304] sm:$0xf]  ;;  %v7786_v0 = vld [vmem:[%s13832_s13 + $0x250] sm:$0xf0]  ;;  %v7600_v33 = vld [vmem:[%s13832_s13 + $0xc8] sm:$0xf] }
 0x376   :  { %4091 = vmatpush.bf16.msrb.mxu2 %v7869_v42  ;;  %4046 = vmatpush.bf16.msra.mxu3 %v7753_v58  ;;  %v7885_v62 = vor.u32 %v9167_v61, %v7882_v35  ;;  %v9143_v42 = vld [vmem:[%s13832_s13 + $0x244] sm:$0xf]  ;;  %v9098_v59 = vld [vmem:[%s13832_s13 + $0xd4] sm:$0xf0]  ;;  %v7824_v61 = vld [vmem:[%s13832_s13 + $0x288] sm:$0xf] }
 0x377   :  { %v9154_v35 = vld [vmem:[%s13832_s13 + $0x294] sm:$0xf0] }
 0x379   :  { %4066 = vmatpush.bf16.msrb.mxu0 %v7597_v1  ;;  %4079 = vmatpush.bf16.msrb.mxu1 %v7725_v46  ;;  %v7789_v1 = vor.u32 %v9143_v42, %v7786_v0  ;;  %v9139_v46 = vld [vmem:[%s13832_s13 + $0x224] sm:$0xf]  ;;  %v7601_v42 = vor.u32 %v9098_v59, %v7600_v33  ;;  %v7825_v0 = vor.u32 %v9154_v35, %v7824_v61  ;;  %v9078_v33 = vld [vmem:[%s13832_s13 + $0x34] sm:$0xf0] }
 0x37a   :  { %4092 = vmatpush.bf16.msrb.mxu2 %v7853_v43  ;;  %4111 = vmatpush.bf16.msrb.mxu3 %v7885_v62  ;;  %v7773_v3 = vor.u32 %v9139_v46, %v7770_v2  ;;  %v9094_v46 = vld [vmem:[%s13832_s13 + $0xb4] sm:$0xf0]  ;;  %v7697_v2 = vor.u32 %v9122_v34, %v7696_v63  ;;  %v7858_v34 = vld [vmem:[%s13832_s13 + $0x2d8] sm:$0xf0] }
 0x37d   :  { %4067 = vmatpush.bf16.msrb.mxu0 %v7581_v7  ;;  %4080 = vmatpush.bf16.msrb.mxu1 %v7709_v25  ;;  %v3247_v7 = vld [vmem:[%s13833_s12] sm:$0xf]  ;;  %v7757_v25 = vor.u32 %v9135_v4, %v7754_v6  ;;  %v9150_v4 = vld [vmem:[%s13832_s13 + $0x274] sm:$0xf0]  ;;  %v7680_v6 = vld [vmem:[%s13832_s13 + $0x168] sm:$0xf] }
 0x37e   :  { %4093 = vmatpush.bf16.msrb.mxu2 %v7837_v54  ;;  %v3249_v8 = vperm.slane %v3247_v7, 0  ;;  %v3252_v10 = vperm.slane %v3247_v7, 3  ;;  %v3251_v23 = vperm.slane %v3247_v7, 2  ;;  %v7889_v54 = vor.u32 %v9170_v39, %v7888_v36  ;;  %v7536_v39 = vld [vmem:[%s13832_s13 + $0x48] sm:$0xf] }
 0x381   :  { %4068 = vmatpush.bf16.msrb.mxu0 %v7565_v14  ;;  %4081 = vmatpush.bf16.msrb.mxu1 %v7693_v5  ;;  %v7872_v5 = vld [vmem:[%s13832_s13 + $0x2e8] sm:$0xf] }
 0x382   :  { %4094 = vmatpush.bf16.msrb.mxu2 %v7821_v60  ;;  %v7873_v9 = vor.u32 %v9166_v15, %v7872_v5  ;;  %v7713_v60 = vor.u32 %v9126_v32, %v7712_v53  ;;  %v9146_v5 = vld [vmem:[%s13832_s13 + $0x254] sm:$0xf0]  ;;  %v7664_v15 = vld [vmem:[%s13832_s13 + $0x148] sm:$0xf]  ;;  %v7874_v53 = vld [vmem:[%s13832_s13 + $0x2f8] sm:$0xf0] }
 0x383   :  { %v9092_v32 = vld [vmem:[%s13832_s13 + $0xac] sm:$0xf] }
 0x385   :  { %4069 = vmatpush.bf16.msrb.mxu0 %v7549_v19  ;;  %4082 = vmatpush.bf16.msrb.mxu1 %v7677_v20  ;;  %v3250_v20 = vperm.slane %v3247_v7, 1  ;;  %v9118_v7 = vld [vmem:[%s13832_s13 + $0x174] sm:$0xf0] }
 0x386   :  { %4095 = vmatpush.bf16.msrb.mxu2 %v7805_v41 }
 0x389   :  { %4070 = vmatpush.bf16.msrb.mxu0 %v7533_v24  ;;  %4083 = vmatpush.bf16.msrb.mxu1 %v7661_v26  ;;  %v7745_v24 = vor.u32 %v9134_v18, %v7744_v17  ;;  %v7856_v26 = vld [vmem:[%s13832_s13 + $0x2c8] sm:$0xf]  ;;  %v9100_v18 = vld [vmem:[%s13832_s13 + $0xec] sm:$0xf] }
 0x38a   :  { %4096 = vmatpush.bf16.msrb.mxu2 %v7789_v1  ;;  %v7584_v1 = vld [vmem:[%s13832_s13 + $0xa8] sm:$0xf] }
 0x38d   :  { %4071 = vmatpush.bf16.msrb.mxu0 %v7517_v21  ;;  %4084 = vmatpush.bf16.msrb.mxu1 %v7645_v27  ;;  %v7857_v27 = vor.u32 %v9162_v40, %v7856_v26  ;;  %v9142_v26 = vld [vmem:[%s13832_s13 + $0x234] sm:$0xf0] }
 0x38e   :  { %4097 = vmatpush.bf16.msrb.mxu2 %v7773_v3  ;;  %v7808_v3 = vld [vmem:[%s13832_s13 + $0x268] sm:$0xf] }
 0x391   :  { %4072 = vmatpush.bf16.msrb.mxu0 %v7501_v51  ;;  %4085 = vmatpush.bf16.msrb.mxu1 %v7629_v55  ;;  %v9158_v51 = vld [vmem:[%s13832_s13 + $0x2b4] sm:$0xf0] }
 0x392   :  { %4098 = vmatpush.bf16.msrb.mxu2 %v7757_v25  ;;  %v7841_v58 = vor.u32 %v9158_v51, %v7840_v49  ;;  %v7585_v25 = vor.u32 %v9094_v46, %v7584_v1  ;;  %v9168_v49 = vld [vmem:[%s13832_s13 + $0x30c] sm:$0xf]  ;;  %v7890_v51 = vld [vmem:[%s13832_s13 + $0x318] sm:$0xf0]  ;;  %v9074_v1 = vld [vmem:[%s13832_s13 + $0x14] sm:$0xf0] }
 0x393   :  { %v9132_v46 = vld [vmem:[%s13832_s13 + $0x1ec] sm:$0xf] }
 0x3f0   :  { %v3349_v12 = vpop.f32.mrf.mxu1 }
 0x3f1   :  { %v3350_v13 = vadd.f32 %v3349_v12, %v3249_v8  ;;  %v3388_v14 = vpop.f32.mrf.mxu0  ;;  %v7809_v8 = vor.u32 %v9150_v4, %v7808_v3  ;;  %v9090_v12 = vld [vmem:[%s13832_s13 + $0x94] sm:$0xf0] }
 0x3f2   :  { %v3389_v16 = vadd.f32 %v3388_v14, %v3252_v10  ;;  %v7568_v10 = vld [vmem:[%s13832_s13 + $0x88] sm:$0xf] }
 0x3f3   :  { %v3392_v19 = vmax.f32 %v3350_v13, 0.0  ;;  %v7681_v13 = vor.u32 %v9118_v7, %v7680_v6  ;;  %v7792_v14 = vld [vmem:[%s13832_s13 + $0x248] sm:$0xf]  ;;  %v7569_v17 = vor.u32 %v9090_v12, %v7568_v10  ;;  %v9156_v7 = vld [vmem:[%s13832_s13 + $0x2ac] sm:$0xf] }
 0x3f4   :  { %v3395_v22 = vmax.f32 %v3389_v16, 0.0  ;;  %v9114_v16 = vld [vmem:[%s13832_s13 + $0x154] sm:$0xf0]  ;;  %v9084_v10 = vld [vmem:[%s13832_s13 + $0x6c] sm:$0xf] }
 0x3f5   :  { %v12225_v37 = vpack.c.bf16 %v3392_v19, %v3392_v19  ;;  %v7618_v19 = vld [vmem:[%s13832_s13 + $0xf8] sm:$0xf0] }
 0x3f6   :  { %v12233_v38 = vpack.c.bf16 %v3395_v22, %v3395_v22  ;;  %v3362_v28 = vpop.f32.mrf.mxu2  ;;  %v7552_v22 = vld [vmem:[%s13832_s13 + $0x68] sm:$0xf]  ;;  %v7621_v40 = vor.u32 %v9100_v18, %v7618_v19  ;;  %v7554_v12 = vld [vmem:[%s13832_s13 + $0x78] sm:$0xf0]  ;;  %v9080_v18 = vld [vmem:[%s13832_s13 + $0x4c] sm:$0xf] }
 0x3f7   :  { %v3363_v21 = vadd.f32 %v3362_v28, %v3250_v20  ;;  %v3375_v31 = vpop.f32.mrf.mxu3  ;;  %4021 = vmatmul.bf16.vlgmr.msra.gmra.mxu1 %v12225_v37  ;;  %v7793_v20 = vor.u32 %v9146_v5, %v7792_v14  ;;  %v7648_v28 = vld [vmem:[%s13832_s13 + $0x128] sm:$0xf]  ;;  %v7730_v14 = vld [vmem:[%s13832_s13 + $0x1d8] sm:$0xf0]  ;;  %v8124_v19 = vld [vmem:[%s13834_s15 + $0x1c0] sm:$0xf] }
 0x3f8   :  { %v3376_v43 = vadd.f32 %v3375_v31, %v3251_v23  ;;  %7894 = vmatmul.msk.bf16.vlgmr.msra.gmra.mxu0 %vm3113_vm4, %v12233_v38  ;;  %v3351_v11 = vpop.f32.mrf.mxu1  ;;  %4143 = vmatpush.bf16.msra.mxu1 %v7873_v9  ;;  %v9086_v23 = vld [vmem:[%s13832_s13 + $0x74] sm:$0xf0]  ;;  %v7665_v9 = vor.u32 %v9114_v16, %v7664_v15  ;;  %v7602_v31 = vld [vmem:[%s13832_s13 + $0xd8] sm:$0xf0]  ;;  %v9152_v15 = vld [vmem:[%s13832_s13 + $0x28c] sm:$0xf] }
 0x3f9   :  { %v3393_v47 = vmax.f32 %v3363_v21, 0.0  ;;  %4130 = vmatpush.bf16.msra.mxu0 %v7745_v24  ;;  %v3390_v48 = vpop.f32.mrf.mxu0  ;;  %v7776_v24 = vld [vmem:[%s13832_s13 + $0x228] sm:$0xf]  ;;  %v7553_v30 = vor.u32 %v9086_v23, %v7552_v22  ;;  %v9096_v21 = vld [vmem:[%s13832_s13 + $0xcc] sm:$0xf] }
 0x3fa   :  { %v3394_v52 = vmax.f32 %v3376_v43, 0.0  ;;  %v7777_v36 = vor.u32 %v9142_v26, %v7776_v24  ;;  %v9082_v43 = vld [vmem:[%s13832_s13 + $0x54] sm:$0xf0]  ;;  %v7632_v11 = vld [vmem:[%s13832_s13 + $0x108] sm:$0xf]  ;;  %v7605_v48 = vor.u32 %v9096_v21, %v7602_v31 }
 0x3fb   :  { %v12268_v55 = vpack.c.bf16 %v3393_v47, %v3393_v47  ;;  %v9138_v47 = vld [vmem:[%s13832_s13 + $0x214] sm:$0xf0]  ;;  %v7633_v59 = vor.u32 %v9106_v44, %v7632_v11  ;;  %v7826_v16 = vld [vmem:[%s13832_s13 + $0x298] sm:$0xf0]  ;;  %v8092_v24 = vld [vmem:[%s13834_s15 + $0x180] sm:$0xf] }
 0x3fc   :  { %v12270_v57 = vpack.c.bf16 %v3394_v52, %v3394_v52  ;;  %4144 = vmatpush.bf16.msra.mxu1 %v7857_v27  ;;  %v7649_v27 = vor.u32 %v9110_v29, %v7648_v28  ;;  %v7537_v52 = vor.u32 %v9082_v43, %v7536_v39  ;;  %v7538_v23 = vld [vmem:[%s13832_s13 + $0x58] sm:$0xf0]  ;;  %v9223_v26 = vld [vmem:[%s13834_s15 + $0x19c] sm:$0xf0]  ;;  %v7829_v29 = vor.u32 %v9152_v15, %v7826_v16  ;;  %v9148_v21 = vld [vmem:[%s13832_s13 + $0x26c] sm:$0xf] }
 0x3fd   :  { %4131 = vmatpush.bf16.msra.mxu0 %v7729_v50  ;;  %4034 = vmatmul.bf16.vlgmr.msra.gmra.mxu2 %v12268_v55  ;;  %v9164_v50 = vld [vmem:[%s13832_s13 + $0x2ec] sm:$0xf]  ;;  %v7714_v28 = vld [vmem:[%s13832_s13 + $0x1b8] sm:$0xf0] }
 0x3fe   :  { %4047 = vmatmul.bf16.vlgmr.msra.gmra.mxu3 %v12270_v57  ;;  %v3364_v62 = vpop.f32.mrf.mxu2  ;;  %4163 = vmatpush.bf16.msra.mxu2 %v7889_v54  ;;  %v7586_v54 = vld [vmem:[%s13832_s13 + $0xb8] sm:$0xf0]  ;;  %v7877_v61 = vor.u32 %v9164_v50, %v7874_v53  ;;  %v9076_v43 = vld [vmem:[%s13832_s13 + $0x2c] sm:$0xf] }
 0x3ff   :  { %4117 = vmatpush.bf16.msra.mxu3 %v7617_v56  ;;  %v3377_v41 = vpop.f32.mrf.mxu3  ;;  %v7761_v56 = vor.u32 %v9138_v47, %v7760_v45  ;;  %v7589_v35 = vor.u32 %v9092_v32, %v7586_v54  ;;  %v9160_v62 = vld [vmem:[%s13832_s13 + $0x2cc] sm:$0xf]  ;;  %v7810_v31 = vld [vmem:[%s13832_s13 + $0x278] sm:$0xf0]  ;;  %v8060_v45 = vld [vmem:[%s13834_s15 + $0x140] sm:$0xf] }
 0x400   :  { %4145 = vmatpush.bf16.msra.mxu1 %v7841_v58  ;;  %v7520_v58 = vld [vmem:[%s13832_s13 + $0x28] sm:$0xf]  ;;  %v9088_v41 = vld [vmem:[%s13832_s13 + $0x8c] sm:$0xf]  ;;  %v7861_v3 = vor.u32 %v9160_v62, %v7858_v34  ;;  %v7522_v11 = vld [vmem:[%s13832_s13 + $0x38] sm:$0xf0] }
 0x401   :  { %4132 = vmatpush.bf16.msra.mxu0 %v7713_v60  ;;  %v7893_v60 = vor.u32 %v9168_v49, %v7890_v51  ;;  %v7521_v63 = vor.u32 %v9078_v33, %v7520_v58  ;;  %v7698_v44 = vld [vmem:[%s13832_s13 + $0x198] sm:$0xf0]  ;;  %v9215_v47 = vld [vmem:[%s13834_s15 + $0x15c] sm:$0xf0]  ;;  %v7525_v50 = vor.u32 %v9076_v43, %v7522_v11  ;;  %v9144_v49 = vld [vmem:[%s13832_s13 + $0x24c] sm:$0xf] }
 0x402   :  { %v7794_v51 = vld [vmem:[%s13832_s13 + $0x258] sm:$0xf0]  ;;  %v9072_v53 = vld [vmem:[%s13832_s13 + $0xc] sm:$0xf]  ;;  %v8028_v33 = vld [vmem:[%s13834_s15 + $0x100] sm:$0xf] }
 0x403   :  { %4118 = vmatpush.bf16.msra.mxu3 %v7601_v42  ;;  %v7570_v42 = vld [vmem:[%s13832_s13 + $0x98] sm:$0xf0]  ;;  %v9116_v54 = vld [vmem:[%s13832_s13 + $0x16c] sm:$0xf]  ;;  %v8318_v11 = vld [vmem:[%s13834_s15 + $0x360] sm:$0xf0] }
 0x404   :  { %4146 = vmatpush.bf16.msra.mxu1 %v7825_v0  ;;  %v7504_v0 = vld [vmem:[%s13832_s13 + $0x8] sm:$0xf]  ;;  %v7573_v4 = vor.u32 %v9088_v41, %v7570_v42  ;;  %v7506_v32 = vld [vmem:[%s13832_s13 + $0x18] sm:$0xf0]  ;;  %v9112_v42 = vld [vmem:[%s13832_s13 + $0x14c] sm:$0xf] }
 0x405   :  { %4133 = vmatpush.bf16.msra.mxu0 %v7697_v2  ;;  %v7746_v2 = vld [vmem:[%s13832_s13 + $0x1f8] sm:$0xf0]  ;;  %v7505_v6 = vor.u32 %v9074_v1, %v7504_v0  ;;  %v7509_v62 = vor.u32 %v9072_v53, %v7506_v32  ;;  %v7996_v1 = vld [vmem:[%s13834_s15 + $0xc0] sm:$0xf]  ;;  %v9104_v15 = vld [vmem:[%s13832_s13 + $0x10c] sm:$0xf] }
 0x406   :  { %v7682_v58 = vld [vmem:[%s13832_s13 + $0x178] sm:$0xf0]  ;;  %v9259_v53 = vld [vmem:[%s13834_s15 + $0x2c4] sm:$0xf] }
 0x407   :  { %4119 = vmatpush.bf16.msra.mxu3 %v7585_v25  ;;  %4086 = vmatmul.bf16.vlgmr.msrb.gmra.mxu1 %v12268_v55  ;;  %v7842_v25 = vld [vmem:[%s13832_s13 + $0x2b8] sm:$0xf0]  ;;  %v7685_v41 = vor.u32 %v9116_v54, %v7682_v58  ;;  %v8254_v54 = vld [vmem:[%s13834_s15 + $0x2e0] sm:$0xf0]  ;;  %v8220_v58 = vld [vmem:[%s13834_s15 + $0x280] sm:$0xf] }
 0x408   :  { %4073 = vmatmul.bf16.vlgmr.msrb.gmra.mxu0 %v12225_v37  ;;  %4147 = vmatpush.bf16.msra.mxu1 %v7809_v8  ;;  %v7749_v8 = vor.u32 %v9132_v46, %v7746_v2  ;;  %v7845_v5 = vor.u32 %v9156_v7, %v7842_v25  ;;  %v7778_v34 = vld [vmem:[%s13832_s13 + $0x238] sm:$0xf0]  ;;  %v9199_v46 = vld [vmem:[%s13834_s15 + $0xdc] sm:$0xf0]  ;;  %v9108_v25 = vld [vmem:[%s13832_s13 + $0x12c] sm:$0xf] }
 0x409   :  { %4134 = vmatpush.bf16.msra.mxu0 %v7681_v13  ;;  %v9128_v13 = vld [vmem:[%s13832_s13 + $0x1cc] sm:$0xf] }
 0x40a   :  { %v7733_v22 = vor.u32 %v9128_v13, %v7730_v14  ;;  %v9191_v13 = vld [vmem:[%s13834_s15 + $0x9c] sm:$0xf0] }
 0x40b   :  { %4120 = vmatpush.bf16.msra.mxu3 %v7569_v17  ;;  %v7557_v17 = vor.u32 %v9084_v10, %v7554_v12  ;;  %v7650_v10 = vld [vmem:[%s13832_s13 + $0x138] sm:$0xf0]  ;;  %v7964_v12 = vld [vmem:[%s13834_s15 + $0x80] sm:$0xf] }
 0x40c   :  { %4148 = vmatpush.bf16.msra.mxu1 %v7793_v20  ;;  %v9231_v20 = vld [vmem:[%s13834_s15 + $0x1dc] sm:$0xf0]  ;;  %v7965_v16 = vor.u32 %v9191_v13, %v7964_v12 }
 0x40d   :  { %4135 = vmatpush.bf16.msra.mxu0 %v7665_v9  ;;  %4099 = vmatmul.bf16.vlgmr.msrb.gmra.mxu2 %v12270_v57  ;;  %v8125_v9 = vor.u32 %v9231_v20, %v8124_v19  ;;  %v8604_v13 = vld [vmem:[%s13834_s15 + $0x580] sm:$0xf] }
 0x40e   :  { %7895 = vmatmul.msk.bf16.vlgmr.msrb.gmra.mxu3 %vm3113_vm4, %v12233_v38  ;;  %4169 = vmatpush.bf16.msrb.mxu2 %v7621_v40  ;;  %v9124_v40 = vld [vmem:[%s13832_s13 + $0x1ac] sm:$0xf] }
 0x40f   :  { %4121 = vmatpush.bf16.msra.mxu3 %v7553_v30  ;;  %v7541_v30 = vor.u32 %v9080_v18, %v7538_v23  ;;  %v7717_v39 = vor.u32 %v9124_v40, %v7714_v28  ;;  %v7932_v18 = vld [vmem:[%s13834_s15 + $0x40] sm:$0xf] }
 0x410   :  { %4149 = vmatpush.bf16.msra.mxu1 %v7777_v36  ;;  %v8093_v36 = vor.u32 %v9223_v26, %v8092_v24  ;;  %v9175_v23 = vld [vmem:[%s13834_s15 + $0x1c] sm:$0xf0]  ;;  %v8382_v24 = vld [vmem:[%s13834_s15 + $0x3e0] sm:$0xf0] }
 0x411   :  { %4136 = vmatpush.bf16.msra.mxu0 %v7649_v27  ;;  %v9120_v27 = vld [vmem:[%s13832_s13 + $0x18c] sm:$0xf]  ;;  %v8348_v40 = vld [vmem:[%s13834_s15 + $0x380] sm:$0xf] }
 0x412   :  { %4170 = vmatpush.bf16.msrb.mxu2 %v7605_v48  ;;  %v7813_v48 = vor.u32 %v9148_v21, %v7810_v31  ;;  %v9287_v28 = vld [vmem:[%s13834_s15 + $0x39c] sm:$0xf0]  ;;  %v8350_v21 = vld [vmem:[%s13834_s15 + $0x3a0] sm:$0xf0] }
 0x413   :  { %4122 = vmatpush.bf16.msra.mxu3 %v7537_v52  ;;  %v7701_v52 = vor.u32 %v9120_v27, %v7698_v44  ;;  %v8316_v31 = vld [vmem:[%s13834_s15 + $0x340] sm:$0xf] }
 0x414   :  { %4150 = vmatpush.bf16.msra.mxu1 %v7761_v56  ;;  %v8061_v56 = vor.u32 %v9215_v47, %v8060_v45  ;;  %v8284_v44 = vld [vmem:[%s13834_s15 + $0x300] sm:$0xf]  ;;  %v9267_v47 = vld [vmem:[%s13834_s15 + $0x304] sm:$0xf] }
 0x415   :  { %4137 = vmatpush.bf16.msra.mxu0 %v7633_v59  ;;  %v9207_v59 = vld [vmem:[%s13834_s15 + $0x11c] sm:$0xf0] }
 0x416   :  { %4171 = vmatpush.bf16.msrb.mxu2 %v7589_v35  ;;  %v9295_v35 = vld [vmem:[%s13834_s15 + $0x3dc] sm:$0xf0]  ;;  %v8029_v0 = vor.u32 %v9207_v59, %v8028_v33  ;;  %v9251_v59 = vld [vmem:[%s13834_s15 + $0x284] sm:$0xf] }
 0x417   :  { %4123 = vmatpush.bf16.msra.mxu3 %v7521_v63  ;;  %4151 = vmatmul.bf16.vlgmr.msra.gmra.mxu1 %v12270_v57  ;;  %v9140_v63 = vld [vmem:[%s13832_s13 + $0x22c] sm:$0xf]  ;;  %v9271_v45 = vld [vmem:[%s13834_s15 + $0x31c] sm:$0xf0] }
 0x418   :  { %4215 = vmatpush.bf16.msrb.mxu1 %v7893_v60  ;;  %4138 = vmatmul.bf16.vlgmr.msra.gmra.mxu0 %v12268_v55  ;;  %v7797_v60 = vor.u32 %v9144_v49, %v7794_v51  ;;  %v8252_v51 = vld [vmem:[%s13834_s15 + $0x2c0] sm:$0xf] }
 0x419   :  { %4195 = vmatpush.bf16.msrb.mxu0 %v7877_v61  ;;  %v8380_v61 = vld [vmem:[%s13834_s15 + $0x3c0] sm:$0xf] }
 0x41a   :  { %4172 = vmatpush.bf16.msrb.mxu2 %v7573_v4  ;;  %v8381_v2 = vor.u32 %v9295_v35, %v8380_v61  ;;  %v9136_v4 = vld [vmem:[%s13832_s13 + $0x20c] sm:$0xf]  ;;  %v9255_v33 = vld [vmem:[%s13834_s15 + $0x29c] sm:$0xf0]  ;;  %v8222_v61 = vld [vmem:[%s13834_s15 + $0x2a0] sm:$0xf0] }
 0x41b   :  { %4124 = vmatpush.bf16.msra.mxu3 %v7505_v6  ;;  %v7762_v6 = vld [vmem:[%s13832_s13 + $0x218] sm:$0xf0]  ;;  %v8225_v35 = vor.u32 %v9251_v59, %v8222_v61  ;;  %v8444_v59 = vld [vmem:[%s13834_s15 + $0x440] sm:$0xf]  ;;  %v9307_v61 = vld [vmem:[%s13834_s15 + $0x444] sm:$0xf] }
 0x41c   :  { %5450 = vmatpush.bf16.msra.mxu1 %v8125_v9  ;;  %v7765_v14 = vor.u32 %v9136_v4, %v7762_v6  ;;  %v9291_v9 = vld [vmem:[%s13834_s15 + $0x3c4] sm:$0xf]  ;;  %v8636_v4 = vld [vmem:[%s13834_s15 + $0x5c0] sm:$0xf] }
 0x41d   :  { %4196 = vmatpush.bf16.msrb.mxu0 %v7861_v3  ;;  %7896 = vmatmul.msk.bf16.vlgmr.msra.gmra.mxu2 %vm3113_vm4, %v12233_v38  ;;  %v7781_v3 = vor.u32 %v9140_v63, %v7778_v34  ;;  %v9247_v63 = vld [vmem:[%s13834_s15 + $0x25c] sm:$0xf0]  ;;  %v9243_v34 = vld [vmem:[%s13834_s15 + $0x244] sm:$0xf] }
 0x41e   :  { %4125 = vmatmul.bf16.vlgmr.msra.gmra.mxu3 %v12225_v37  ;;  %4173 = vmatpush.bf16.msrb.mxu2 %v7557_v17  ;;  %v7634_v17 = vld [vmem:[%s13832_s13 + $0x118] sm:$0xf0]  ;;  %v9359_v6 = vld [vmem:[%s13834_s15 + $0x5dc] sm:$0xf0] }
 0x41f   :  { %4182 = vmatpush.bf16.msrb.mxu3 %v7749_v8  ;;  %v7997_v8 = vor.u32 %v9199_v46, %v7996_v1  ;;  %v7637_v19 = vor.u32 %v9104_v15, %v7634_v17  ;;  %v9239_v1 = vld [vmem:[%s13834_s15 + $0x21c] sm:$0xf0]  ;;  %v9235_v46 = vld [vmem:[%s13834_s15 + $0x204] sm:$0xf] }
 0x420   :  { %5451 = vmatpush.bf16.msra.mxu1 %v8093_v36  ;;  %v9279_v36 = vld [vmem:[%s13834_s15 + $0x35c] sm:$0xf0] }
 0x421   :  { %4197 = vmatpush.bf16.msrb.mxu0 %v7845_v5  ;;  %v7653_v5 = vor.u32 %v9108_v25, %v7650_v10  ;;  %v8317_v43 = vor.u32 %v9279_v36, %v8316_v31  ;;  %v8637_v25 = vor.u32 %v9359_v6, %v8636_v4  ;;  %v8638_v10 = vld [vmem:[%s13834_s15 + $0x5e0] sm:$0xf0]  ;;  %v8508_v36 = vld [vmem:[%s13834_s15 + $0x4c0] sm:$0xf] }
 0x422   :  { %4174 = vmatpush.bf16.msrb.mxu2 %v7541_v30  ;;  %v8349_v30 = vor.u32 %v9287_v28, %v8348_v40  ;;  %v9335_v40 = vld [vmem:[%s13834_s15 + $0x51c] sm:$0xf0]  ;;  %v9331_v28 = vld [vmem:[%s13834_s15 + $0x504] sm:$0xf] }
 0x423   :  { %4183 = vmatpush.bf16.msrb.mxu3 %v7733_v22  ;;  %v7900_v22 = vld [vmem:[%s13834_s15] sm:$0xf] }
 0x424   :  { %5452 = vmatpush.bf16.msra.mxu1 %v8061_v56  ;;  %v7901_v26 = vor.u32 %v9175_v23, %v7900_v22  ;;  %v8257_v56 = vor.u32 %v9259_v53, %v8254_v54  ;;  %v8478_v54 = vld [vmem:[%s13834_s15 + $0x4a0] sm:$0xf0]  ;;  %v8412_v6 = vld [vmem:[%s13834_s15 + $0x400] sm:$0xf] }
 0x425   :  { %4198 = vmatpush.bf16.msrb.mxu0 %v7829_v29  ;;  %v9283_v29 = vld [vmem:[%s13834_s15 + $0x384] sm:$0xf] }
 0x426   :  { %4175 = vmatpush.bf16.msrb.mxu2 %v7525_v50  ;;  %v8286_v50 = vld [vmem:[%s13834_s15 + $0x320] sm:$0xf0] }
 0x427   :  { %4184 = vmatpush.bf16.msrb.mxu3 %v7717_v39  ;;  %7897 = vmatmul.msk.bf16.vlgmr.msrb.gmra.mxu1 %vm3113_vm4, %v12233_v38  ;;  %v7666_v38 = vld [vmem:[%s13832_s13 + $0x158] sm:$0xf0]  ;;  %v9275_v39 = vld [vmem:[%s13834_s15 + $0x344] sm:$0xf]  ;;  %v8289_v49 = vor.u32 %v9267_v47, %v8286_v50  ;;  %v8476_v50 = vld [vmem:[%s13834_s15 + $0x480] sm:$0xf] }
 0x428   :  { %v7669_v7 = vor.u32 %v9112_v42, %v7666_v38  ;;  %5453 = vmatpush.bf16.msra.mxu1 %v8029_v0  ;;  %v8321_v27 = vor.u32 %v9275_v39, %v8318_v11  ;;  %v8190_v42 = vld [vmem:[%s13834_s15 + $0x260] sm:$0xf0]  ;;  %v8156_v38 = vld [vmem:[%s13834_s15 + $0x200] sm:$0xf] }
 0x429   :  { %4199 = vmatpush.bf16.msrb.mxu0 %v7813_v48  ;;  %v8285_v48 = vor.u32 %v9271_v45, %v8284_v44  ;;  %v8193_v0 = vor.u32 %v9243_v34, %v8190_v42  ;;  %v9327_v39 = vld [vmem:[%s13834_s15 + $0x4dc] sm:$0xf0]  ;;  %v8510_v44 = vld [vmem:[%s13834_s15 + $0x4e0] sm:$0xf0]  ;;  %v9360_v34 = vld [vmem:[%s13834_s15 + $0x5e4] sm:$0xf0] }
 0x42a   :  { %4176 = vmatpush.bf16.msrb.mxu2 %v7509_v62  ;;  %v8188_v62 = vld [vmem:[%s13834_s15 + $0x240] sm:$0xf]  ;;  %v8446_v42 = vld [vmem:[%s13834_s15 + $0x460] sm:$0xf0] }
 0x42b   :  { %4185 = vmatpush.bf16.msrb.mxu3 %v7701_v52  ;;  %v9263_v52 = vld [vmem:[%s13834_s15 + $0x2dc] sm:$0xf0] }
 0x42c   :  { %5454 = vmatpush.bf16.msra.mxu1 %v7997_v8  ;;  %v8253_v32 = vor.u32 %v9263_v52, %v8252_v51  ;;  %v9355_v8 = vld [vmem:[%s13834_s15 + $0x5c4] sm:$0xf] }
 0x42d   :  { %4200 = vmatpush.bf16.msrb.mxu0 %v7797_v60  ;;  %4177 = vmatmul.bf16.vlgmr.msrb.gmra.mxu2 %v12225_v37  ;;  %v9183_v37 = vld [vmem:[%s13834_s15 + $0x5c] sm:$0xf0]  ;;  %v8221_v60 = vor.u32 %v9255_v33, %v8220_v58  ;;  %v8641_v12 = vor.u32 %v9355_v8, %v8638_v10  ;;  %v9315_v51 = vld [vmem:[%s13834_s15 + $0x484] sm:$0xf] }
 0x42e   :  { %5463 = vmatpush.bf16.msra.mxu2 %v8381_v2  ;;  %v7933_v20 = vor.u32 %v9183_v37, %v7932_v18  ;;  %v8157_v2 = vor.u32 %v9239_v1, %v8156_v38  ;;  %v8572_v37 = vld [vmem:[%s13834_s15 + $0x540] sm:$0xf] }
 0x42f   :  { %4186 = vmatpush.bf16.msrb.mxu3 %v7685_v41  ;;  %v8189_v41 = vor.u32 %v9247_v63, %v8188_v62  ;;  %v8644_v63 = vld [vmem:[%s13834_s15 + $0x5c8] sm:$0xf]  ;;  %v4421_v38 = vld [vmem:[%s13834_s15 + $0x600] sm:$0xff] }
 0x430   :  { %5455 = vmatpush.bf16.msra.mxu1 %v7965_v16  ;;  %v8606_v16 = vld [vmem:[%s13834_s15 + $0x5a0] sm:$0xf0]  ;;  %v8645_v4 = vor.u32 %v9360_v34, %v8644_v63 }
 0x431   :  { %4201 = vmatpush.bf16.msrb.mxu0 %v7781_v3  ;;  %v8158_v3 = vld [vmem:[%s13834_s15 + $0x220] sm:$0xf0] }
 0x432   :  { %5464 = vmatpush.bf16.msra.mxu2 %v8349_v30  ;;  %v8542_v30 = vld [vmem:[%s13834_s15 + $0x520] sm:$0xf0] }
 0x433   :  { %4187 = vmatpush.bf16.msrb.mxu3 %v7669_v7  ;;  %v8161_v7 = vor.u32 %v9235_v46, %v8158_v3 }
 0x434   :  { %5456 = vmatpush.bf16.msra.mxu1 %v7933_v20  ;;  %v9339_v20 = vld [vmem:[%s13834_s15 + $0x544] sm:$0xf] }
 0x435   :  { %4202 = vmatpush.bf16.msrb.mxu0 %v7765_v14  ;;  %v9351_v14 = vld [vmem:[%s13834_s15 + $0x59c] sm:$0xf0] }
 0x436   :  { %5465 = vmatpush.bf16.msra.mxu2 %v8317_v43  ;;  %v8605_v15 = vor.u32 %v9351_v14, %v8604_v13  ;;  %v9323_v43 = vld [vmem:[%s13834_s15 + $0x4c4] sm:$0xf]  ;;  %v9352_v13 = vld [vmem:[%s13834_s15 + $0x5a4] sm:$0xf0] }
 0x437   :  { %4188 = vmatpush.bf16.msrb.mxu3 %v7653_v5  ;;  %v9347_v5 = vld [vmem:[%s13834_s15 + $0x584] sm:$0xf]  ;;  %v8513_v45 = vor.u32 %v9323_v43, %v8510_v44 }
 0x438   :  { %4203 = vmatmul.bf16.vlgmr.msrb.gmra.mxu0 %v12270_v57  ;;  %v8385_v57 = vor.u32 %v9291_v9, %v8382_v24  ;;  %5457 = vmatpush.bf16.msra.mxu1 %v7901_v26  ;;  %v8609_v17 = vor.u32 %v9347_v5, %v8606_v16  ;;  %v8574_v9 = vld [vmem:[%s13834_s15 + $0x560] sm:$0xf0]  ;;  %v12724_v26 = vld [vmem:[%s13835_s14] sm:$0xf]  ;;  %v5024_v16 = vunpack.c.h.b16 %v4421_v38 }
 0x439   :  { %v8577_v24 = vor.u32 %v9339_v20, %v8574_v9  ;;  %v3503_v46 = vperm.slane %v12724_v26, 1 }
 0x43a   :  { %5466 = vmatpush.bf16.msra.mxu2 %v8285_v48 }
 0x43b   :  { %4189 = vmatpush.bf16.msrb.mxu3 %v7637_v19  ;;  %v9343_v19 = vld [vmem:[%s13834_s15 + $0x55c] sm:$0xf0] }
 0x43c   :  { %5515 = vmatpush.bf16.msrb.mxu1 %v8385_v57  ;;  %v8573_v23 = vor.u32 %v9343_v19, %v8572_v37  ;;  %v8540_v57 = vld [vmem:[%s13834_s15 + $0x500] sm:$0xf]  ;;  %v8126_v37 = vld [vmem:[%s13834_s15 + $0x1e0] sm:$0xf0] }
 0x43e   :  { %4190 = vmatmul.bf16.vlgmr.msrb.gmra.mxu3 %v12268_v55  ;;  %v8353_v55 = vor.u32 %v9283_v29, %v8350_v21  ;;  %5467 = vmatpush.bf16.msra.mxu2 %v8253_v32  ;;  %v8541_v29 = vor.u32 %v9335_v40, %v8540_v57  ;;  %v8545_v21 = vor.u32 %v9331_v28, %v8542_v30  ;;  %v12816_v57 = vld [vmem:[%s13834_s15 + $0x608] sm:$0xff] }
 0x43f   :  { %5476 = vmatpush.bf16.msra.mxu3 %v8637_v25  ;;  %v9299_v25 = vld [vmem:[%s13834_s15 + $0x404] sm:$0xf]  ;;  %v8580_v28 = vld [vmem:[%s13834_s15 + $0x548] sm:$0xf] }
 0x440   :  { %5516 = vmatpush.bf16.msrb.mxu1 %v8353_v55  ;;  %v3502_v55 = vperm.slane %v12724_v26, 0 }
 0x442   :  { %5468 = vmatpush.bf16.msra.mxu2 %v8221_v60  ;;  %v9311_v60 = vld [vmem:[%s13834_s15 + $0x45c] sm:$0xf0] }
 0x443   :  { %5477 = vmatpush.bf16.msra.mxu3 %v8605_v15  ;;  %v8414_v15 = vld [vmem:[%s13834_s15 + $0x420] sm:$0xf0] }
 0x444   :  { %5517 = vmatpush.bf16.msrb.mxu1 %v8321_v27  ;;  %v8509_v27 = vor.u32 %v9327_v39, %v8508_v36  ;;  %v5025_v36 = vunpack.c.l.b16 %v12816_v57 }
 0x446   :  { %5469 = vmatpush.bf16.msra.mxu2 %v8189_v41  ;;  %v8445_v41 = vor.u32 %v9311_v60, %v8444_v59  ;;  %v9203_v59 = vld [vmem:[%s13834_s15 + $0x104] sm:$0xf] }
 0x447   :  { %5478 = vmatpush.bf16.msra.mxu3 %v8573_v23  ;;  %v5224_v23 = vpack.c.b16 %v5024_v16, %v5024_v16 }
 0x448   :  { %5518 = vmatpush.bf16.msrb.mxu1 %v8289_v49  ;;  %v9319_v49 = vld [vmem:[%s13834_s15 + $0x49c] sm:$0xf0] }
 0x449   :  { %v8477_v32 = vor.u32 %v9319_v49, %v8476_v50  ;;  %v5430_v30 = vsel %vm2660_vm0, %v5224_v23, 0  ;;  %v5225_v50 = vpack.c.b16 %v5025_v36, %v5025_v36  ;;  %v9211_v49 = vld [vmem:[%s13834_s15 + $0x144] sm:$0xf]  ;;  %v9232_v36 = vld [vmem:[%s13834_s15 + $0x1e4] sm:$0xf0] }
 0x44a   :  { %5470 = vmatpush.bf16.msra.mxu2 %v8157_v2  ;;  %v5023_v2 = vunpack.c.l.b16 %v4421_v38  ;;  %v9195_v38 = vld [vmem:[%s13834_s15 + $0xc4] sm:$0xf] }
 0x44b   :  { %5479 = vmatpush.bf16.msra.mxu3 %v8541_v29  ;;  %v9344_v29 = vld [vmem:[%s13834_s15 + $0x564] sm:$0xf0] }
 0x44c   :  { %5519 = vmatpush.bf16.msrb.mxu1 %v8257_v56  ;;  %v8481_v56 = vor.u32 %v9315_v51, %v8478_v54  ;;  %v5223_v5 = vpack.c.b16 %v5023_v2, %v5023_v2  ;;  %v8062_v51 = vld [vmem:[%s13834_s15 + $0x160] sm:$0xf0] }
 0x44e   :  { %5528 = vmatpush.bf16.msrb.mxu2 %v8641_v12  ;;  %v8612_v12 = vld [vmem:[%s13834_s15 + $0x588] sm:$0xf]  ;;  %v5427_v20 = vsel %vm2660_vm0, %v5223_v5, 0 }
 0x44f   :  { %5480 = vmatpush.bf16.msra.mxu3 %v8509_v27  ;;  %5496 = vmatpush.bf16.msra.mxu0 %v5427_v20  ;;  %v9179_v20 = vld [vmem:[%s13834_s15 + $0x44] sm:$0xf] }
 0x450   :  { %5520 = vmatpush.bf16.msrb.mxu1 %v8225_v35 }
 0x452   :  { %5529 = vmatpush.bf16.msrb.mxu2 %v8609_v17  ;;  %v8417_v17 = vor.u32 %v9299_v25, %v8414_v15  ;;  %v3504_v25 = vperm.slane %v12724_v26, 2 }
 0x453   :  { %5481 = vmatpush.bf16.msra.mxu3 %v8477_v32  ;;  %v8065_v32 = vor.u32 %v9211_v49, %v8062_v51 }
 0x454   :  { %5521 = vmatpush.bf16.msrb.mxu1 %v8193_v0  ;;  %v8449_v0 = vor.u32 %v9307_v61, %v8446_v42  ;;  %v5433_v61 = vsel %vm2660_vm0, %v5225_v50, 0  ;;  %v8484_v42 = vld [vmem:[%s13834_s15 + $0x488] sm:$0xf] }
 0x456   :  { %5530 = vmatpush.bf16.msrb.mxu2 %v8577_v24  ;;  %v8613_v24 = vor.u32 %v9352_v13, %v8612_v12  ;;  %v9187_v12 = vld [vmem:[%s13834_s15 + $0x84] sm:$0xf] }
 0x457   :  { %5482 = vmatpush.bf16.msra.mxu3 %v8445_v41  ;;  %v7966_v13 = vld [vmem:[%s13834_s15 + $0xa0] sm:$0xf0] }
 0x458   :  { %5522 = vmatpush.bf16.msrb.mxu1 %v8161_v7  ;;  %v9303_v7 = vld [vmem:[%s13834_s15 + $0x41c] sm:$0xf0]  ;;  %v7969_v15 = vor.u32 %v9187_v12, %v7966_v13  ;;  %v9209_v12 = vld [vmem:[%s13834_s15 + $0x12c] sm:$0xf0]  ;;  %v3505_v13 = vperm.slane %v12724_v26, 3 }
 0x459   :  { %v8413_v14 = vor.u32 %v9303_v7, %v8412_v6  ;;  %v8452_v6 = vld [vmem:[%s13834_s15 + $0x448] sm:$0xf]  ;;  %v8006_v26 = vld [vmem:[%s13834_s15 + $0xe8] sm:$0xf0] }
 0x45a   :  { %5531 = vmatpush.bf16.msrb.mxu2 %v8545_v21  ;;  %v9219_v21 = vld [vmem:[%s13834_s15 + $0x184] sm:$0xf]  ;;  %v9312_v7 = vld [vmem:[%s13834_s15 + $0x464] sm:$0xf0] }
 0x45b   :  { %5483 = vmatpush.bf16.msra.mxu3 %v8413_v14  ;;  %v8453_v5 = vor.u32 %v9312_v7, %v8452_v6  ;;  %v9208_v6 = vld [vmem:[%s13834_s15 + $0x124] sm:$0xf0]  ;;  %v9204_v7 = vld [vmem:[%s13834_s15 + $0x10c] sm:$0xf] }
 0x45e   :  { %5532 = vmatpush.bf16.msrb.mxu2 %v8513_v45  ;;  %v8548_v45 = vld [vmem:[%s13834_s15 + $0x508] sm:$0xf] }
 0x45f   :  { %5548 = vmatpush.bf16.msrb.mxu3 %v5430_v30  ;;  %v7902_v30 = vld [vmem:[%s13834_s15 + $0x20] sm:$0xf0] }
 0x462   :  { %5533 = vmatpush.bf16.msrb.mxu2 %v8481_v56 }
 0x466   :  { %5534 = vmatpush.bf16.msrb.mxu2 %v8449_v0  ;;  %v9320_v0 = vld [vmem:[%s13834_s15 + $0x4a4] sm:$0xf0] }
 0x467   :  { %v8485_v2 = vor.u32 %v9320_v0, %v8484_v42  ;;  %v8070_v42 = vld [vmem:[%s13834_s15 + $0x168] sm:$0xf0]  ;;  %v8076_v0 = vld [vmem:[%s13834_s15 + $0x150] sm:$0xf] }
 0x46a   :  { %5535 = vmatpush.bf16.msrb.mxu2 %v8417_v17  ;;  %v8420_v17 = vld [vmem:[%s13834_s15 + $0x408] sm:$0xf] }
 0x474   :  { %v4022_v18 = vpop.f32.mrf.mxu1 }
 0x475   :  { %v4061_v22 = vpop.f32.mrf.mxu0  ;;  %v4023_v47 = vadd.f32 %v4022_v18, %v3502_v55  ;;  %v9227_v18 = vld [vmem:[%s13834_s15 + $0x1c4] sm:$0xf] }
 0x476   :  { %v8094_v55 = vld [vmem:[%s13834_s15 + $0x1a0] sm:$0xf0] }
 0x477   :  { %v8097_v39 = vor.u32 %v9219_v21, %v8094_v55 }
 0x47c   :  { %v4024_v31 = vpop.f32.mrf.mxu1 }
 0x47d   :  { %v4063_v11 = vpop.f32.mrf.mxu0 }
 0x47e   :  { %v8581_v11 = vor.u32 %v9344_v29, %v8580_v28  ;;  %v9171_v29 = vld [vmem:[%s13834_s15 + $0x4] sm:$0xf] }
 0x480   :  { %v4035_v48 = vpop.f32.mrf.mxu2 }
 0x481   :  { %v4036_v52 = vadd.f32 %v4035_v48, %v4023_v47  ;;  %v4048_v53 = vpop.f32.mrf.mxu3  ;;  %v9336_v47 = vld [vmem:[%s13834_s15 + $0x524] sm:$0xf0] }
 0x483   :  { %v4049_v58 = vadd.f32 %v4048_v53, %v4036_v52  ;;  %v8549_v53 = vor.u32 %v9336_v47, %v8548_v45  ;;  %v9233_v45 = vld [vmem:[%s13834_s15 + $0x1ec] sm:$0xf0] }
 0x484   :  { %v4087_v33 = vpop.f32.mrf.mxu1 }
 0x485   :  { %v4062_v35 = vadd.f32 %v4061_v22, %v4049_v58  ;;  %v4074_v62 = vpop.f32.mrf.mxu0  ;;  %v8129_v22 = vor.u32 %v9227_v18, %v8126_v37  ;;  %v8516_v58 = vld [vmem:[%s13834_s15 + $0x4c8] sm:$0xf] }
 0x486   :  { %v4075_v19 = vadd.f32 %v4074_v62, %v3503_v46  ;;  %v9304_v18 = vld [vmem:[%s13834_s15 + $0x424] sm:$0xf0] }
 0x487   :  { %v4221_v1 = vmax.f32 %v4062_v35, 0.0  ;;  %5502 = vmatpush.bf16.msrb.mxu0 %v8129_v22  ;;  %v8030_v35 = vld [vmem:[%s13834_s15 + $0x120] sm:$0xf0] }
 0x488   :  { %v4037_v3 = vpop.f32.mrf.mxu2  ;;  %v4088_v31 = vadd.f32 %v4087_v33, %v4075_v19  ;;  %v9328_v33 = vld [vmem:[%s13834_s15 + $0x4e4] sm:$0xf0]  ;;  %v8033_v34 = vor.u32 %v9203_v59, %v8030_v35  ;;  %v7934_v22 = vld [vmem:[%s13834_s15 + $0x60] sm:$0xf0] }
 0x489   :  { %v12794_v8 = vpack.c.bf16 %v4221_v1, %v4221_v1  ;;  %v4050_v10 = vpop.f32.mrf.mxu3  ;;  %v8517_v63 = vor.u32 %v9328_v33, %v8516_v58  ;;  %v7998_v1 = vld [vmem:[%s13834_s15 + $0xe0] sm:$0xf0]  ;;  %v8108_v58 = vld [vmem:[%s13834_s15 + $0x190] sm:$0xf] }
 0x48a   :  { %v8001_v3 = vor.u32 %v9195_v38, %v7998_v1  ;;  %v5026_v10 = vunpack.c.h.b16 %v12816_v57  ;;  %v7937_v57 = vor.u32 %v9179_v20, %v7934_v22  ;;  %v9225_v33 = vld [vmem:[%s13834_s15 + $0x1ac] sm:$0xf0] }
 0x48b   :  { %5458 = vmatmul.bf16.vlgmr.msra.gmra.mxu1 %v12794_v8  ;;  %5503 = vmatpush.bf16.msrb.mxu0 %v8097_v39  ;;  %v9228_v39 = vld [vmem:[%s13834_s15 + $0x1cc] sm:$0xf]  ;;  %v8109_v35 = vor.u32 %v9225_v33, %v8108_v58  ;;  %v9217_v38 = vld [vmem:[%s13834_s15 + $0x16c] sm:$0xf0]  ;;  %v7908_v58 = vld [vmem:[%s13834_s15 + $0x8] sm:$0xf] }
 0x48c   :  { %v4089_v9 = vpop.f32.mrf.mxu1  ;;  %5580 = vmatpush.bf16.msra.mxu1 %v8645_v4  ;;  %v5226_v19 = vpack.c.b16 %v5026_v10, %v5026_v10  ;;  %v8044_v10 = vld [vmem:[%s13834_s15 + $0x110] sm:$0xf]  ;;  %v9176_v33 = vld [vmem:[%s13834_s15 + $0x24] sm:$0xf0] }
 0x48d   :  { %v4076_v40 = vpop.f32.mrf.mxu0  ;;  %v9201_v20 = vld [vmem:[%s13834_s15 + $0xec] sm:$0xf0] }
 0x48e   :  { %v5436_v28 = vsel %vm2660_vm0, %v5226_v19, 0  ;;  %v8012_v19 = vld [vmem:[%s13834_s15 + $0xd0] sm:$0xf] }
 0x48f   :  { %5504 = vmatpush.bf16.msrb.mxu0 %v8065_v32  ;;  %v9224_v32 = vld [vmem:[%s13834_s15 + $0x1a4] sm:$0xf0] }
 0x490   :  { %v4100_v43 = vpop.f32.mrf.mxu2  ;;  %5581 = vmatpush.bf16.msra.mxu1 %v8613_v24  ;;  %v8421_v24 = vor.u32 %v9304_v18, %v8420_v17  ;;  %v9200_v17 = vld [vmem:[%s13834_s15 + $0xe4] sm:$0xf0]  ;;  %v9196_v18 = vld [vmem:[%s13834_s15 + $0xcc] sm:$0xf] }
 0x491   :  { %v4101_v27 = vadd.f32 %v4100_v43, %v4088_v31  ;;  %v4113_v44 = vpop.f32.mrf.mxu3  ;;  %v8132_v31 = vld [vmem:[%s13834_s15 + $0x1c8] sm:$0xf]  ;;  %v7905_v43 = vor.u32 %v9171_v29, %v7902_v30  ;;  %v9188_v29 = vld [vmem:[%s13834_s15 + $0x8c] sm:$0xf] }
 0x493   :  { %v4114_v48 = vadd.f32 %v4113_v44, %v4101_v27  ;;  %5505 = vmatpush.bf16.msrb.mxu0 %v8033_v34  ;;  %v8134_v27 = vld [vmem:[%s13834_s15 + $0x1e8] sm:$0xf0]  ;;  %v8140_v44 = vld [vmem:[%s13834_s15 + $0x1d0] sm:$0xf] }
 0x494   :  { %v4152_v52 = vpop.f32.mrf.mxu1  ;;  %5582 = vmatpush.bf16.msra.mxu1 %v8581_v11  ;;  %v8137_v51 = vor.u32 %v9228_v39, %v8134_v27  ;;  %v9212_v34 = vld [vmem:[%s13834_s15 + $0x14c] sm:$0xf] }
 0x495   :  { %v4222_v54 = vmax.f32 %v4114_v48, 0.0  ;;  %v4139_v56 = vpop.f32.mrf.mxu0  ;;  %v8133_v48 = vor.u32 %v9232_v36, %v8132_v31  ;;  %v9193_v31 = vld [vmem:[%s13834_s15 + $0xac] sm:$0xf0] }
 0x497   :  { %v12853_v60 = vpack.c.bf16 %v4222_v54, %v4222_v54  ;;  %5506 = vmatpush.bf16.msrb.mxu0 %v8001_v3  ;;  %v9220_v54 = vld [vmem:[%s13834_s15 + $0x18c] sm:$0xf]  ;;  %v8077_v3 = vor.u32 %v9217_v38, %v8076_v0 }
 0x498   :  { %v4102_v62 = vpop.f32.mrf.mxu2  ;;  %5583 = vmatpush.bf16.msra.mxu1 %v8549_v53  ;;  %v8100_v53 = vld [vmem:[%s13834_s15 + $0x188] sm:$0xf] }
 0x499   :  { %v4115_v41 = vpop.f32.mrf.mxu3  ;;  %5471 = vmatmul.bf16.vlgmr.msra.gmra.mxu2 %v12853_v60  ;;  %v8101_v59 = vor.u32 %v9224_v32, %v8100_v53  ;;  %v8068_v62 = vld [vmem:[%s13834_s15 + $0x148] sm:$0xf] }
 0x49a   :  { %5600 = vmatpush.bf16.msra.mxu2 %v5433_v61  ;;  %v8388_v53 = vld [vmem:[%s13834_s15 + $0x3c8] sm:$0xf] }
 0x49b   :  { %5523 = vmatmul.bf16.vlgmr.msrb.gmra.mxu1 %v12853_v60  ;;  %5507 = vmatpush.bf16.msrb.mxu0 %v7969_v15  ;;  %v8045_v15 = vor.u32 %v9209_v12, %v8044_v10  ;;  %v9296_v32 = vld [vmem:[%s13834_s15 + $0x3e4] sm:$0xf0] }
 0x49c   :  { %v4154_v46 = vpop.f32.mrf.mxu1  ;;  %5584 = vmatpush.bf16.msra.mxu1 %v8517_v63  ;;  %v9216_v63 = vld [vmem:[%s13834_s15 + $0x164] sm:$0xf0]  ;;  %v8389_v38 = vor.u32 %v9296_v32, %v8388_v53 }
 0x49d   :  { %v4141_v4 = vpop.f32.mrf.mxu0  ;;  %v8069_v46 = vor.u32 %v9216_v63, %v8068_v62  ;;  %v7916_v62 = vld [vmem:[%s13834_s15 + $0x10] sm:$0xf]  ;;  %v8260_v53 = vld [vmem:[%s13834_s15 + $0x2c8] sm:$0xf] }
 0x49e   :  { %v8036_v4 = vld [vmem:[%s13834_s15 + $0x108] sm:$0xf]  ;;  %v9177_v63 = vld [vmem:[%s13834_s15 + $0x2c] sm:$0xf0] }
 0x49f   :  { %5508 = vmatpush.bf16.msrb.mxu0 %v7937_v57  ;;  %v8013_v57 = vor.u32 %v9201_v20, %v8012_v19  ;;  %v7917_v12 = vor.u32 %v9177_v63, %v7916_v62  ;;  %v8366_v19 = vld [vmem:[%s13834_s15 + $0x3b0] sm:$0xf0]  ;;  %v8324_v20 = vld [vmem:[%s13834_s15 + $0x348] sm:$0xf] }
 0x4a0   :  { %v4165_v14 = vpop.f32.mrf.mxu2  ;;  %5585 = vmatpush.bf16.msra.mxu1 %v8485_v2  ;;  %v8073_v2 = vor.u32 %v9212_v34, %v8070_v42  ;;  %v8390_v42 = vld [vmem:[%s13834_s15 + $0x3e8] sm:$0xf0]  ;;  %v9264_v32 = vld [vmem:[%s13834_s15 + $0x2e4] sm:$0xf0]  ;;  %v9261_v62 = vld [vmem:[%s13834_s15 + $0x2d4] sm:$0xf] }
 0x4a1   :  { %v4126_v16 = vpop.f32.mrf.mxu3  ;;  %v8270_v63 = vld [vmem:[%s13834_s15 + $0x2f0] sm:$0xf0] }
 0x4a2   :  { %v4127_v37 = vadd.f32 %v4126_v16, %v3504_v25  ;;  %v8038_v25 = vld [vmem:[%s13834_s15 + $0x128] sm:$0xf0]  ;;  %v8004_v16 = vld [vmem:[%s13834_s15 + $0xc8] sm:$0xf] }
 0x4a3   :  { %5509 = vmatpush.bf16.msrb.mxu0 %v7905_v43 }
 0x4a4   :  { %v4140_v23 = vadd.f32 %v4139_v56, %v4127_v37  ;;  %v12899_v9 = vpop.f32.mrf.mxu1  ;;  %5586 = vmatpush.bf16.msra.mxu1 %v8453_v5  ;;  %v8102_v56 = vld [vmem:[%s13834_s15 + $0x1a8] sm:$0xf0]  ;;  %v8041_v5 = vor.u32 %v9204_v7, %v8038_v25  ;;  %v8356_v7 = vld [vmem:[%s13834_s15 + $0x388] sm:$0xf] }
 0x4a5   :  { %v8105_v61 = vor.u32 %v9220_v54, %v8102_v56  ;;  %v9288_v25 = vld [vmem:[%s13834_s15 + $0x3a4] sm:$0xf0] }
 0x4a6   :  { %v4153_v40 = vadd.f32 %v4152_v52, %v4140_v23  ;;  %v8141_v52 = vor.u32 %v9233_v45, %v8140_v44  ;;  %v8005_v23 = vor.u32 %v9200_v17, %v8004_v16  ;;  %v7940_v44 = vld [vmem:[%s13834_s15 + $0x48] sm:$0xf]  ;;  %v8357_v17 = vor.u32 %v9288_v25, %v8356_v7  ;;  %v9253_v7 = vld [vmem:[%s13834_s15 + $0x294] sm:$0xf] }
 0x4a7   :  { %v9184_v45 = vld [vmem:[%s13834_s15 + $0x64] sm:$0xf0]  ;;  %v8238_v25 = vld [vmem:[%s13834_s15 + $0x2b0] sm:$0xf0] }
 0x4a8   :  { %v4166_v21 = vadd.f32 %v4165_v14, %v4153_v40  ;;  %v4167_v55 = vpop.f32.mrf.mxu2  ;;  %5587 = vmatpush.bf16.msra.mxu1 %v8421_v24  ;;  %v8037_v14 = vor.u32 %v9208_v6, %v8036_v4  ;;  %v8009_v24 = vor.u32 %v9196_v18, %v8006_v26  ;;  %v7972_v40 = vld [vmem:[%s13834_s15 + $0x88] sm:$0xf]  ;;  %v7941_v56 = vor.u32 %v9184_v45, %v7940_v44  ;;  %v8398_v6 = vld [vmem:[%s13834_s15 + $0x3f0] sm:$0xf0]  ;;  %v8364_v18 = vld [vmem:[%s13834_s15 + $0x390] sm:$0xf] }
 0x4a9   :  { %v4128_v11 = vpop.f32.mrf.mxu3  ;;  %v7980_v55 = vld [vmem:[%s13834_s15 + $0x90] sm:$0xf]  ;;  %v7909_v4 = vor.u32 %v9176_v33, %v7908_v58  ;;  %v9285_v26 = vld [vmem:[%s13834_s15 + $0x394] sm:$0xf]  ;;  %v9260_v58 = vld [vmem:[%s13834_s15 + $0x2cc] sm:$0xf] }
 0x4aa   :  { %v4223_v47 = vmax.f32 %v4166_v21, 0.0  ;;  %v7974_v21 = vld [vmem:[%s13834_s15 + $0xa8] sm:$0xf0]  ;;  %v7981_v27 = vor.u32 %v9193_v31, %v7980_v55  ;;  %v9277_v55 = vld [vmem:[%s13834_s15 + $0x354] sm:$0xf] }
 0x4ab   :  { %v7977_v11 = vor.u32 %v9188_v29, %v7974_v21  ;;  %v9281_v21 = vld [vmem:[%s13834_s15 + $0x36c] sm:$0xf0]  ;;  %v8334_v31 = vld [vmem:[%s13834_s15 + $0x370] sm:$0xf0] }
 0x4ac   :  { %5652 = vmatpush.bf16.msrb.mxu1 %v5436_v28  ;;  %v12926_v50 = vpack.c.bf16 %v4223_v47, %v4223_v47  ;;  %v4219_v49 = vpop.f32.mrf.mxu1  ;;  %v9192_v28 = vld [vmem:[%s13834_s15 + $0xa4] sm:$0xf0]  ;;  %v9180_v47 = vld [vmem:[%s13834_s15 + $0x4c] sm:$0xf]  ;;  %v8337_v44 = vor.u32 %v9277_v55, %v8334_v31  ;;  %v9241_v55 = vld [vmem:[%s13834_s15 + $0x22c] sm:$0xf0] }
 0x4ad   :  { %v7973_v43 = vor.u32 %v9192_v28, %v7972_v40  ;;  %v7942_v49 = vld [vmem:[%s13834_s15 + $0x68] sm:$0xf0]  ;;  %v8369_v28 = vor.u32 %v9285_v26, %v8366_v19  ;;  %v9245_v26 = vld [vmem:[%s13834_s15 + $0x254] sm:$0xf] }
 0x4ae   :  { %5484 = vmatmul.bf16.vlgmr.msra.gmra.mxu3 %v12926_v50  ;;  %5536 = vmatmul.bf16.vlgmr.msrb.gmra.mxu2 %v12926_v50  ;;  %v8326_v40 = vld [vmem:[%s13834_s15 + $0x368] sm:$0xf0]  ;;  %v8206_v19 = vld [vmem:[%s13834_s15 + $0x270] sm:$0xf0] }
 0x4af   :  { %5554 = vmatpush.bf16.msra.mxu3 %v8133_v48  ;;  %5588 = vmatmul.bf16.vlgmr.msra.gmra.mxu1 %v12926_v50  ;;  %v9237_v31 = vld [vmem:[%s13834_s15 + $0x214] sm:$0xf] }
 0x4b0   :  { %5606 = vmatpush.bf16.msrb.mxu2 %v8137_v51  ;;  %5658 = vmatpush.bf16.msra.mxu1 %v8141_v52  ;;  %v4178_v41 = vpop.f32.mrf.mxu2  ;;  %v7948_v51 = vld [vmem:[%s13834_s15 + $0x50] sm:$0xf] }
 0x4b1   :  { %v4179_v30 = vadd.f32 %v4178_v41, %v3505_v13  ;;  %v9185_v52 = vld [vmem:[%s13834_s15 + $0x6c] sm:$0xf0]  ;;  %v9292_v41 = vld [vmem:[%s13834_s15 + $0x3cc] sm:$0xf] }
 0x4b2   :  { %v8393_v13 = vor.u32 %v9292_v41, %v8390_v42  ;;  %v9256_v41 = vld [vmem:[%s13834_s15 + $0x2a4] sm:$0xf0] }
 0x4b3   :  { %5555 = vmatpush.bf16.msra.mxu3 %v8101_v59  ;;  %v9172_v59 = vld [vmem:[%s13834_s15 + $0xc] sm:$0xf] }
 0x4b4   :  { %5607 = vmatpush.bf16.msrb.mxu2 %v8105_v61  ;;  %5659 = vmatpush.bf16.msra.mxu1 %v8109_v35  ;;  %v7945_v61 = vor.u32 %v9180_v47, %v7942_v49  ;;  %v7949_v35 = vor.u32 %v9185_v52, %v7948_v51  ;;  %v8294_v47 = vld [vmem:[%s13834_s15 + $0x328] sm:$0xf0]  ;;  %v9273_v49 = vld [vmem:[%s13834_s15 + $0x32c] sm:$0xf0]  ;;  %v9269_v51 = vld [vmem:[%s13834_s15 + $0x314] sm:$0xf] }
 0x4b5   :  { %v4204_v1 = vpop.f32.mrf.mxu0  ;;  %v8302_v52 = vld [vmem:[%s13834_s15 + $0x330] sm:$0xf0] }
 0x4b6   :  { %v8305_v33 = vor.u32 %v9269_v51, %v8302_v52  ;;  %v9362_v51 = vld [vmem:[%s13834_s15 + $0x5f4] sm:$0xf0]  ;;  %v9348_v52 = vld [vmem:[%s13834_s15 + $0x58c] sm:$0xf] }
 0x4b7   :  { %5556 = vmatpush.bf16.msra.mxu3 %v8069_v46  ;;  %v9297_v46 = vld [vmem:[%s13834_s15 + $0x3ec] sm:$0xf0] }
 0x4b8   :  { %5608 = vmatpush.bf16.msrb.mxu2 %v8073_v2  ;;  %5660 = vmatpush.bf16.msra.mxu1 %v8077_v3  ;;  %v4180_v37 = vpop.f32.mrf.mxu2  ;;  %v9293_v2 = vld [vmem:[%s13834_s15 + $0x3d4] sm:$0xf] }
 0x4b9   :  { %v8401_v16 = vor.u32 %v9293_v2, %v8398_v6  ;;  %v9289_v37 = vld [vmem:[%s13834_s15 + $0x3ac] sm:$0xf0] }
 0x4ba   :  { %v8236_v2 = vld [vmem:[%s13834_s15 + $0x290] sm:$0xf] }
 0x4bb   :  { %5557 = vmatpush.bf16.msra.mxu3 %v8037_v14 }
 0x4bc   :  { %5609 = vmatpush.bf16.msrb.mxu2 %v8041_v5  ;;  %5661 = vmatpush.bf16.msra.mxu1 %v8045_v15  ;;  %v9284_v5 = vld [vmem:[%s13834_s15 + $0x38c] sm:$0xf] }
 0x4bd   :  { %v4206_v22 = vpop.f32.mrf.mxu0  ;;  %v8358_v15 = vld [vmem:[%s13834_s15 + $0x3a8] sm:$0xf0] }
 0x4be   :  { %v9280_v22 = vld [vmem:[%s13834_s15 + $0x364] sm:$0xf0] }
 0x4bf   :  { %5558 = vmatpush.bf16.msra.mxu3 %v8005_v23  ;;  %v8361_v23 = vor.u32 %v9284_v5, %v8358_v15  ;;  %v8325_v29 = vor.u32 %v9280_v22, %v8324_v20  ;;  %v9244_v5 = vld [vmem:[%s13834_s15 + $0x24c] sm:$0xf]  ;;  %v8241_v15 = vor.u32 %v9253_v7, %v8238_v25  ;;  %v8164_v20 = vld [vmem:[%s13834_s15 + $0x208] sm:$0xf]  ;;  %v8596_v7 = vld [vmem:[%s13834_s15 + $0x558] sm:$0xf] }
 0x4c0   :  { %5610 = vmatpush.bf16.msrb.mxu2 %v8009_v24  ;;  %5662 = vmatpush.bf16.msra.mxu1 %v8013_v57  ;;  %v8365_v24 = vor.u32 %v9289_v37, %v8364_v18  ;;  %v9276_v57 = vld [vmem:[%s13834_s15 + $0x34c] sm:$0xf]  ;;  %v9249_v18 = vld [vmem:[%s13834_s15 + $0x26c] sm:$0xf0]  ;;  %v9240_v22 = vld [vmem:[%s13834_s15 + $0x224] sm:$0xf0] }
 0x4c1   :  { %v4191_v36 = vpop.f32.mrf.mxu3  ;;  %v9346_v25 = vld [vmem:[%s13834_s15 + $0x574] sm:$0xf0] }
 0x4c2   :  { %v4192_v39 = vadd.f32 %v4191_v36, %v4179_v30  ;;  %v8332_v30 = vld [vmem:[%s13834_s15 + $0x350] sm:$0xf]  ;;  %v8292_v36 = vld [vmem:[%s13834_s15 + $0x308] sm:$0xf] }
 0x4c3   :  { %5559 = vmatpush.bf16.msra.mxu3 %v7973_v43  ;;  %v8329_v43 = vor.u32 %v9276_v57, %v8326_v40  ;;  %v8646_v40 = vld [vmem:[%s13834_s15 + $0x5e8] sm:$0xf0] }
 0x4c4   :  { %v4205_v48 = vadd.f32 %v4204_v1, %v4192_v39  ;;  %5611 = vmatpush.bf16.msrb.mxu2 %v7977_v11  ;;  %5663 = vmatpush.bf16.msra.mxu1 %v7981_v27  ;;  %v8396_v1 = vld [vmem:[%s13834_s15 + $0x3d0] sm:$0xf]  ;;  %v9272_v39 = vld [vmem:[%s13834_s15 + $0x324] sm:$0xf0]  ;;  %v8333_v11 = vor.u32 %v9281_v21, %v8332_v30  ;;  %v9268_v27 = vld [vmem:[%s13834_s15 + $0x30c] sm:$0xf]  ;;  %v8209_v30 = vor.u32 %v9245_v26, %v8206_v19 }
 0x4c5   :  { %v8397_v14 = vor.u32 %v9297_v46, %v8396_v1  ;;  %v8293_v45 = vor.u32 %v9272_v39, %v8292_v36  ;;  %v8273_v1 = vor.u32 %v9261_v62, %v8270_v63  ;;  %v8230_v46 = vld [vmem:[%s13834_s15 + $0x2a8] sm:$0xf0]  ;;  %v8172_v21 = vld [vmem:[%s13834_s15 + $0x210] sm:$0xf]  ;;  %v8165_v36 = vor.u32 %v9240_v22, %v8164_v20  ;;  %v8174_v39 = vld [vmem:[%s13834_s15 + $0x230] sm:$0xf0] }
 0x4c6   :  { %v4218_v54 = vadd.f32 %v12899_v9, %v4205_v48  ;;  %v7910_v9 = vld [vmem:[%s13834_s15 + $0x28] sm:$0xf0]  ;;  %v8300_v48 = vld [vmem:[%s13834_s15 + $0x310] sm:$0xf]  ;;  %v8628_v62 = vld [vmem:[%s13834_s15 + $0x598] sm:$0xf] }
 0x4c7   :  { %5560 = vmatpush.bf16.msra.mxu3 %v7941_v56  ;;  %v7913_v10 = vor.u32 %v9172_v59, %v7910_v9  ;;  %v8301_v56 = vor.u32 %v9273_v49, %v8300_v48  ;;  %v8262_v59 = vld [vmem:[%s13834_s15 + $0x2e8] sm:$0xf0]  ;;  %v8261_v9 = vor.u32 %v9264_v32, %v8260_v53  ;;  %v8173_v49 = vor.u32 %v9241_v55, %v8172_v21  ;;  %v9354_v63 = vld [vmem:[%s13834_s15 + $0x5b4] sm:$0xf0]  ;;  %v8526_v21 = vld [vmem:[%s13834_s15 + $0x4f0] sm:$0xf0] }
 0x4c8   :  { %v4224_v34 = vmax.f32 %v4218_v54, 0.0  ;;  %5612 = vmatpush.bf16.msrb.mxu2 %v7945_v61  ;;  %5664 = vmatpush.bf16.msra.mxu1 %v7949_v35  ;;  %v8297_v54 = vor.u32 %v9268_v27, %v8294_v47  ;;  %v8268_v61 = vld [vmem:[%s13834_s15 + $0x2d0] sm:$0xf]  ;;  %v8265_v42 = vor.u32 %v9260_v58, %v8262_v59  ;;  %v8660_v47 = vld [vmem:[%s13834_s15 + $0x5d8] sm:$0xf]  ;;  %v8177_v32 = vor.u32 %v9237_v31, %v8174_v39 }
 0x4c9   :  { %v4193_v0 = vpop.f32.mrf.mxu3  ;;  %v9265_v35 = vld [vmem:[%s13834_s15 + $0x2ec] sm:$0xf0]  ;;  %v8614_v53 = vld [vmem:[%s13834_s15 + $0x5a8] sm:$0xf0]  ;;  %v8661_v59 = vor.u32 %v9362_v51, %v8660_v47  ;;  %v8564_v26 = vld [vmem:[%s13834_s15 + $0x518] sm:$0xf] }
 0x4ca   :  { %v13080_v3 = vpack.c.bf16 %v4224_v34, %v4224_v34  ;;  %v8228_v34 = vld [vmem:[%s13834_s15 + $0x288] sm:$0xf]  ;;  %v8269_v0 = vor.u32 %v9265_v35, %v8268_v61  ;;  %v8620_v58 = vld [vmem:[%s13834_s15 + $0x590] sm:$0xf]  ;;  %v8617_v61 = vor.u32 %v9348_v52, %v8614_v53  ;;  %v9349_v35 = vld [vmem:[%s13834_s15 + $0x594] sm:$0xf] }
 0x4cb   :  { %5561 = vmatpush.bf16.msra.mxu3 %v7909_v4  ;;  %v9257_v4 = vld [vmem:[%s13834_s15 + $0x2ac] sm:$0xf0]  ;;  %v8229_v6 = vor.u32 %v9256_v41, %v8228_v34  ;;  %v9340_v34 = vld [vmem:[%s13834_s15 + $0x54c] sm:$0xf]  ;;  %v9338_v19 = vld [vmem:[%s13834_s15 + $0x534] sm:$0xf0] }
 0x4cc   :  { %8666 = vmatmul.msk.bf16.vlgmr.msra.gmra.mxu0 %vm2656_vm1, %v13080_v3  ;;  %8667 = vmatmul.msk.bf16.vlgmr.msrb.gmra.mxu3 %vm2656_vm1, %v13080_v3  ;;  %v8582_v41 = vld [vmem:[%s13834_s15 + $0x568] sm:$0xf0]  ;;  %v8532_v55 = vld [vmem:[%s13834_s15 + $0x4d8] sm:$0xf]  ;;  %v8494_v51 = vld [vmem:[%s13834_s15 + $0x4b0] sm:$0xf0] }
 0x4cd   :  { %5567 = vmatpush.bf16.msra.mxu0 %v8389_v38  ;;  %8668 = vmatmul.msk.bf16.vlgmr.msra.gmra.mxu2 %vm2656_vm1, %v13080_v3  ;;  %v9252_v38 = vld [vmem:[%s13834_s15 + $0x28c] sm:$0xf]  ;;  %v9330_v31 = vld [vmem:[%s13834_s15 + $0x4f4] sm:$0xf0] }
 0x4ce   :  { %8669 = vmatmul.msk.bf16.vlgmr.msrb.gmra.mxu1 %vm2656_vm1, %v13080_v3  ;;  %5613 = vmatpush.bf16.msrb.mxu2 %v7913_v10  ;;  %v8196_v10 = vld [vmem:[%s13834_s15 + $0x248] sm:$0xf]  ;;  %v9324_v20 = vld [vmem:[%s13834_s15 + $0x4cc] sm:$0xf]  ;;  %v8533_v47 = vor.u32 %v9330_v31, %v8532_v55  ;;  %v8500_v52 = vld [vmem:[%s13834_s15 + $0x498] sm:$0xf] }
 0x4cf   :  { %5665 = vmatpush.bf16.msra.mxu1 %v7917_v12  ;;  %5619 = vmatpush.bf16.msrb.mxu3 %v8393_v13  ;;  %v9248_v12 = vld [vmem:[%s13834_s15 + $0x264] sm:$0xf0]  ;;  %v8233_v13 = vor.u32 %v9252_v38, %v8230_v46  ;;  %v8588_v38 = vld [vmem:[%s13834_s15 + $0x550] sm:$0xf]  ;;  %v8629_v46 = vor.u32 %v9354_v63, %v8628_v62  ;;  %v8518_v22 = vld [vmem:[%s13834_s15 + $0x4e8] sm:$0xf0] }
 0x4d0   :  { %v8197_v37 = vor.u32 %v9248_v12, %v8196_v10  ;;  %v9332_v10 = vld [vmem:[%s13834_s15 + $0x50c] sm:$0xf]  ;;  %v9322_v53 = vld [vmem:[%s13834_s15 + $0x4b4] sm:$0xf0]  ;;  %v8462_v63 = vld [vmem:[%s13834_s15 + $0x470] sm:$0xf0] }
 0x4d1   :  { %5568 = vmatpush.bf16.msra.mxu0 %v8357_v17  ;;  %v8204_v17 = vld [vmem:[%s13834_s15 + $0x250] sm:$0xf]  ;;  %v8550_v12 = vld [vmem:[%s13834_s15 + $0x528] sm:$0xf0]  ;;  %v8110_v55 = vld [vmem:[%s13834_s15 + $0x1b0] sm:$0xf0] }
 0x4d2   :  { %5671 = vmatpush.bf16.msra.mxu2 %v8397_v14  ;;  %v8237_v14 = vor.u32 %v9257_v4, %v8236_v2  ;;  %v8205_v57 = vor.u32 %v9249_v18, %v8204_v17  ;;  %v8585_v2 = vor.u32 %v9340_v34, %v8582_v41  ;;  %v9341_v4 = vld [vmem:[%s13834_s15 + $0x554] sm:$0xf]  ;;  %v8553_v17 = vor.u32 %v9332_v10, %v8550_v12  ;;  %v8486_v39 = vld [vmem:[%s13834_s15 + $0x4a8] sm:$0xf0]  ;;  %v8468_v34 = vld [vmem:[%s13834_s15 + $0x458] sm:$0xf] }
 0x4d3   :  { %5723 = vmatpush.bf16.msrb.mxu1 %v8401_v16  ;;  %5620 = vmatpush.bf16.msrb.mxu3 %v8361_v23  ;;  %v8198_v16 = vld [vmem:[%s13834_s15 + $0x268] sm:$0xf0]  ;;  %v9333_v18 = vld [vmem:[%s13834_s15 + $0x514] sm:$0xf]  ;;  %v4424_v41 = vld [vmem:[%s13834_s15 + $0x618] sm:$0xff] }
 0x4d4   :  { %v9356_v23 = vld [vmem:[%s13834_s15 + $0x5cc] sm:$0xf]  ;;  %v8428_v10 = vld [vmem:[%s13834_s15 + $0x410] sm:$0xf] }
 0x4d5   :  { %5569 = vmatpush.bf16.msra.mxu0 %v8325_v29  ;;  %v8166_v29 = vld [vmem:[%s13834_s15 + $0x228] sm:$0xf0]  ;;  %v8649_v27 = vor.u32 %v9356_v23, %v8646_v40  ;;  %v9329_v40 = vld [vmem:[%s13834_s15 + $0x4ec] sm:$0xf0] }
 0x4d6   :  { %5672 = vmatpush.bf16.msra.mxu2 %v8365_v24  ;;  %v8201_v24 = vor.u32 %v9244_v5, %v8198_v16  ;;  %v8556_v5 = vld [vmem:[%s13834_s15 + $0x510] sm:$0xf]  ;;  %v8597_v16 = vor.u32 %v9346_v25, %v8596_v7 }
 0x4d7   :  { %5724 = vmatpush.bf16.msrb.mxu1 %v8369_v28  ;;  %5621 = vmatpush.bf16.msrb.mxu3 %v8329_v43  ;;  %v9236_v28 = vld [vmem:[%s13834_s15 + $0x20c] sm:$0xf]  ;;  %v8652_v43 = vld [vmem:[%s13834_s15 + $0x5d0] sm:$0xf] }
 0x4d8   :  { %v8169_v48 = vor.u32 %v9236_v28, %v8166_v29  ;;  %v8565_v28 = vor.u32 %v9338_v19, %v8564_v26  ;;  %v8521_v29 = vor.u32 %v9324_v20, %v8518_v22  ;;  %v9305_v12 = vld [vmem:[%s13834_s15 + $0x42c] sm:$0xf0]  ;;  %v5030_v26 = vunpack.c.h.b16 %v4424_v41 }
 0x4d9   :  { %5570 = vmatpush.bf16.msra.mxu0 %v8293_v45  ;;  %v8654_v45 = vld [vmem:[%s13834_s15 + $0x5f0] sm:$0xf0]  ;;  %v8429_v19 = vor.u32 %v9305_v12, %v8428_v10  ;;  %v9202_v10 = vld [vmem:[%s13834_s15 + $0xf4] sm:$0xf0]  ;;  %v9198_v12 = vld [vmem:[%s13834_s15 + $0xdc] sm:$0xf] }
 0x4da   :  { %5673 = vmatpush.bf16.msra.mxu2 %v8333_v11  ;;  %v9361_v11 = vld [vmem:[%s13834_s15 + $0x5ec] sm:$0xf0]  ;;  %v5230_v31 = vpack.c.b16 %v5030_v26, %v5030_v26 }
 0x4db   :  { %5725 = vmatpush.bf16.msrb.mxu1 %v8337_v44  ;;  %5622 = vmatpush.bf16.msrb.mxu3 %v8297_v54  ;;  %v9357_v44 = vld [vmem:[%s13834_s15 + $0x5d4] sm:$0xf]  ;;  %v8653_v54 = vor.u32 %v9361_v11, %v8652_v43 }
 0x4dc   :  { %5510 = vmatmul.bf16.vlgmr.msrb.gmra.mxu0 %v12794_v8  ;;  %5562 = vmatmul.bf16.vlgmr.msra.gmra.mxu3 %v12794_v8 }
 0x4dd   :  { %5571 = vmatpush.bf16.msra.mxu0 %v8261_v9  ;;  %5614 = vmatmul.bf16.vlgmr.msrb.gmra.mxu2 %v12794_v8  ;;  %v8622_v9 = vld [vmem:[%s13834_s15 + $0x5b0] sm:$0xf0] }
 0x4de   :  { %5674 = vmatpush.bf16.msra.mxu2 %v8301_v56  ;;  %5666 = vmatmul.bf16.vlgmr.msra.gmra.mxu1 %v12794_v8  ;;  %v8657_v56 = vor.u32 %v9357_v44, %v8654_v45  ;;  %v9321_v44 = vld [vmem:[%s13834_s15 + $0x4ac] sm:$0xf0] }
 0x4df   :  { %5726 = vmatpush.bf16.msrb.mxu1 %v8305_v33  ;;  %5623 = vmatpush.bf16.msrb.mxu3 %v8265_v42  ;;  %v9353_v33 = vld [vmem:[%s13834_s15 + $0x5ac] sm:$0xf0] }
 0x4e0   :  { %v8621_v42 = vor.u32 %v9353_v33, %v8620_v58  ;;  %v4423_v45 = vld [vmem:[%s13834_s15 + $0x610] sm:$0xff] }
 0x4e1   :  { %5572 = vmatpush.bf16.msra.mxu0 %v8229_v6  ;;  %v8590_v6 = vld [vmem:[%s13834_s15 + $0x570] sm:$0xf0] }
 0x4e2   :  { %5675 = vmatpush.bf16.msra.mxu2 %v8269_v0  ;;  %v8625_v0 = vor.u32 %v9349_v35, %v8622_v9  ;;  %v9309_v35 = vld [vmem:[%s13834_s15 + $0x454] sm:$0xf]  ;;  %v8501_v9 = vor.u32 %v9322_v53, %v8500_v52  ;;  %v5448_v52 = vsel %vm2660_vm0, %v5230_v31, 0  ;;  %v9186_v31 = vld [vmem:[%s13834_s15 + $0x74] sm:$0xf0] }
 0x4e3   :  { %5727 = vmatpush.bf16.msrb.mxu1 %v8273_v1  ;;  %5624 = vmatpush.bf16.msrb.mxu3 %v8233_v13  ;;  %v9345_v1 = vld [vmem:[%s13834_s15 + $0x56c] sm:$0xf0] }
 0x4e4   :  { %v8589_v13 = vor.u32 %v9345_v1, %v8588_v38  ;;  %v8422_v38 = vld [vmem:[%s13834_s15 + $0x428] sm:$0xf0] }
 0x4e5   :  { %5573 = vmatpush.bf16.msra.mxu0 %v8197_v37  ;;  %v8558_v37 = vld [vmem:[%s13834_s15 + $0x530] sm:$0xf0] }
 0x4e6   :  { %5676 = vmatpush.bf16.msra.mxu2 %v8237_v14  ;;  %v8593_v14 = vor.u32 %v9341_v4, %v8590_v6  ;;  %v8465_v4 = vor.u32 %v9309_v35, %v8462_v63  ;;  %v5029_v6 = vunpack.c.l.b16 %v4424_v41  ;;  %v8046_v35 = vld [vmem:[%s13834_s15 + $0x130] sm:$0xf0] }
 0x4e7   :  { %5728 = vmatpush.bf16.msrb.mxu1 %v8241_v15  ;;  %5625 = vmatpush.bf16.msrb.mxu3 %v8201_v24  ;;  %v9337_v15 = vld [vmem:[%s13834_s15 + $0x52c] sm:$0xf0]  ;;  %v8561_v24 = vor.u32 %v9333_v18, %v8558_v37  ;;  %v8142_v18 = vld [vmem:[%s13834_s15 + $0x1f0] sm:$0xf0] }
 0x4e8   :  { %v8557_v23 = vor.u32 %v9337_v15, %v8556_v5  ;;  %v8436_v5 = vld [vmem:[%s13834_s15 + $0x418] sm:$0xf]  ;;  %v5229_v20 = vpack.c.b16 %v5029_v6, %v5029_v6 }
 0x4e9   :  { %5574 = vmatpush.bf16.msra.mxu0 %v8165_v36  ;;  %v9316_v36 = vld [vmem:[%s13834_s15 + $0x48c] sm:$0xf]  ;;  %v9306_v15 = vld [vmem:[%s13834_s15 + $0x434] sm:$0xf0] }
 0x4ea   :  { %5677 = vmatpush.bf16.msra.mxu2 %v8205_v57  ;;  %v8524_v57 = vld [vmem:[%s13834_s15 + $0x4d0] sm:$0xf] }
 0x4eb   :  { %5729 = vmatpush.bf16.msrb.mxu1 %v8209_v30  ;;  %5626 = vmatpush.bf16.msrb.mxu3 %v8169_v48  ;;  %v9325_v30 = vld [vmem:[%s13834_s15 + $0x4d4] sm:$0xf]  ;;  %v8525_v43 = vor.u32 %v9329_v40, %v8524_v57  ;;  %v8489_v48 = vor.u32 %v9316_v36, %v8486_v39  ;;  %v9234_v40 = vld [vmem:[%s13834_s15 + $0x1f4] sm:$0xf0]  ;;  %v5445_v36 = vsel %vm2660_vm0, %v5229_v20, 0 }
 0x4ec   :  { %5575 = vmatmul.bf16.vlgmr.msra.gmra.mxu0 %v12853_v60  ;;  %v8529_v11 = vor.u32 %v9325_v30, %v8526_v21  ;;  %v9221_v21 = vld [vmem:[%s13834_s15 + $0x194] sm:$0xf]  ;;  %v9190_v20 = vld [vmem:[%s13834_s15 + $0x9c] sm:$0xf] }
 0x4ed   :  { %5632 = vmatpush.bf16.msrb.mxu0 %v8649_v27  ;;  %v8492_v27 = vld [vmem:[%s13834_s15 + $0x490] sm:$0xf] }
 0x4ee   :  { %5678 = vmatpush.bf16.msra.mxu2 %v8173_v49  ;;  %5627 = vmatmul.bf16.vlgmr.msrb.gmra.mxu3 %v12853_v60  ;;  %v9317_v49 = vld [vmem:[%s13834_s15 + $0x494] sm:$0xf]  ;;  %v8493_v58 = vor.u32 %v9321_v44, %v8492_v27  ;;  %v8116_v27 = vld [vmem:[%s13834_s15 + $0x198] sm:$0xf]  ;;  %v8113_v44 = vor.u32 %v9221_v21, %v8110_v55 }
 0x4ef   :  { %5730 = vmatpush.bf16.msrb.mxu1 %v8177_v32  ;;  %5684 = vmatpush.bf16.msra.mxu3 %v8653_v54  ;;  %v9308_v32 = vld [vmem:[%s13834_s15 + $0x44c] sm:$0xf]  ;;  %v8497_v33 = vor.u32 %v9317_v49, %v8494_v51  ;;  %v9213_v49 = vld [vmem:[%s13834_s15 + $0x154] sm:$0xf] }
 0x4f0   :  { %v8454_v54 = vld [vmem:[%s13834_s15 + $0x468] sm:$0xf0]  ;;  %v8078_v51 = vld [vmem:[%s13834_s15 + $0x170] sm:$0xf0] }
 0x4f1   :  { %5633 = vmatpush.bf16.msrb.mxu0 %v8617_v61  ;;  %5679 = vmatmul.bf16.vlgmr.msra.gmra.mxu2 %v12853_v60  ;;  %v9313_v61 = vld [vmem:[%s13834_s15 + $0x46c] sm:$0xf0]  ;;  %v8457_v62 = vor.u32 %v9308_v32, %v8454_v54  ;;  %v8084_v54 = vld [vmem:[%s13834_s15 + $0x158] sm:$0xf] }
 0x4f2   :  { %5736 = vmatpush.bf16.msrb.mxu2 %v8657_v56  ;;  %5731 = vmatmul.bf16.vlgmr.msrb.gmra.mxu1 %v12853_v60  ;;  %v5027_v56 = vunpack.c.l.b16 %v4423_v45 }
 0x4f3   :  { %5788 = vmatpush.bf16.msra.mxu1 %v8661_v59  ;;  %5685 = vmatpush.bf16.msra.mxu3 %v8621_v42  ;;  %v8460_v59 = vld [vmem:[%s13834_s15 + $0x450] sm:$0xf]  ;;  %v9314_v42 = vld [vmem:[%s13834_s15 + $0x474] sm:$0xf0] }
 0x4f4   :  { %v5227_v1 = vpack.c.b16 %v5027_v56, %v5027_v56  ;;  %v8469_v7 = vor.u32 %v9314_v42, %v8468_v34  ;;  %v8081_v56 = vor.u32 %v9213_v49, %v8078_v51  ;;  %v8052_v34 = vld [vmem:[%s13834_s15 + $0x118] sm:$0xf] }
 0x4f5   :  { %5634 = vmatpush.bf16.msrb.mxu0 %v8585_v2  ;;  %v8461_v2 = vor.u32 %v9313_v61, %v8460_v59  ;;  %v8086_v59 = vld [vmem:[%s13834_s15 + $0x178] sm:$0xf0]  ;;  %v9205_v61 = vld [vmem:[%s13834_s15 + $0x114] sm:$0xf]  ;;  %v9210_v42 = vld [vmem:[%s13834_s15 + $0x134] sm:$0xf0] }
 0x4f6   :  { %5737 = vmatpush.bf16.msrb.mxu2 %v8625_v0  ;;  %v9300_v0 = vld [vmem:[%s13834_s15 + $0x40c] sm:$0xf]  ;;  %v8049_v41 = vor.u32 %v9205_v61, %v8046_v35  ;;  %v7924_v49 = vld [vmem:[%s13834_s15 + $0x18] sm:$0xf] }
 0x4f7   :  { %5789 = vmatpush.bf16.msra.mxu1 %v8629_v46  ;;  %5686 = vmatpush.bf16.msra.mxu3 %v8589_v13  ;;  %v5028_v46 = vunpack.c.h.b16 %v4423_v45  ;;  %v8425_v25 = vor.u32 %v9300_v0, %v8422_v38  ;;  %v9301_v13 = vld [vmem:[%s13834_s15 + $0x414] sm:$0xf]  ;;  %v9226_v45 = vld [vmem:[%s13834_s15 + $0x1b4] sm:$0xf0]  ;;  %v9206_v0 = vld [vmem:[%s13834_s15 + $0x11c] sm:$0xf] }
 0x4f8   :  { %v8117_v53 = vor.u32 %v9226_v45, %v8116_v27  ;;  %v8054_v38 = vld [vmem:[%s13834_s15 + $0x138] sm:$0xf0]  ;;  %v9298_v27 = vld [vmem:[%s13834_s15 + $0x3f4] sm:$0xf0] }
 0x4f9   :  { %5635 = vmatpush.bf16.msrb.mxu0 %v8553_v17  ;;  %v9229_v17 = vld [vmem:[%s13834_s15 + $0x1d4] sm:$0xf]  ;;  %v5228_v37 = vpack.c.b16 %v5028_v46, %v5028_v46  ;;  %v8057_v6 = vor.u32 %v9206_v0, %v8054_v38  ;;  %v9178_v51 = vld [vmem:[%s13834_s15 + $0x34] sm:$0xf0] }
 0x4fa   :  { %5738 = vmatpush.bf16.msrb.mxu2 %v8593_v14  ;;  %v8430_v14 = vld [vmem:[%s13834_s15 + $0x430] sm:$0xf0]  ;;  %v8145_v57 = vor.u32 %v9229_v17, %v8142_v18 }
 0x4fb   :  { %5790 = vmatpush.bf16.msra.mxu1 %v8597_v16  ;;  %5687 = vmatpush.bf16.msra.mxu3 %v8557_v23  ;;  %v5439_v16 = vsel %vm2660_vm0, %v5227_v1, 0  ;;  %v8433_v22 = vor.u32 %v9301_v13, %v8430_v14  ;;  %v8437_v23 = vor.u32 %v9306_v15, %v8436_v5  ;;  %v5442_v30 = vsel %vm2660_vm0, %v5228_v37, 0  ;;  %v9197_v1 = vld [vmem:[%s13834_s15 + $0xd4] sm:$0xf]  ;;  %v8022_v13 = vld [vmem:[%s13834_s15 + $0xf8] sm:$0xf0] }
 0x4fc   :  { %v8014_v46 = vld [vmem:[%s13834_s15 + $0xf0] sm:$0xf0]  ;;  %v8025_v17 = vor.u32 %v9198_v12, %v8022_v13  ;;  %v7988_v37 = vld [vmem:[%s13834_s15 + $0x98] sm:$0xf]  ;;  %v9270_v12 = vld [vmem:[%s13834_s15 + $0x31c] sm:$0xf] }
 0x4fd   :  { %5636 = vmatpush.bf16.msrb.mxu0 %v8521_v29  ;;  %v8150_v29 = vld [vmem:[%s13834_s15 + $0x1f8] sm:$0xf0]  ;;  %v9189_v14 = vld [vmem:[%s13834_s15 + $0x94] sm:$0xf] }
 0x4fe   :  { %5739 = vmatpush.bf16.msrb.mxu2 %v8561_v24  ;;  %v8148_v24 = vld [vmem:[%s13834_s15 + $0x1d8] sm:$0xf]  ;;  %v7982_v5 = vld [vmem:[%s13834_s15 + $0xb0] sm:$0xf0]  ;;  %v8310_v13 = vld [vmem:[%s13834_s15 + $0x338] sm:$0xf0] }
 0x4ff   :  { %5791 = vmatpush.bf16.msra.mxu1 %v8565_v28  ;;  %5688 = vmatpush.bf16.msra.mxu3 %v8525_v43  ;;  %v9230_v28 = vld [vmem:[%s13834_s15 + $0x1dc] sm:$0xf]  ;;  %v8149_v39 = vor.u32 %v9234_v40, %v8148_v24  ;;  %v7985_v26 = vor.u32 %v9189_v14, %v7982_v5  ;;  %v7950_v24 = vld [vmem:[%s13834_s15 + $0x70] sm:$0xf0]  ;;  %v8276_v14 = vld [vmem:[%s13834_s15 + $0x2d8] sm:$0xf] }
 0x500   :  { %v8153_v43 = vor.u32 %v9230_v28, %v8150_v29 }
 0x501   :  { %5637 = vmatpush.bf16.msrb.mxu0 %v8489_v48  ;;  %v8118_v48 = vld [vmem:[%s13834_s15 + $0x1b8] sm:$0xf0] }
 0x502   :  { %5740 = vmatpush.bf16.msrb.mxu2 %v8529_v11 }
 0x503   :  { %5792 = vmatpush.bf16.msra.mxu1 %v8533_v47  ;;  %5689 = vmatpush.bf16.msra.mxu3 %v8493_v58  ;;  %v9222_v47 = vld [vmem:[%s13834_s15 + $0x19c] sm:$0xf]  ;;  %v9218_v58 = vld [vmem:[%s13834_s15 + $0x174] sm:$0xf0] }
 0x504   :  { %v8121_v32 = vor.u32 %v9222_v47, %v8118_v48 }
 0x505   :  { %5638 = vmatpush.bf16.msrb.mxu0 %v8457_v62 }
 0x506   :  { %5741 = vmatpush.bf16.msrb.mxu2 %v8497_v33  ;;  %v9214_v33 = vld [vmem:[%s13834_s15 + $0x15c] sm:$0xf] }
 0x507   :  { %5793 = vmatpush.bf16.msra.mxu1 %v8501_v9  ;;  %5690 = vmatpush.bf16.msra.mxu3 %v8461_v2  ;;  %v8085_v9 = vor.u32 %v9218_v58, %v8084_v54  ;;  %v8089_v62 = vor.u32 %v9214_v33, %v8086_v59  ;;  %v13558_v2 = vld [vmem:[%s13836_s16] sm:$0xff]  ;;  %v9294_v54 = vld [vmem:[%s13834_s15 + $0x3dc] sm:$0xf]  ;;  %v8372_v58 = vld [vmem:[%s13834_s15 + $0x398] sm:$0xf]  ;;  %v7925_v59 = vor.u32 %v9178_v51, %v7924_v49 }
 0x508   :  { %v13495_v11 = vpop.f32.mrf.mxu1  ;;  %v4427_v15 = vperm.slane %v13558_v2, 0  ;;  %v9290_v33 = vld [vmem:[%s13834_s15 + $0x3b4] sm:$0xf0]  ;;  %v8182_v49 = vld [vmem:[%s13834_s15 + $0x238] sm:$0xf0] }
 0x509   :  { %5639 = vmatpush.bf16.msrb.mxu0 %v8425_v25  ;;  %v8017_v25 = vor.u32 %v9197_v1, %v8014_v46  ;;  %v9278_v1 = vld [vmem:[%s13834_s15 + $0x35c] sm:$0xf] }
 0x50a   :  { %5742 = vmatpush.bf16.msrb.mxu2 %v8465_v4  ;;  %v8053_v4 = vor.u32 %v9210_v42, %v8052_v34  ;;  %v8374_v34 = vld [vmem:[%s13834_s15 + $0x3b8] sm:$0xf0]  ;;  %v9282_v42 = vld [vmem:[%s13834_s15 + $0x374] sm:$0xf0] }
 0x50b   :  { %5794 = vmatpush.bf16.msra.mxu1 %v8469_v7  ;;  %5691 = vmatpush.bf16.msra.mxu3 %v8429_v19  ;;  %v8020_v7 = vld [vmem:[%s13834_s15 + $0xd8] sm:$0xf]  ;;  %v8342_v46 = vld [vmem:[%s13834_s15 + $0x378] sm:$0xf0] }
 0x50c   :  { %5640 = vmatmul.bf16.vlgmr.msrb.gmra.mxu0 %v12926_v50  ;;  %v9194_v19 = vld [vmem:[%s13834_s15 + $0xb4] sm:$0xf0] }
 0x50d   :  { %5704 = vmatpush.bf16.msra.mxu0 %v5439_v16  ;;  %v8021_v16 = vor.u32 %v9202_v10, %v8020_v7  ;;  %v7989_v40 = vor.u32 %v9194_v19, %v7988_v37  ;;  %v8278_v19 = vld [vmem:[%s13834_s15 + $0x2f8] sm:$0xf0] }
 0x50e   :  { %5743 = vmatpush.bf16.msrb.mxu2 %v8433_v22  ;;  %5692 = vmatmul.bf16.vlgmr.msra.gmra.mxu3 %v12926_v50  ;;  %v7990_v22 = vld [vmem:[%s13834_s15 + $0xb8] sm:$0xf0] }
 0x50f   :  { %5795 = vmatpush.bf16.msra.mxu1 %v8437_v23  ;;  %5756 = vmatpush.bf16.msrb.mxu3 %v5442_v30  ;;  %v9181_v23 = vld [vmem:[%s13834_s15 + $0x54] sm:$0xf]  ;;  %v7993_v28 = vor.u32 %v9190_v20, %v7990_v22  ;;  %v7956_v30 = vld [vmem:[%s13834_s15 + $0x58] sm:$0xf] }
 0x510   :  { %v5461_v63 = vpop.f32.mrf.mxu1  ;;  %v7953_v55 = vor.u32 %v9181_v23, %v7950_v24  ;;  %v8244_v20 = vld [vmem:[%s13834_s15 + $0x298] sm:$0xf] }
 0x511   :  { %5710 = vmatpush.bf16.msrb.mxu0 %v8145_v57  ;;  %5744 = vmatmul.bf16.vlgmr.msrb.gmra.mxu2 %v12926_v50  ;;  %v5460_v57 = vadd.f32 %v13495_v11, %v4427_v15  ;;  %v8404_v11 = vld [vmem:[%s13834_s15 + $0x3d8] sm:$0xf]  ;;  %v9286_v63 = vld [vmem:[%s13834_s15 + $0x39c] sm:$0xf] }
 0x512   :  { %5808 = vmatpush.bf16.msra.mxu2 %v5445_v36  ;;  %5796 = vmatmul.bf16.vlgmr.msra.gmra.mxu1 %v12926_v50  ;;  %v7958_v36 = vld [vmem:[%s13834_s15 + $0x78] sm:$0xf0]  ;;  %v8377_v0 = vor.u32 %v9286_v63, %v8374_v34  ;;  %v9258_v22 = vld [vmem:[%s13834_s15 + $0x2b4] sm:$0xf0] }
 0x513   :  { %5762 = vmatpush.bf16.msra.mxu3 %v8149_v39  ;;  %5860 = vmatpush.bf16.msrb.mxu1 %v5448_v52  ;;  %v9173_v39 = vld [vmem:[%s13834_s15 + $0x14] sm:$0xf]  ;;  %v9174_v52 = vld [vmem:[%s13834_s15 + $0x1c] sm:$0xf] }
 0x515   :  { %5711 = vmatpush.bf16.msrb.mxu0 %v8113_v44  ;;  %v7957_v44 = vor.u32 %v9186_v31, %v7956_v30  ;;  %v9250_v30 = vld [vmem:[%s13834_s15 + $0x274] sm:$0xf0] }
 0x516   :  { %5814 = vmatpush.bf16.msrb.mxu2 %v8153_v43  ;;  %v7918_v43 = vld [vmem:[%s13834_s15 + $0x30] sm:$0xf0] }
 0x517   :  { %5763 = vmatpush.bf16.msra.mxu3 %v8117_v53  ;;  %v7921_v48 = vor.u32 %v9173_v39, %v7918_v43  ;;  %v8405_v53 = vor.u32 %v9298_v27, %v8404_v11  ;;  %v8214_v39 = vld [vmem:[%s13834_s15 + $0x278] sm:$0xf0]  ;;  %v8180_v43 = vld [vmem:[%s13834_s15 + $0x218] sm:$0xf] }
 0x518   :  { %v13581_v18 = vpop.f32.mrf.mxu1  ;;  %v9242_v11 = vld [vmem:[%s13834_s15 + $0x234] sm:$0xf0]  ;;  %v9358_v27 = vld [vmem:[%s13834_s15 + $0x5dc] sm:$0xf] }
 0x519   :  { %5712 = vmatpush.bf16.msrb.mxu0 %v8081_v56  ;;  %v8406_v56 = vld [vmem:[%s13834_s15 + $0x3f8] sm:$0xf0] }
 0x51a   :  { %5815 = vmatpush.bf16.msrb.mxu2 %v8121_v32  ;;  %v7926_v32 = vld [vmem:[%s13834_s15 + $0x38] sm:$0xf0] }
 0x51b   :  { %5764 = vmatpush.bf16.msra.mxu3 %v8085_v9  ;;  %v7929_v35 = vor.u32 %v9174_v52, %v7926_v32  ;;  %v8409_v9 = vor.u32 %v9294_v54, %v8406_v56  ;;  %v9350_v52 = vld [vmem:[%s13834_s15 + $0x59c] sm:$0xf] }
 0x51c   :  { %8670 = vmatmul.msk.bf16.vlgmr.msra.gmra.mxu0 %vm2656_vm1, %v13080_v3  ;;  %v5472_v29 = vpop.f32.mrf.mxu2  ;;  %v9342_v56 = vld [vmem:[%s13834_s15 + $0x55c] sm:$0xf] }
 0x51d   :  { %5713 = vmatpush.bf16.msrb.mxu0 %v8049_v41  ;;  %v13611_v21 = vadd.f32 %v5472_v29, %v5460_v57  ;;  %v8340_v41 = vld [vmem:[%s13834_s15 + $0x358] sm:$0xf]  ;;  %v8245_v57 = vor.u32 %v9258_v22, %v8244_v20 }
 0x51e   :  { %5816 = vmatpush.bf16.msrb.mxu2 %v8089_v62  ;;  %8671 = vmatmul.msk.bf16.vlgmr.msrb.gmra.mxu3 %vm2656_vm1, %v13080_v3  ;;  %v8373_v62 = vor.u32 %v9290_v33, %v8372_v58  ;;  %v8341_v38 = vor.u32 %v9282_v42, %v8340_v41  ;;  %v8212_v29 = vld [vmem:[%s13834_s15 + $0x258] sm:$0xf]  ;;  %v8598_v58 = vld [vmem:[%s13834_s15 + $0x578] sm:$0xf0] }
 0x51f   :  { %5765 = vmatpush.bf16.msra.mxu3 %v8053_v4  ;;  %v8308_v4 = vld [vmem:[%s13834_s15 + $0x318] sm:$0xf]  ;;  %v9326_v41 = vld [vmem:[%s13834_s15 + $0x4dc] sm:$0xf] }
 0x520   :  { %v5526_v47 = vpop.f32.mrf.mxu1 }
 0x521   :  { %5714 = vmatpush.bf16.msrb.mxu0 %v8017_v25  ;;  %8672 = vmatmul.msk.bf16.vlgmr.msra.gmra.mxu2 %vm2656_vm1, %v13080_v3  ;;  %v8345_v25 = vor.u32 %v9278_v1, %v8342_v46  ;;  %v8181_v47 = vor.u32 %v9242_v11, %v8180_v43  ;;  %v9318_v46 = vld [vmem:[%s13834_s15 + $0x49c] sm:$0xf] }
 0x522   :  { %5817 = vmatpush.bf16.msrb.mxu2 %v8057_v6  ;;  %8673 = vmatmul.msk.bf16.vlgmr.msrb.gmra.mxu1 %vm2656_vm1, %v13080_v3  ;;  %v9182_v3 = vld [vmem:[%s13834_s15 + $0x5c] sm:$0xf]  ;;  %v9274_v6 = vld [vmem:[%s13834_s15 + $0x334] sm:$0xf0] }
 0x523   :  { %5766 = vmatpush.bf16.msra.mxu3 %v8021_v16  ;;  %v7961_v45 = vor.u32 %v9182_v3, %v7958_v36  ;;  %v8309_v10 = vor.u32 %v9274_v6, %v8308_v4  ;;  %v8313_v16 = vor.u32 %v9270_v12, %v8310_v13  ;;  %v8213_v3 = vor.u32 %v9250_v30, %v8212_v29  ;;  %v9246_v36 = vld [vmem:[%s13834_s15 + $0x25c] sm:$0xf] }
 0x524   :  { %v5474_v61 = vpop.f32.mrf.mxu2  ;;  %v8502_v4 = vld [vmem:[%s13834_s15 + $0x4b8] sm:$0xf0] }
 0x525   :  { %5715 = vmatpush.bf16.msrb.mxu0 %v7985_v26  ;;  %v9262_v26 = vld [vmem:[%s13834_s15 + $0x2dc] sm:$0xf]  ;;  %v8601_v61 = vor.u32 %v9342_v56, %v8598_v58  ;;  %v8505_v6 = vor.u32 %v9318_v46, %v8502_v4 }
 0x526   :  { %5818 = vmatpush.bf16.msrb.mxu2 %v8025_v17  ;;  %v8281_v24 = vor.u32 %v9262_v26, %v8278_v19  ;;  %v9310_v12 = vld [vmem:[%s13834_s15 + $0x45c] sm:$0xf] }
 0x527   :  { %5767 = vmatpush.bf16.msra.mxu3 %v7989_v40  ;;  %v9254_v40 = vld [vmem:[%s13834_s15 + $0x29c] sm:$0xf] }
 0x528   :  { %v8470_v13 = vld [vmem:[%s13834_s15 + $0x478] sm:$0xf0] }
 0x529   :  { %5716 = vmatpush.bf16.msrb.mxu0 %v7953_v55 }
 0x52a   :  { %5819 = vmatpush.bf16.msrb.mxu2 %v7993_v28  ;;  %v8246_v28 = vld [vmem:[%s13834_s15 + $0x2b8] sm:$0xf0] }
 0x52b   :  { %5768 = vmatpush.bf16.msra.mxu3 %v7957_v44  ;;  %v8249_v31 = vor.u32 %v9254_v40, %v8246_v28  ;;  %v8662_v44 = vld [vmem:[%s13834_s15 + $0x5f8] sm:$0xf0] }
 0x52c   :  { %v13685_v7 = vpop.f32.mrf.mxu1  ;;  %v8665_v51 = vor.u32 %v9358_v27, %v8662_v44  ;;  %v4429_v44 = vperm.slane %v13558_v2, 2 }
 0x52d   :  { %5717 = vmatpush.bf16.msrb.mxu0 %v7921_v48  ;;  %v9238_v48 = vld [vmem:[%s13834_s15 + $0x21c] sm:$0xf] }
 0x52e   :  { %5820 = vmatpush.bf16.msrb.mxu2 %v7961_v45  ;;  %v8217_v45 = vor.u32 %v9246_v36, %v8214_v39  ;;  %v8185_v32 = vor.u32 %v9238_v48, %v8182_v49  ;;  %v4430_v49 = vperm.slane %v13558_v2, 3 }
 0x52f   :  { %5769 = vmatpush.bf16.msra.mxu3 %v7925_v59 }
 0x530   :  { %5718 = vmatmul.bf16.vlgmr.msrb.gmra.mxu0 %v12794_v8 }
 0x531   :  { %5775 = vmatpush.bf16.msra.mxu0 %v8405_v53  ;;  %v5485_v5 = vpop.f32.mrf.mxu3  ;;  %v13699_v15 = vpop.f32.mrf.mxu2  ;;  %v8630_v53 = vld [vmem:[%s13834_s15 + $0x5b8] sm:$0xf0] }
 0x532   :  { %5821 = vmatpush.bf16.msrb.mxu2 %v7929_v35  ;;  %5770 = vmatmul.bf16.vlgmr.msra.gmra.mxu3 %v12794_v8  ;;  %v5486_v17 = vadd.f32 %v5485_v5, %v13611_v21  ;;  %v8633_v54 = vor.u32 %v9350_v52, %v8630_v53  ;;  %v8473_v5 = vor.u32 %v9310_v12, %v8470_v13 }
 0x533   :  { %5827 = vmatpush.bf16.msrb.mxu3 %v8409_v9  ;;  %v9334_v9 = vld [vmem:[%s13834_s15 + $0x51c] sm:$0xf] }
 0x534   :  { %v5591_v23 = vpop.f32.mrf.mxu1 }
 0x535   :  { %5776 = vmatpush.bf16.msra.mxu0 %v8373_v62  ;;  %5822 = vmatmul.bf16.vlgmr.msrb.gmra.mxu2 %v12794_v8  ;;  %v9266_v8 = vld [vmem:[%s13834_s15 + $0x2f4] sm:$0xf0]  ;;  %v8566_v62 = vld [vmem:[%s13834_s15 + $0x538] sm:$0xf0] }
 0x536   :  { %v8277_v37 = vor.u32 %v9266_v8, %v8276_v14  ;;  %v8569_v63 = vor.u32 %v9334_v9, %v8566_v62 }
 0x537   :  { %5828 = vmatpush.bf16.msrb.mxu3 %v8377_v0 }
 0x539   :  { %5777 = vmatpush.bf16.msra.mxu0 %v8341_v38  ;;  %v5487_v21 = vpop.f32.mrf.mxu3  ;;  %v5539_v55 = vpop.f32.mrf.mxu2 }
 0x53b   :  { %5829 = vmatpush.bf16.msrb.mxu3 %v8345_v25 }
 0x53d   :  { %5778 = vmatpush.bf16.msra.mxu0 %v8309_v10  ;;  %v4428_v10 = vperm.slane %v13558_v2, 1 }
 0x53f   :  { %5830 = vmatpush.bf16.msrb.mxu3 %v8313_v16 }
 0x541   :  { %5779 = vmatpush.bf16.msra.mxu0 %v8277_v37  ;;  %v8438_v37 = vld [vmem:[%s13834_s15 + $0x438] sm:$0xf0] }
 0x543   :  { %5831 = vmatpush.bf16.msrb.mxu3 %v8281_v24 }
 0x545   :  { %5780 = vmatpush.bf16.msra.mxu0 %v8245_v57 }
 0x547   :  { %5832 = vmatpush.bf16.msrb.mxu3 %v8249_v31 }
 0x549   :  { %5781 = vmatpush.bf16.msra.mxu0 %v8213_v3  ;;  %v5498_v33 = vpop.f32.mrf.mxu0 }
 0x54a   :  { %v5499_v59 = vadd.f32 %v5498_v33, %v5486_v17  ;;  %v9302_v17 = vld [vmem:[%s13834_s15 + $0x41c] sm:$0xf] }
 0x54b   :  { %5833 = vmatpush.bf16.msrb.mxu3 %v8217_v45  ;;  %v13764_v35 = vpop.f32.mrf.mxu1  ;;  %v8441_v20 = vor.u32 %v9302_v17, %v8438_v37 }
 0x54d   :  { %5782 = vmatpush.bf16.msra.mxu0 %v8181_v47 }
 0x54f   :  { %5834 = vmatpush.bf16.msrb.mxu3 %v8185_v32  ;;  %v5550_v34 = vpop.f32.mrf.mxu3 }
 0x550   :  { %5783 = vmatmul.bf16.vlgmr.msra.gmra.mxu0 %v12853_v60  ;;  %v5602_v42 = vpop.f32.mrf.mxu2 }
 0x551   :  { %5840 = vmatpush.bf16.msrb.mxu0 %v8665_v51  ;;  %v5500_v0 = vpop.f32.mrf.mxu0 }
 0x552   :  { %5835 = vmatmul.bf16.vlgmr.msrb.gmra.mxu3 %v12853_v60  ;;  %v8534_v60 = vld [vmem:[%s13834_s15 + $0x4f8] sm:$0xf0] }
 0x553   :  { %v8537_v38 = vor.u32 %v9326_v41, %v8534_v60  ;;  %v5656_v1 = vpop.f32.mrf.mxu1 }
 0x555   :  { %5841 = vmatpush.bf16.msrb.mxu0 %v8633_v54 }
 0x557   :  { %v5552_v25 = vpop.f32.mrf.mxu3 }
 0x558   :  { %v5604_v14 = vpop.f32.mrf.mxu2 }
 0x559   :  { %5842 = vmatpush.bf16.msrb.mxu0 %v8601_v61  ;;  %v5511_v8 = vpop.f32.mrf.mxu0 }
 0x55a   :  { %v5512_v16 = vadd.f32 %v5511_v8, %v4428_v10  ;;  %v4432_v10 = vperm.slane %v13558_v2, 5 }
 0x55b   :  { %v5667_v26 = vpop.f32.mrf.mxu1 }
 0x55c   :  { %v5525_v19 = vadd.f32 %v13581_v18, %v5512_v16  ;;  %v4431_v18 = vperm.slane %v13558_v2, 4 }
 0x55d   :  { %5843 = vmatpush.bf16.msrb.mxu0 %v8569_v63 }
 0x55e   :  { %v5538_v22 = vadd.f32 %v13699_v15, %v5525_v19  ;;  %v5668_v36 = vadd.f32 %v5667_v26, %v4431_v18 }
 0x55f   :  { %v5563_v24 = vpop.f32.mrf.mxu3 }
 0x560   :  { %v5551_v23 = vadd.f32 %v5550_v34, %v5538_v22  ;;  %v5615_v57 = vpop.f32.mrf.mxu2  ;;  %v5564_v48 = vadd.f32 %v5563_v24, %v4429_v44 }
 0x561   :  { %5844 = vmatpush.bf16.msrb.mxu0 %v8537_v38  ;;  %v5513_v40 = vpop.f32.mrf.mxu0  ;;  %v5616_v51 = vadd.f32 %v5615_v57, %v4430_v49  ;;  %v4433_v57 = vperm.slane %v13558_v2, 6 }
 0x562   :  { %v5874_v28 = vrot.slane %v5551_v23, 6 }
 0x563   :  { %v5669_v29 = vpop.f32.mrf.mxu1 }
 0x564   :  { %v5880_v30 = vsel %vm2946_vm2, %v5499_v59, %v5874_v28 }
 0x565   :  { %5845 = vmatpush.bf16.msrb.mxu0 %v8505_v6 }
 0x567   :  { %v5565_v21 = vpop.f32.mrf.mxu3 }
 0x568   :  { %v5617_v55 = vpop.f32.mrf.mxu2 }
 0x569   :  { %5846 = vmatpush.bf16.msrb.mxu0 %v8473_v5  ;;  %v5576_v31 = vpop.f32.mrf.mxu0 }
 0x56d   :  { %5847 = vmatpush.bf16.msrb.mxu0 %v8441_v20 }
 0x56f   :  { %v5732_v3 = vpop.f32.mrf.mxu1 }
 0x570   :  { %5848 = vmatmul.bf16.vlgmr.msrb.gmra.mxu0 %v12926_v50  ;;  %v5577_v50 = vadd.f32 %v5576_v31, %v5564_v48 }
 0x571   :  { %v5578_v39 = vpop.f32.mrf.mxu0  ;;  %v5628_v15 = vpop.f32.mrf.mxu3 }
 0x572   :  { %v5590_v52 = vadd.f32 %v13685_v7, %v5577_v50  ;;  %v5629_v53 = vadd.f32 %v5628_v15, %v5616_v51 }
 0x574   :  { %v5680_v43 = vpop.f32.mrf.mxu2  ;;  %v5603_v54 = vadd.f32 %v5602_v42, %v5590_v52 }
 0x575   :  { %v5681_v11 = vadd.f32 %v5680_v43, %v5668_v36 }
 0x576   :  { %v5875_v59 = vrot.slane %v5603_v54, 4 }
 0x577   :  { %v5734_v27 = vpop.f32.mrf.mxu1 }
 0x579   :  { %v5630_v45 = vpop.f32.mrf.mxu3 }
 0x57c   :  { %v5682_v47 = vpop.f32.mrf.mxu2 }
 0x589   :  { %v5641_v32 = vpop.f32.mrf.mxu0 }
 0x58a   :  { %v5642_v56 = vadd.f32 %v5641_v32, %v5629_v53 }
 0x58c   :  { %v5655_v58 = vadd.f32 %v13764_v35, %v5642_v56 }
 0x58e   :  { %v5876_v61 = vrot.slane %v5655_v58, 2 }
 0x58f   :  { %v5797_v33 = vpop.f32.mrf.mxu1 }
 0x590   :  { %v5882_v9 = vsel %vm5881_vm6, %v5875_v59, %v5876_v61 }
 0x591   :  { %v5883_v62 = vsel %vm2660_vm0, %v5880_v30, %v5882_v9  ;;  %v5643_v63 = vpop.f32.mrf.mxu0  ;;  %v5693_v7 = vpop.f32.mrf.mxu3 }
 0x592   :  { %5889 = vst [vmem:[%s13837_s17] sm:$0xff] %v5883_v62  ;;  %v5694_v34 = vadd.f32 %v5693_v7, %v5681_v11 }
 0x594   :  { %v5745_v41 = vpop.f32.mrf.mxu2 }
 0x597   :  { %v5799_v60 = vpop.f32.mrf.mxu1 }
 0x599   :  { %v5706_v42 = vpop.f32.mrf.mxu0  ;;  %v5695_v35 = vpop.f32.mrf.mxu3 }
 0x59a   :  { %v5707_v0 = vadd.f32 %v5706_v42, %v5694_v34 }
 0x59c   :  { %v5747_v38 = vpop.f32.mrf.mxu2 }
 0x59f   :  { %v5862_v1 = vpop.f32.mrf.mxu1 }
 0x5a1   :  { %v5708_v46 = vpop.f32.mrf.mxu0  ;;  %v5758_v4 = vpop.f32.mrf.mxu3 }
 0x5a4   :  { %v5810_v6 = vpop.f32.mrf.mxu2 }
 0x5a7   :  { %v5864_v25 = vpop.f32.mrf.mxu1 }
 0x5a9   :  { %v5760_v13 = vpop.f32.mrf.mxu3 }
 0x5ac   :  { %v5812_v8 = vpop.f32.mrf.mxu2 }
 0x5ad   :  { %v5719_v12 = vpop.f32.mrf.mxu0 }
 0x5ae   :  { %v5720_v14 = vadd.f32 %v5719_v12, %v4432_v10 }
 0x5b0   :  { %v5733_v5 = vadd.f32 %v5732_v3, %v5720_v14  ;;  %v4434_v3 = vperm.slane %v13558_v2, 7 }
 0x5b2   :  { %v5746_v16 = vadd.f32 %v5745_v41, %v5733_v5 }
 0x5b4   :  { %v5759_v17 = vadd.f32 %v5758_v4, %v5746_v16 }
 0x5b5   :  { %v5721_v37 = vpop.f32.mrf.mxu0  ;;  %v5771_v19 = vpop.f32.mrf.mxu3 }
 0x5b6   :  { %v5877_v26 = vrot.slane %v5759_v17, 6  ;;  %v5772_v40 = vadd.f32 %v5771_v19, %v4433_v57 }
 0x5b8   :  { %v5823_v20 = vpop.f32.mrf.mxu2  ;;  %v5884_v22 = vsel %vm2946_vm2, %v5707_v0, %v5877_v26 }
 0x5b9   :  { %v5824_v36 = vadd.f32 %v5823_v20, %v4434_v3 }
 0x5bd   :  { %v5773_v23 = vpop.f32.mrf.mxu3 }
 0x5c0   :  { %v5825_v24 = vpop.f32.mrf.mxu2 }
 0x5cd   :  { %v5784_v28 = vpop.f32.mrf.mxu0 }
 0x5ce   :  { %v5785_v29 = vadd.f32 %v5784_v28, %v5772_v40 }
 0x5d0   :  { %v5798_v30 = vadd.f32 %v5797_v33, %v5785_v29 }
 0x5d2   :  { %v5811_v21 = vadd.f32 %v5810_v6, %v5798_v30 }
 0x5d4   :  { %v5878_v27 = vrot.slane %v5811_v21, 4 }
 0x5d5   :  { %v5786_v55 = vpop.f32.mrf.mxu0  ;;  %v5836_v31 = vpop.f32.mrf.mxu3 }
 0x5d6   :  { %v5837_v39 = vadd.f32 %v5836_v31, %v5824_v36 }
 0x5dd   :  { %v5838_v18 = vpop.f32.mrf.mxu3 }
 0x5ed   :  { %v5849_v15 = vpop.f32.mrf.mxu0 }
 0x5ee   :  { %v5850_v43 = vadd.f32 %v5849_v15, %v5837_v39 }
 0x5f0   :  { %v5863_v11 = vadd.f32 %v5862_v1, %v5850_v43 }
 0x5f2   :  { %v5879_v44 = vrot.slane %v5863_v11, 2 }
 0x5f4   :  { %v5885_v45 = vsel %vm5881_vm6, %v5878_v27, %v5879_v44 }
 0x5f5   :  { %v5886_v47 = vsel %vm2660_vm0, %v5884_v22, %v5885_v45  ;;  %v5851_v48 = vpop.f32.mrf.mxu0 }
 0x5f6   :  { %5890 = vst [vmem:[%s13837_s17 + $0x8] sm:$0xff] %v5886_v47 }

</bundles_post_ra>
